<compile_context>
chip_gen: v7x
topology: tpu7x:2x2x1
jax: 0.10.0
libtpu: 0.0.40
codegen_flags: <defaults>
</compile_context>

<pallas_src>
import math
from functools import partial

import jax
import jax.numpy as jnp
from jax import lax
from jax.experimental import pallas as pl
from jax.experimental.pallas import tpu as pltpu


LANE_CHUNK = 256        # in-kernel column sub-chunk (multiple of 128)
MAX_TM = 2048           # cap on columns per grid step
MIN_GRID_STEPS = 4      # aim for >= 4 grid steps (>= 2 for v7x dual-TC)
BF16_MIN_K = 128        # hidden matmuls with K >= this use bf16 MXU operands


# -----------------------------------------------------------------------------
# Kernel: full MLP on one (dim_in, tm) tile of columns, processed in
# LANE_CHUNK-wide sub-chunks.  Weights/biases are tiny and grid-invariant.
# -----------------------------------------------------------------------------
def _siren_kernel(*refs, num_linear, lane_chunk, bf16_min_k):
    # refs = (xT_ref, Wt1, b1, Wt2, b2, ..., WtL, bL, oT_ref)
    xT_ref = refs[0]
    oT_ref = refs[-1]
    param_refs = refs[1:-1]

    tm = xT_ref.shape[1]
    n_chunks = tm // lane_chunk

    def chunk_body(c, carry):
        col = c * lane_chunk
        if not isinstance(col, int):
            col = pl.multiple_of(col, lane_chunk)
        h = xT_ref[:, pl.ds(col, lane_chunk)].astype(jnp.float32)
        for li in range(num_linear):
            wt_ref = param_refs[2 * li]        # (out_l, in_l); w0 folded in
            b_ref = param_refs[2 * li + 1]     # (out_l, 1);    w0 folded in
            k_in = wt_ref.shape[1]
            if k_in <= 8:
                # Tiny-K coordinate layer: VPU broadcast mul-adds; keeps the
                # near-empty K=2 matmul off the serial MXU path.
                wt = wt_ref[...]
                z = wt[:, 0:1] * h[0:1, :]
                for k in range(1, k_in):
                    z = z + wt[:, k:k + 1] * h[k:k + 1, :]
                z = z + b_ref[...]
            else:
                wt = wt_ref[...]
                hh = h
                if k_in >= bf16_min_k:
                    # MXU is bf16-native on v5e/v6e/v7x; f32xf32 costs 3-6x.
                    # (Not exercised at dim_hidden=32: stays f32 for accuracy.)
                    wt = wt.astype(jnp.bfloat16)
                    hh = hh.astype(jnp.bfloat16)
                z = jnp.dot(wt, hh, preferred_element_type=jnp.float32)
                z = z + b_ref[...]
            if li < num_linear - 1:
                h = jnp.sin(z)                 # Sine(w0): w0 already folded
            else:
                h = jax.nn.sigmoid(z)          # last layer: sigmoid
        oT_ref[:, pl.ds(col, lane_chunk)] = h.astype(oT_ref.dtype)
        return carry

    if n_chunks == 1:
        chunk_body(0, 0)
    else:
        # Unrolled so the scheduler can interleave MXU pushes of chunk i+1
        # with the VPU sine polynomial of chunk i.
        lax.fori_loop(0, n_chunks, chunk_body, 0, unroll=True)


def _pick_tm(n):
    """Columns per grid step: >= MIN_GRID_STEPS steps, LANE_CHUNK-aligned."""
    tm = pl.cdiv(n, MIN_GRID_STEPS)
    tm = pl.cdiv(tm, LANE_CHUNK) * LANE_CHUNK
    return max(LANE_CHUNK, min(tm, MAX_TM))


# -----------------------------------------------------------------------------
# Wrapper.  Jitted so reshape/transpose/pad/slice fuse with surrounding XLA.
# -----------------------------------------------------------------------------
@partial(jax.jit, static_argnames=("w0s",))
def _siren_forward_jit(x, weights, biases, w0s):
    orig_lead = x.shape[:-1]
    dim_in = x.shape[-1]
    dim_out = weights[-1].shape[-1]
    num_linear = len(weights)

    n = 1
    for s in orig_lead:
        n *= s

    tm = _pick_tm(n)
    grid = pl.cdiv(n, tm)
    n_pad = grid * tm

    # Lane-dense layout: rows on the lane (minor) axis.
    xT = x.reshape(n, dim_in).astype(jnp.float32).T          # (dim_in, N)
    if n_pad != n:
        xT = jnp.pad(xT, ((0, 0), (0, n_pad - n)))

    # Pre-transpose weights to (out, in), biases to (out, 1); fold w0 into the
    # hidden-layer parameters so the kernel computes sin(Wt @ h + b) directly.
    flat_params = []
    in_specs = [pl.BlockSpec((dim_in, tm), lambda i: (0, i))]
    for li in range(num_linear):
        wt = weights[li].astype(jnp.float32).T                # (out, in)
        bc = biases[li].astype(jnp.float32).reshape(-1, 1)    # (out, 1)
        if li < num_linear - 1:
            wt = wt * w0s[li]
            bc = bc * w0s[li]
        in_specs.append(pl.BlockSpec(wt.shape, lambda i: (0, 0)))
        in_specs.append(pl.BlockSpec(bc.shape, lambda i: (0, 0)))
        flat_params.extend([wt, bc])

    out_spec = pl.BlockSpec((dim_out, tm), lambda i: (0, i))

    # Advisory cost estimate: compute-dense kernel despite tiny I/O.
    mm_flops = 2 * n_pad * sum(int(w.shape[0]) * int(w.shape[1]) for w in weights)
    n_trans = n_pad * (sum(int(w.shape[1]) for w in weights[:-1]) + int(dim_out))
    param_bytes = 4 * sum(int(w.size) + int(b.size) for w, b in zip(weights, biases))
    cost = pl.CostEstimate(
        flops=mm_flops,
        transcendentals=n_trans,
        bytes_accessed=4 * n_pad * (dim_in + dim_out) + param_bytes,
    )

    kernel = partial(_siren_kernel, num_linear=num_linear,
                     lane_chunk=LANE_CHUNK, bf16_min_k=BF16_MIN_K)

    outT = pl.pallas_call(
        kernel,
        out_shape=jax.ShapeDtypeStruct((dim_out, n_pad), jnp.float32),
        grid_spec=pltpu.PrefetchScalarGridSpec(
            num_scalar_prefetch=0,
            grid=(grid,),
            in_specs=in_specs,
            out_specs=out_spec,
        ),
        compiler_params=pltpu.CompilerParams(
            dimension_semantics=("parallel",)),
        cost_estimate=cost,
    )(xT, *flat_params)

    out = outT[:, :n].T                                       # (N, dim_out)
    return out.reshape(*orig_lead, dim_out)


def siren_forward(x, weights, biases, w0s):
    """Run SIREN forward.

    x:        (*, dim_in) float32
    weights:  list of (in, out) float32 arrays (length = num_layers)
    biases:   list of (out,) float32 arrays
    w0s:      list of python floats (w0 per non-last layer; last entry unused)
    """
    return _siren_forward_jit(x, list(weights), list(biases),
                              tuple(float(v) for v in w0s))


# -----------------------------------------------------------------------------
# Deterministic parameter init replicating the PyTorch module's __init__.
# -----------------------------------------------------------------------------
def init_siren_params(key, dim_in, dim_hidden, dim_out, num_layers,
                      w0=30.0, w0_initial=30.0, c=6.0):
    weights, biases, w0s = [], [], []

    # hidden layers (num_layers - 1 of them)
    for ind in range(num_layers - 1):
        is_first = ind == 0
        layer_w0 = w0_initial if is_first else w0
        layer_dim_in = dim_in if is_first else dim_hidden
        w_std = (1.0 / layer_dim_in) if is_first else math.sqrt(c / layer_dim_in) / layer_w0
        key, kw, kb = jax.random.split(key, 3)
        w = jax.random.uniform(kw, (layer_dim_in, dim_hidden),
                               minval=-w_std, maxval=w_std, dtype=jnp.float32)
        b = jax.random.uniform(kb, (dim_hidden,),
                               minval=-w_std, maxval=w_std, dtype=jnp.float32)
        weights.append(w)
        biases.append(b)
        w0s.append(layer_w0)

    # last layer: default nn.Linear init (uniform(-1/sqrt(fan_in), 1/sqrt(fan_in)))
    bound = 1.0 / math.sqrt(dim_hidden)
    key, kw, kb = jax.random.split(key, 3)
    w = jax.random.uniform(kw, (dim_hidden, dim_out),
                           minval=-bound, maxval=bound, dtype=jnp.float32)
    b = jax.random.uniform(kb, (dim_out,),
                           minval=-bound, maxval=bound, dtype=jnp.float32)
    weights.append(w)
    biases.append(b)
    w0s.append(w0)  # unused (last layer applies sigmoid, not sine)

    return weights, biases, w0s


# -----------------------------------------------------------------------------
# Pure-JAX reference (mirrors the PyTorch math exactly).
# -----------------------------------------------------------------------------
def siren_ref(x, weights, biases, w0s):
    h = x.astype(jnp.float32)
    num_linear = len(weights)
    for li in range(num_linear):
        z = h @ weights[li] + biases[li]
        if li < num_linear - 1:
            h = jnp.sin(w0s[li] * z)
        else:
            h = jax.nn.sigmoid(z)
    return h


if __name__ == "__main__":
    # Small SIREN: 2-D coordinate input, hidden=32, 3-channel output, 4 layers.
    dim_in, dim_hidden, dim_out, num_layers = 2, 32, 3, 4

    key = jax.random.PRNGKey(0)
    kparam, kx = jax.random.split(key)

    weights, biases, w0s = init_siren_params(
        kparam, dim_in, dim_hidden, dim_out, num_layers)

    # coordinates in [0, 1], shape (*, dim_in) with * = (2, 16, 16)  -> N = 512
    x = jax.random.uniform(kx, (2, 16, 16, dim_in), dtype=jnp.float32)

    out = siren_forward(x, weights, biases, w0s)
    out = jax.block_until_ready(out)

    ref = siren_ref(x.reshape(-1, dim_in), weights, biases, w0s).reshape(out.shape)
    assert out.shape == (2, 16, 16, dim_out)
    assert jnp.allclose(out, ref, atol=1e-4, rtol=1e-4), "mismatch vs reference"

    print("KERNEL_OK")
</pallas_src>

<mosaic_0001>
module attributes {stable_mosaic.version = 11 : i64} {
  func.func @_siren_kernel(%arg0: i32, %arg1: memref<2x256xf32, #tpu.memory_space<vmem>>, %arg2: memref<32x2xf32, #tpu.memory_space<vmem>>, %arg3: memref<32x1xf32, #tpu.memory_space<vmem>>, %arg4: memref<32x32xf32, #tpu.memory_space<vmem>>, %arg5: memref<32x1xf32, #tpu.memory_space<vmem>>, %arg6: memref<32x32xf32, #tpu.memory_space<vmem>>, %arg7: memref<32x1xf32, #tpu.memory_space<vmem>>, %arg8: memref<3x32xf32, #tpu.memory_space<vmem>>, %arg9: memref<3x1xf32, #tpu.memory_space<vmem>>, %arg10: memref<3x256xf32, #tpu.memory_space<vmem>>) attributes {dimension_semantics = [#tpu.dimension_semantics<parallel>], iteration_bounds = array<i64: 2>, scalar_prefetch = 0 : i64, scratch_operands = 0 : i64, tpu.core_type = #tpu.core_type<tc>, window_params = [{transform_indices = @transform_0, window_bounds = array<i64: 2, 256>}, {pipeline_mode = #tpu.pipeline_mode<synchronous>, transform_indices = @transform_1, window_bounds = array<i64: 32, 2>}, {pipeline_mode = #tpu.pipeline_mode<synchronous>, transform_indices = @transform_2, window_bounds = array<i64: 32, 1>}, {pipeline_mode = #tpu.pipeline_mode<synchronous>, transform_indices = @transform_3, window_bounds = array<i64: 32, 32>}, {pipeline_mode = #tpu.pipeline_mode<synchronous>, transform_indices = @transform_4, window_bounds = array<i64: 32, 1>}, {pipeline_mode = #tpu.pipeline_mode<synchronous>, transform_indices = @transform_5, window_bounds = array<i64: 32, 32>}, {pipeline_mode = #tpu.pipeline_mode<synchronous>, transform_indices = @transform_6, window_bounds = array<i64: 32, 1>}, {pipeline_mode = #tpu.pipeline_mode<synchronous>, transform_indices = @transform_7, window_bounds = array<i64: 3, 32>}, {pipeline_mode = #tpu.pipeline_mode<synchronous>, transform_indices = @transform_8, window_bounds = array<i64: 3, 1>}, {transform_indices = @transform_9, window_bounds = array<i64: 3, 256>}]} {
    %c0 = arith.constant 0 : index
    %c0_0 = arith.constant 0 : index
    %0 = vector.load %arg1[%c0, %c0_0] : memref<2x256xf32, #tpu.memory_space<vmem>>, vector<2x256xf32>
    %c0_1 = arith.constant 0 : index
    %c0_2 = arith.constant 0 : index
    %1 = vector.load %arg2[%c0_1, %c0_2] : memref<32x2xf32, #tpu.memory_space<vmem>>, vector<32x2xf32>
    %2 = vector.extract_strided_slice %1 {offsets = [0, 0], sizes = [32, 1], strides = [1, 1]} : vector<32x2xf32> to vector<32x1xf32>
    %3 = vector.extract_strided_slice %0 {offsets = [0, 0], sizes = [1, 256], strides = [1, 1]} : vector<2x256xf32> to vector<1x256xf32>
    %4 = vector.broadcast %2 : vector<32x1xf32> to vector<32x256xf32>
    %5 = vector.broadcast %3 : vector<1x256xf32> to vector<32x256xf32>
    %6 = arith.mulf %4, %5 : vector<32x256xf32>
    %7 = vector.extract_strided_slice %1 {offsets = [0, 1], sizes = [32, 1], strides = [1, 1]} : vector<32x2xf32> to vector<32x1xf32>
    %8 = vector.extract_strided_slice %0 {offsets = [1, 0], sizes = [1, 256], strides = [1, 1]} : vector<2x256xf32> to vector<1x256xf32>
    %9 = vector.broadcast %7 : vector<32x1xf32> to vector<32x256xf32>
    %10 = vector.broadcast %8 : vector<1x256xf32> to vector<32x256xf32>
    %11 = arith.mulf %9, %10 : vector<32x256xf32>
    %12 = arith.addf %6, %11 : vector<32x256xf32>
    %c0_3 = arith.constant 0 : index
    %c0_4 = arith.constant 0 : index
    %13 = vector.load %arg3[%c0_3, %c0_4] : memref<32x1xf32, #tpu.memory_space<vmem>>, vector<32x1xf32>
    %14 = vector.broadcast %13 : vector<32x1xf32> to vector<32x256xf32>
    %15 = arith.addf %12, %14 : vector<32x256xf32>
    %16 = math.sin %15 : vector<32x256xf32>
    %c0_5 = arith.constant 0 : index
    %c0_6 = arith.constant 0 : index
    %17 = vector.load %arg4[%c0_5, %c0_6] : memref<32x32xf32, #tpu.memory_space<vmem>>, vector<32x32xf32>
    %cst = arith.constant dense<0.000000e+00> : vector<32x256xf32>
    %18 = tpu.matmul %17, %16, %cst {dimension_numbers = #tpu.dot_dimension_numbers<[1], [0], [0], [1], [0, 0, 1, 1], [], []>} : vector<32x32xf32>, vector<32x256xf32>, vector<32x256xf32> -> vector<32x256xf32>
    %c0_7 = arith.constant 0 : index
    %c0_8 = arith.constant 0 : index
    %19 = vector.load %arg5[%c0_7, %c0_8] : memref<32x1xf32, #tpu.memory_space<vmem>>, vector<32x1xf32>
    %20 = vector.broadcast %19 : vector<32x1xf32> to vector<32x256xf32>
    %21 = arith.addf %18, %20 : vector<32x256xf32>
    %22 = math.sin %21 : vector<32x256xf32>
    %c0_9 = arith.constant 0 : index
    %c0_10 = arith.constant 0 : index
    %23 = vector.load %arg6[%c0_9, %c0_10] : memref<32x32xf32, #tpu.memory_space<vmem>>, vector<32x32xf32>
    %cst_11 = arith.constant dense<0.000000e+00> : vector<32x256xf32>
    %24 = tpu.matmul %23, %22, %cst_11 {dimension_numbers = #tpu.dot_dimension_numbers<[1], [0], [0], [1], [0, 0, 1, 1], [], []>} : vector<32x32xf32>, vector<32x256xf32>, vector<32x256xf32> -> vector<32x256xf32>
    %c0_12 = arith.constant 0 : index
    %c0_13 = arith.constant 0 : index
    %25 = vector.load %arg7[%c0_12, %c0_13] : memref<32x1xf32, #tpu.memory_space<vmem>>, vector<32x1xf32>
    %26 = vector.broadcast %25 : vector<32x1xf32> to vector<32x256xf32>
    %27 = arith.addf %24, %26 : vector<32x256xf32>
    %28 = math.sin %27 : vector<32x256xf32>
    %c0_14 = arith.constant 0 : index
    %c0_15 = arith.constant 0 : index
    %29 = vector.load %arg8[%c0_14, %c0_15] : memref<3x32xf32, #tpu.memory_space<vmem>>, vector<3x32xf32>
    %cst_16 = arith.constant dense<0.000000e+00> : vector<3x256xf32>
    %30 = tpu.matmul %29, %28, %cst_16 {dimension_numbers = #tpu.dot_dimension_numbers<[1], [0], [0], [1], [0, 0, 1, 1], [], []>} : vector<3x32xf32>, vector<32x256xf32>, vector<3x256xf32> -> vector<3x256xf32>
    %c0_17 = arith.constant 0 : index
    %c0_18 = arith.constant 0 : index
    %31 = vector.load %arg9[%c0_17, %c0_18] : memref<3x1xf32, #tpu.memory_space<vmem>>, vector<3x1xf32>
    %32 = vector.broadcast %31 : vector<3x1xf32> to vector<3x256xf32>
    %33 = arith.addf %30, %32 : vector<3x256xf32>
    %34 = arith.negf %33 : vector<3x256xf32>
    %35 = math.exp %34 : vector<3x256xf32>
    %cst_19 = arith.constant 1.000000e+00 : f32
    %36 = vector.broadcast %cst_19 : f32 to vector<3x256xf32>
    %37 = arith.addf %36, %35 : vector<3x256xf32>
    %38 = arith.divf %36, %37 : vector<3x256xf32>
    %c0_20 = arith.constant 0 : index
    %c0_21 = arith.constant 0 : index
    %39 = vector.load %arg10[%c0_20, %c0_21] : memref<3x256xf32, #tpu.memory_space<vmem>>, vector<3x256xf32>
    tpu.vector_store %arg10[%c0_20, %c0_21], %38 {strides = array<i32>} : memref<3x256xf32, #tpu.memory_space<vmem>>, vector<3x256xf32>,
    return
  }
  func.func @transform_0(%arg0: i32) -> (i32, i32) {
    %c0_i32 = arith.constant 0 : i32
    %c0_i32_0 = arith.constant 0 : i32
    return %c0_i32, %arg0 : i32, i32
  }
  func.func @transform_1(%arg0: i32) -> (i32, i32) {
    %c0_i32 = arith.constant 0 : i32
    %c0_i32_0 = arith.constant 0 : i32
    %c0_i32_1 = arith.constant 0 : i32
    return %c0_i32, %c0_i32_0 : i32, i32
  }
  func.func @transform_2(%arg0: i32) -> (i32, i32) {
    %c0_i32 = arith.constant 0 : i32
    %c0_i32_0 = arith.constant 0 : i32
    %c0_i32_1 = arith.constant 0 : i32
    return %c0_i32, %c0_i32_0 : i32, i32
  }
  func.func @transform_3(%arg0: i32) -> (i32, i32) {
    %c0_i32 = arith.constant 0 : i32
    %c0_i32_0 = arith.constant 0 : i32
    %c0_i32_1 = arith.constant 0 : i32
    return %c0_i32, %c0_i32_0 : i32, i32
  }
  func.func @transform_4(%arg0: i32) -> (i32, i32) {
    %c0_i32 = arith.constant 0 : i32
    %c0_i32_0 = arith.constant 0 : i32
    %c0_i32_1 = arith.constant 0 : i32
    return %c0_i32, %c0_i32_0 : i32, i32
  }
  func.func @transform_5(%arg0: i32) -> (i32, i32) {
    %c0_i32 = arith.constant 0 : i32
    %c0_i32_0 = arith.constant 0 : i32
    %c0_i32_1 = arith.constant 0 : i32
    return %c0_i32, %c0_i32_0 : i32, i32
  }
  func.func @transform_6(%arg0: i32) -> (i32, i32) {
    %c0_i32 = arith.constant 0 : i32
    %c0_i32_0 = arith.constant 0 : i32
    %c0_i32_1 = arith.constant 0 : i32
    return %c0_i32, %c0_i32_0 : i32, i32
  }
  func.func @transform_7(%arg0: i32) -> (i32, i32) {
    %c0_i32 = arith.constant 0 : i32
    %c0_i32_0 = arith.constant 0 : i32
    %c0_i32_1 = arith.constant 0 : i32
    return %c0_i32, %c0_i32_0 : i32, i32
  }
  func.func @transform_8(%arg0: i32) -> (i32, i32) {
    %c0_i32 = arith.constant 0 : i32
    %c0_i32_0 = arith.constant 0 : i32
    %c0_i32_1 = arith.constant 0 : i32
    return %c0_i32, %c0_i32_0 : i32, i32
  }
  func.func @transform_9(%arg0: i32) -> (i32, i32) {
    %c0_i32 = arith.constant 0 : i32
    %c0_i32_0 = arith.constant 0 : i32
    return %c0_i32, %arg0 : i32, i32
  }
}

</mosaic_0001>

<bundles_post_ra>
// kernel: _siren_forward_jit.1
= control target key start
LH: loop header
LB: loop body
LE: loop exit
PB: predicated region body
PF: predicated region fallthrough
CT: control target
= control target key end

     0   :  { %s3811_s30 = smov 0   ;;  %s6265_s0 = inlined_call_operand.vmem [shape: f32[2,512], index: 0, kind: input, shape index: {}]   ;;  %s6266_s1 = inlined_call_operand.vmem [shape: f32[32,2], index: 1, kind: input, shape index: {}]   ;;  %s6267_s2 = inlined_call_operand.vmem [shape: f32[32,1], index: 2, kind: input, shape index: {}]   ;;  %s6268_s3 = inlined_call_operand.vmem [shape: f32[32,32], index: 3, kind: input, shape index: {}]   ;;  %s6269_s4 = inlined_call_operand.vmem [shape: f32[32,1], index: 4, kind: input, shape index: {}]   ;;  %s6270_s5 = inlined_call_operand.vmem [shape: f32[32,32], index: 5, kind: input, shape index: {}]   ;;  %s6271_s6 = inlined_call_operand.vmem [shape: f32[32,1], index: 6, kind: input, shape index: {}]   ;;  %s6272_s7 = inlined_call_operand.vmem [shape: f32[3,32], index: 7, kind: input, shape index: {}]   ;;  %s6273_s8 = inlined_call_operand.vmem [shape: f32[3,1], index: 8, kind: input, shape index: {}]   ;;  %s6274_s9 = inlined_call_operand.vmem [shape: f32[3,512], index: 9, kind: output, shape index: {}]  }
   0x1 LB: > { %s3379_s10 = sadd.s32 4294967295, %s3750_s30   ;;  %p3383_p0 = scmp.ge.s32.totalorder %s3750_s30, 1  ;;  %s3750_s30 = sphi %s3811_s30, %s19_s30  }
   0x2   : > { %p288_p1 = scmp.lt.s32.totalorder %s3750_s30, 3 }
   0x4   : > { %p289_p2 = pnand %p3383_p0, %p288_p1 }
   0x6   : > { %292 = sbr.rel (%p289_p2) target bundleno = 1491 (0x5d3), region = 56 }
   0xd   : > { %v339_v0 = vld [vmem:[%s6266_s1 + $0x10] sm:$0xff]  ;;  %v337_v1 = vld [vmem:[%s6266_s1] sm:$0xff]  ;;  %v3752_v2 = vmov 1   ;;  %v338_v3 = vld [vmem:[%s6266_s1 + $0x8] sm:$0xff]  ;;  %v3753_v4 = vmov 0   ;;  %s3384_s26 = sshll.u32 %s3379_s10, 1  ;;  %v362_v21 = vlaneseq }
   0xe   : > { %3636 = vset.pattern.permute.xlu0 %v3752_v2  ;;  %3634 = vset.pattern.permute.xlu1 %v3752_v2  ;;  %v340_v5 = vld [vmem:[%s6266_s1 + $0x18] sm:$0xff]  ;;  %v439_v6 = vld [vmem:[%s6267_s2 + $0x8] sm:$0xff]  ;;  %v438_v7 = vld [vmem:[%s6267_s2] sm:$0xff]  ;;  %p325_p3 = scmp.lt.s32.totalorder %s3384_s26, 3 }
   0xf   : > { %397 = vperm.xlu0 %3636, %v339_v0   ;;  %389 = vperm.xlu1 %3634, %v337_v1   ;;  %v1306_v8 = vld [vmem:[%s6269_s4] sm:$0xff]  ;;  %v440_v9 = vld [vmem:[%s6267_s2 + $0x10] sm:$0xff]  ;;  %v441_v11 = vld [vmem:[%s6267_s2 + $0x18] sm:$0xff]  ;;  %v363_v24 = vshrl.u32 %v362_v21, 7 }
  0x10   : > { %v1308_v10 = vld [vmem:[%s6269_s4 + $0x10] sm:$0xff]  ;;  %v2268_v12 = vld [vmem:[%s6271_s6] sm:$0xff]  ;;  %v1307_v13 = vld [vmem:[%s6269_s4 + $0x8] sm:$0xff]  ;;  %s6505_s26 = smov (!%p325_p3, %s3384_s26), 3 }
  0x11   : > { %v2270_v14 = vld [vmem:[%s6271_s6 + $0x10] sm:$0xff]  ;;  %v1309_v15 = vld [vmem:[%s6269_s4 + $0x18] sm:$0xff]  ;;  %v3226_v16 = vld [vmem:[%s6273_s8] sm:$0x7]  ;;  %s3385_s27 = sshll.u32 %s6505_s26, 1  ;;  %v364_v25 = vsub.s32 0, %v363_v24 }
  0x12   : > { %v2269_v17 = vld [vmem:[%s6271_s6 + $0x8] sm:$0xff]  ;;  %v2271_v18 = vld [vmem:[%s6271_s6 + $0x18] sm:$0xff]  ;;  %s328_s11 = scalar_lea.vmem %s6265_s0, %s3385_s27  ;;  %v406_v28 = vsub.s32 1, %v363_v24  ;;  %v368_v35 = vsub.s32 2, %v363_v24  ;;  %v410_v39 = vsub.s32 3, %v363_v24 }
  0x13   : > { %3637 = vset.pattern.permute.xlu0 %v3753_v4  ;;  %393 = vperm.xlu1 %3634, %v338_v3   ;;  %v336_v29 = vld [vmem:[%s328_s11] sm:$0xf]  ;;  %s3387_s11 = sshll.u32 %s6505_s26, 2 }
  0x14   : > { %343 = vperm.xlu0 %3637, %v337_v1   ;;  %v365_v30 = vrot.slane %v336_v29, %v364_v25  ;;  %v407_v32 = vrot.slane %v336_v29, %v406_v28  ;;  %v369_v41 = vrot.slane %v336_v29, %v368_v35  ;;  %v411_v44 = vrot.slane %v336_v29, %v410_v39  ;;  %s334_s13 = scalar_lea.vmem %s6274_s9, %s3387_s11 }
  0x15   : > { %v6310_v39 = vmov 2131351028  }
  0x16   : > { %v375_v34 = vrot.slane %v365_v30, %v364_v25  ;;  %v417_v36 = vrot.slane %v407_v32, %v406_v28  ;;  %v379_v47 = vrot.slane %v369_v41, %v364_v25  ;;  %v421_v49 = vrot.slane %v411_v44, %v406_v28 }
  0x17   : > { %3635 = vset.pattern.permute.xlu1 %v3753_v4 }
  0x18   : > { %348 = vperm.xlu0 %3637, %v338_v3   ;;  %358 = vperm.xlu1 %3635, %v340_v5  }
  0x1c   : > { %353 = vperm.xlu0 %3637, %v339_v0   ;;  %3638 = vset.pattern.permute.xlu1 %v3752_v2 }
  0x1d   : > { %401 = vperm.xlu1 %3638, %v340_v5  }
  0x20   : > { %449 = vperm.xlu0 %3637, %v439_v6  }
  0x21   : > { %3639 = vset.pattern.permute.xlu1 %v3753_v4 }
  0x22   : > { %444 = vperm.xlu1 %3639, %v438_v7  }
  0x24   : > { %1312 = vperm.xlu0 %3637, %v1306_v8  }
  0x26   : > { %454 = vperm.xlu1 %3639, %v440_v9  }
  0x28   : > { %1322 = vperm.xlu0 %3637, %v1308_v10  }
  0x2a   : > { %459 = vperm.xlu1 %3639, %v441_v11  }
  0x2c   : > { %2274 = vperm.xlu0 %3637, %v2268_v12  }
  0x2e   : > { %1317 = vperm.xlu1 %3639, %v1307_v13  }
  0x30   : > { %2284 = vperm.xlu0 %3637, %v2270_v14  }
  0x32   : > { %1327 = vperm.xlu1 %3639, %v1309_v15  }
  0x34   : > { %3229 = vperm.xlu0 %3637, %v3226_v16  }
  0x36   : > { %2279 = vperm.xlu1 %3639, %v2269_v17  }
  0x3a   : > { %2289 = vperm.xlu1 %3639, %v2271_v18  }
  0x8e   : > { %v390_v19 = vpop.permute.xlu1 %389  ;;  %v398_v20 = vpop.permute.xlu0 %397 }
  0x8f   : > { %v426_v40 = vmul.f32 %v417_v36, %v398_v20  ;;  %v422_v60 = vmul.f32 %v417_v36, %v390_v19  ;;  %v423_v63 = vmul.f32 %v421_v49, %v390_v19  ;;  %v427_v1 = vmul.f32 %v421_v49, %v398_v20 }
  0x92   : > { %v394_v22 = vpop.permute.xlu1 %393 }
  0x93   : > { %v344_v23 = vpop.permute.xlu0 %343  ;;  %v424_v48 = vmul.f32 %v417_v36, %v394_v22  ;;  %v425_v54 = vmul.f32 %v421_v49, %v394_v22 }
  0x94   : > { %v380_v56 = vmul.f32 %v375_v34, %v344_v23  ;;  %v381_v58 = vmul.f32 %v379_v47, %v344_v23 }
  0x96   : > { %v430_v2 = vadd.f32 %v422_v60, %v380_v56  ;;  %v431_v3 = vadd.f32 %v423_v63, %v381_v58 }
  0x97   : > { %v359_v26 = vpop.permute.xlu1 %358  ;;  %v349_v27 = vpop.permute.xlu0 %348 }
  0x98   : > { %v382_v45 = vmul.f32 %v375_v34, %v349_v27  ;;  %v383_v50 = vmul.f32 %v379_v47, %v349_v27  ;;  %v386_v16 = vmul.f32 %v375_v34, %v359_v26  ;;  %v387_v19 = vmul.f32 %v379_v47, %v359_v26 }
  0x99   : > { %v6286_v26 = vmov 683565275  }
  0x9a   : > { %v432_v52 = vadd.f32 %v424_v48, %v382_v45  ;;  %v433_v57 = vadd.f32 %v425_v54, %v383_v50  ;;  %v6282_v45 = vmov 920167782  }
  0x9b   : > { %v354_v33 = vpop.permute.xlu0 %353 }
  0x9c   : > { %v402_v31 = vpop.permute.xlu1 %401  ;;  %v384_v37 = vmul.f32 %v375_v34, %v354_v33  ;;  %v385_v61 = vmul.f32 %v379_v47, %v354_v33 }
  0x9d   : > { %v428_v12 = vmul.f32 %v417_v36, %v402_v31  ;;  %v429_v13 = vmul.f32 %v421_v49, %v402_v31  ;;  %v6304_v36 = vmov 2475754826   ;;  %v6280_v49 = vmov 1326507024  }
  0x9e   : > { %v434_v43 = vadd.f32 %v426_v40, %v384_v37  ;;  %v435_v7 = vadd.f32 %v427_v1, %v385_v61 }
  0x9f   : > { %v450_v51 = vpop.permute.xlu0 %449  ;;  %v436_v27 = vadd.f32 %v428_v12, %v386_v16  ;;  %v3897_v28 = vadd.f32 %v429_v13, %v387_v19 }
  0xa0   : > { %v3881_v55 = vadd.f32 %v450_v51, %v432_v52  ;;  %v3883_v62 = vadd.f32 %v450_v51, %v433_v57 }
  0xa1   : > { %v445_v38 = vpop.permute.xlu1 %444 }
  0xa2   : > { %6357 = vst [vmem:[#allocation3_spill] sm:$0xff] %v3881_v55  ;;  %v681_v0 = vand.u32 2139095040, %v3881_v55  ;;  %v785_v5 = vand.u32 2139095040, %v3883_v62  ;;  %v3887_v6 = vadd.f32 %v445_v38, %v430_v2  ;;  %v3889_v9 = vadd.f32 %v445_v38, %v431_v3 }
  0xa4   : > { %v682_v8 = vshrl.u32 %v681_v0, 23  ;;  %6358 = vst [vmem:[#allocation4_spill] sm:$0xff] %v3889_v9  ;;  %v786_v14 = vshrl.u32 %v785_v5, 23  ;;  %v473_v15 = vand.u32 2139095040, %v3887_v6  ;;  %v577_v18 = vand.u32 2139095040, %v3889_v9 }
  0xa5   : > { %v455_v42 = vpop.permute.xlu1 %454 }
  0xa6   : > { %v3878_v46 = vadd.f32 %v455_v42, %v434_v43  ;;  %v3891_v10 = vadd.f32 %v455_v42, %v435_v7  ;;  %v3396_v17 = vadd.s32 4294967169, %v682_v8  ;;  %v3400_v24 = vadd.s32 4294967169, %v786_v14 }
  0xa7   : > { %v474_v25 = vshrl.u32 %v473_v15, 23  ;;  %v578_v30 = vshrl.u32 %v577_v18, 23  ;;  %v6284_v42 = vmov 2102212464  }
  0xa8   : > { %6356 = vst [vmem:[#allocation2_spill] sm:$0xff] %v3878_v46  ;;  %v889_v53 = vand.u32 2139095040, %v3878_v46  ;;  %6359 = vst [vmem:[#allocation5_spill] sm:$0xff] %v3891_v10  ;;  %v6275_v20 = vand.u32 2147483647, %v3878_v46  ;;  %v993_v22 = vand.u32 2139095040, %v3891_v10 }
  0xa9   : > { %v688_v29 = vadd.s32 1, %v3396_v17  ;;  %v6277_v58 = vand.u32 2147483647, %v3891_v10  ;;  %v792_v2 = vadd.s32 1, %v3400_v24  ;;  %v460_v5 = vpop.permute.xlu1 %459  ;;  %v3392_v12 = vadd.s32 4294967169, %v578_v30 }
  0xaa   : > { %v890_v59 = vshrl.u32 %v889_v53, 23  ;;  %v994_v32 = vshrl.u32 %v993_v22, 23  ;;  %v893_v33 = vand.u32 8388607, %v6275_v20  ;;  %v3924_v18 = vadd.f32 %v460_v5, %v436_v27 }
  0xab   : > { %vm689_vm6 = vcmp.gt.s32.totalorder %v688_v29, 0  ;;  %v997_v16 = vand.u32 8388607, %v6277_v58  ;;  %v3388_v24 = vadd.s32 4294967169, %v474_v25  ;;  %vm793_vm7 = vcmp.gt.s32.totalorder %v792_v2, 0 }
  0xac   : > { %v3404_v4 = vadd.s32 4294967169, %v890_v59  ;;  %v3408_v54 = vadd.s32 4294967169, %v994_v32  ;;  %v894_v59 = vor.u32 8388608, %v893_v33  ;;  %6360 = vst [vmem:[#allocation6_spill] sm:$0xff] %v3924_v18  ;;  %v6278_v32 = vand.u32 2147483647, %v3889_v9 }
  0xad   : > { %v690_v33 = vsel %vm689_vm6, %v688_v29, 0  ;;  %v6370_v9 = vmov 1326507024  }
  0xae   : > { %v896_v11 = vadd.s32 1, %v3404_v4  ;;  %v1000_v1 = vadd.s32 1, %v3408_v54  ;;  %v3919_v14 = vshll.u32 %v894_v59, 8 }
  0xb0   : > { %vm897_vm0 = vcmp.gt.s32.totalorder %v896_v11, 0  ;;  %vm1001_vm5 = vcmp.gt.s32.totalorder %v1000_v1, 0 }
  0xb1   : > { %v898_v21 = vsel %vm897_vm0, %v896_v11, 0  ;;  %v1002_v17 = vsel %vm1001_vm5, %v1000_v1, 0 }
  0xb2   : > { %v900_v23 = vand.u32 31, %v898_v21  ;;  %v899_v34 = vshrl.u32 %v898_v21, 5 }
  0xb4   : > { %v901_v31 = vsub.s32 32, %v900_v23  ;;  %v903_v35 = vshll.u32 %v6286_v26, %v900_v23  ;;  %v906_v37 = vshll.u32 %v6304_v36, %v900_v23  ;;  %v909_v41 = vshll.u32 %v6310_v39, %v900_v23 }
  0xb5   : > { %v912_v44 = vshll.u32 %v6284_v42, %v900_v23  ;;  %v915_v48 = vshll.u32 %v6282_v45, %v900_v23  ;;  %vm918_vm1 = vcmp.lt.s32.totalorder %v899_v34, 1  ;;  %vm920_vm2 = vcmp.lt.s32.totalorder %v899_v34, 3 }
  0xb6   : > { %v904_v38 = vshrl.u32 %v6304_v36, %v901_v31  ;;  %v907_v40 = vshrl.u32 %v6310_v39, %v901_v31  ;;  %v910_v43 = vshrl.u32 %v6284_v42, %v901_v31  ;;  %v913_v47 = vshrl.u32 %v6282_v45, %v901_v31 }
  0xb7   : > { %v916_v50 = vshrl.u32 %v6280_v49, %v901_v31  ;;  %vm921_vm3 = vcmp.lt.s32.totalorder %v899_v34, 4  ;;  %vm919_vm4 = vcmp.lt.s32.totalorder %v899_v34, 2  ;;  %v902_v7 = vshrl.u32 %v6286_v26, %v901_v31 }
  0xb8   : > { %v905_v51 = vor.u32 %v904_v38, %v903_v35  ;;  %v908_v52 = vor.u32 %v907_v40, %v906_v37  ;;  %v911_v53 = vor.u32 %v910_v43, %v909_v41  ;;  %v914_v56 = vor.u32 %v913_v47, %v912_v44 }
  0xb9   : > { %v917_v57 = vor.u32 %v916_v50, %v915_v48  ;;  %v1004_v23 = vand.u32 31, %v1002_v17  ;;  %v3937_v35 = vadd.s32 1, %v3392_v12  ;;  %v998_v38 = vor.u32 8388608, %v997_v16 }
  0xba   : > { %v926_v60 = vsel %vm918_vm1, %v905_v51, %v908_v52  ;;  %v927_v61 = vsel %vm921_vm3, %v914_v56, 920167782  ;;  %v930_v63 = vsel %vm918_vm1, %v908_v52, %v911_v53  ;;  %v923_v8 = vsel %vm921_vm3, %v911_v53, 2102212464 }
  0xbb   : > { %v931_v0 = vsel %vm921_vm3, %v917_v57, 1326507024  ;;  %v928_v3 = vsel %vm920_vm2, %v911_v53, %v927_v61  ;;  %v922_v15 = vsel %vm918_vm1, %v902_v7, %v905_v51  ;;  %v924_v19 = vsel %vm920_vm2, %v908_v52, %v923_v8 }
  0xbc   : > { %v932_v4 = vsel %vm920_vm2, %v914_v56, %v931_v0  ;;  %v929_v11 = vsel %vm919_vm4, %v926_v60, %v928_v3  ;;  %v1005_v27 = vsub.s32 32, %v1004_v23  ;;  %v925_v37 = vsel %vm919_vm4, %v922_v15, %v924_v19 }
  0xbd   : > { %v933_v13 = vsel %vm919_vm4, %v930_v63, %v932_v4  ;;  %v3928_v21 = vmul.u32.u64.low %v3919_v14, %v929_v11  ;;  %v3929_v22 = vmul.u32.u64.high %v3919_v14, %v929_v11, %v3928_v21  ;;  %v3940_v40 = vshrl.u32 %v1002_v17, 5 }
  0xbe   : > { %v3933_v30 = vmul.u32.u64.low %v3919_v14, %v933_v13  ;;  %v3934_v31 = vmul.u32.u64.high %v3919_v14, %v933_v13, %v3933_v30  ;;  %v1097_v41 = vand.u32 2139095040, %v3924_v18  ;;  %v1007_v25 = vshll.u32 %v6286_v26, %v1004_v23 }
  0xbf   : > { %v1008_v43 = vshrl.u32 %v6304_v36, %v1005_v27  ;;  %v1010_v44 = vshll.u32 %v6304_v36, %v1004_v23  ;;  %v1011_v47 = vshrl.u32 %v6310_v39, %v1005_v27  ;;  %v1013_v29 = vshll.u32 %v6310_v39, %v1004_v23 }
  0xc0   : > { %v1014_v48 = vshrl.u32 %v6284_v42, %v1005_v27  ;;  %v1016_v34 = vshll.u32 %v6284_v42, %v1004_v23  ;;  %v1017_v50 = vshrl.u32 %v6282_v45, %v1005_v27  ;;  %v1019_v53 = vshll.u32 %v6282_v45, %v1004_v23 }
  0xc1   : > { %v1009_v51 = vor.u32 %v1008_v43, %v1007_v25  ;;  %v1012_v52 = vor.u32 %v1011_v47, %v1010_v44  ;;  %v1020_v54 = vshrl.u32 %v6280_v49, %v1005_v27  ;;  %v3953_v59 = vshll.u32 %v998_v38, 8 }
  0xc2   : > { %v1015_v56 = vor.u32 %v1014_v48, %v1013_v29  ;;  %v1018_v57 = vor.u32 %v1017_v50, %v1016_v34  ;;  %v1098_v60 = vshrl.u32 %v1097_v41, 23  ;;  %v944_v61 = vadd.s32 1, %v3929_v22 }
  0xc3   : > { %v1021_v63 = vor.u32 %v1020_v54, %v1019_v53  ;;  %vm1022_vm8 = vcmp.lt.s32.totalorder %v3940_v40, 1  ;;  %vm1025_vm9 = vcmp.lt.s32.totalorder %v3940_v40, 4  ;;  %vm943_vm10 = vc.u32 %v3934_v31, %v3928_v21 }
  0xc4   : > { %vm1024_vm11 = vcmp.lt.s32.totalorder %v3940_v40, 3  ;;  %v1030_v0 = vsel %vm1022_vm8, %v1009_v51, %v1012_v52  ;;  %v1031_v1 = vsel %vm1025_vm9, %v1018_v57, 920167782  ;;  %vm1023_vm12 = vcmp.lt.s32.totalorder %v3940_v40, 2 }
  0xc5   : > { %v1032_v3 = vsel %vm1024_vm11, %v1015_v56, %v1031_v1  ;;  %v1034_v4 = vsel %vm1022_vm8, %v1012_v52, %v1015_v56  ;;  %v1035_v7 = vsel %vm1025_vm9, %v1021_v63, 1326507024  ;;  %v794_v8 = vsel %vm793_vm7, %v792_v2, 0 }
  0xc6   : > { %v1033_v11 = vsel %vm1023_vm12, %v1030_v0, %v1032_v3  ;;  %v1036_v12 = vsel %vm1024_vm11, %v1018_v57, %v1035_v7  ;;  %v3978_v13 = vadd.f32 %v460_v5, %v3897_v28  ;;  %v945_v15 = vsel %vm943_vm10, %v944_v61, %v3929_v22 }
  0xc7   : > { %v1037_v16 = vsel %vm1023_vm12, %v1034_v4, %v1036_v12  ;;  %v3984_v17 = vmul.u32.u64.low %v3953_v59, %v1033_v11  ;;  %v3985_v19 = vmul.u32.u64.high %v3953_v59, %v1033_v11, %v3984_v17  ;;  %v941_v2 = vmul.u32 %v3919_v14, %v925_v37 }
  0xc8   : > { %6361 = vst [vmem:[#allocation7_spill] sm:$0xff] %v3978_v13  ;;  %v3990_v23 = vmul.u32.u64.low %v3953_v59, %v1037_v16  ;;  %v3991_v30 = vmul.u32.u64.high %v3953_v59, %v1037_v16, %v3990_v23  ;;  %v3412_v38 = vadd.s32 4294967169, %v1098_v60  ;;  %v3993_v41 = vand.u32 31, %v690_v33 }
  0xc9   : > { %v480_v28 = vadd.s32 1, %v3388_v24  ;;  %v1027_v5 = vsel %vm1025_vm9, %v1015_v56, 2102212464  ;;  %v3998_v25 = vadd.s32 %v945_v15, %v941_v2  ;;  %v1006_v43 = vshrl.u32 %v6286_v26, %v1005_v27 }
  0xca   : > { %6362 = vst [vmem:[#allocation8_spill] sm:$0xff] %v3993_v41  ;;  %v1104_v44 = vadd.s32 1, %v3412_v38  ;;  %v4003_v14 = vand.u32 8388607, %v6278_v32  ;;  %v4005_v37 = vshrl.u32 %v690_v33, 5  ;;  %v4007_v47 = vshrl.u32 %v794_v8, 5 }
  0xcb   : > { %v4009_v29 = vand.u32 31, %v794_v8  ;;  %vm585_vm13 = vcmp.gt.s32.totalorder %v3937_v35, 0  ;;  %v1026_v24 = vsel %vm1022_vm8, %v1006_v43, %v1009_v51  ;;  %v1028_v48 = vsel %vm1024_vm11, %v1012_v52, %v1027_v5 }
  0xcc   : > { %vm1105_vm14 = vcmp.gt.s32.totalorder %v1104_v44, 0  ;;  %v1201_v27 = vand.u32 2139095040, %v3978_v13  ;;  %v4018_v34 = vsub.s32 32, %v3993_v41  ;;  %v4022_v33 = vshll.u32 %v6284_v42, %v3993_v41 }
  0xcd   : > { %vm481_vm15 = vcmp.gt.s32.totalorder %v480_v28, 0  ;;  %v1106_v50 = vsel %vm1105_vm14, %v1104_v44, 0  ;;  %v4025_v53 = vsel %vm585_vm13, %v3937_v35, 0  ;;  %v947_v51 = vadd.s32 536870912, %v3998_v25 }
  0xce   : > { %6363 = vst [vmem:[#allocation9_spill] sm:$0xff] %v4018_v34  ;;  %v1048_v54 = vadd.s32 1, %v3985_v19  ;;  %v1108_v52 = vand.u32 31, %v1106_v50  ;;  %v4031_v56 = vshll.u32 %v6282_v45, %v3993_v41  ;;  %v4034_v57 = vsub.s32 32, %v4009_v29 }
  0xcf   : > { %v1029_v60 = vsel %vm1023_vm12, %v1026_v24, %v1028_v48  ;;  %vm1047_vm0 = vc.u32 %v3991_v30, %v3984_v17  ;;  %v4042_v35 = vshll.u32 %v6284_v42, %v4009_v29  ;;  %v4046_v61 = vshll.u32 %v6282_v45, %v4009_v29 }
  0xd0   : > { %v4048_v63 = vsub.s32 32, %v1108_v52  ;;  %v1202_v0 = vshrl.u32 %v1201_v27, 23  ;;  %v4052_v1 = vshrl.u32 %v6282_v45, %v4018_v34  ;;  %v4056_v40 = vshrl.u32 %v6280_v49, %v4018_v34 }
  0xd1   : > { %v4059_v3 = vand.u32 31, %v4025_v53  ;;  %v6276_v4 = vand.u32 2147483647, %v3924_v18  ;;  %v4062_v7 = vshrl.u32 %v947_v51, 30  ;;  %v1045_v8 = vmul.u32 %v3953_v59, %v1029_v60 }
  0xd2   : > { %v1049_v11 = vsel %vm1047_vm0, %v1048_v54, %v3985_v19  ;;  %v1112_v12 = vshrl.u32 %v6304_v36, %v4048_v63  ;;  %v1115_v15 = vshrl.u32 %v6310_v39, %v4048_v63  ;;  %v1118_v16 = vshrl.u32 %v6284_v42, %v4048_v63 }
  0xd3   : > { %6364 = vst [vmem:[#allocation10_spill] sm:$0xff] %v4062_v7  ;;  %v1120_v2 = vshll.u32 %v6284_v42, %v1108_v52  ;;  %v1121_v23 = vshrl.u32 %v6282_v45, %v4048_v63  ;;  %v4075_v38 = vshrl.u32 %v1106_v50, 5  ;;  %v1111_v59 = vshll.u32 %v6286_v26, %v1108_v52 }
  0xd4   : > { %v1114_v19 = vshll.u32 %v6304_v36, %v1108_v52  ;;  %v3416_v5 = vadd.s32 4294967169, %v1202_v0  ;;  %v4079_v43 = vadd.s32 %v1049_v11, %v1045_v8  ;;  %v1101_v44 = vand.u32 8388607, %v6276_v4 }
  0xd5   : > { %v1117_v24 = vshll.u32 %v6310_v39, %v1108_v52  ;;  %v1122_v48 = vor.u32 %v1121_v23, %v1120_v2  ;;  %v1113_v27 = vor.u32 %v1112_v12, %v1111_v59  ;;  %v1123_v54 = vshll.u32 %v6282_v45, %v1108_v52 }
  0xd6   : > { %v1116_v51 = vor.u32 %v1115_v15, %v1114_v19  ;;  %v1124_v50 = vshrl.u32 %v6280_v49, %v4048_v63  ;;  %v482_v60 = vsel %vm481_vm15, %v480_v28, 0  ;;  %v4089_v20 = vsub.s32 32, %v4059_v3 }
  0xd7   : > { %v949_v0 = vshll.u32 %v4062_v7, 30  ;;  %v1119_v8 = vor.u32 %v1118_v16, %v1117_v24  ;;  %v809_v11 = vshrl.u32 %v6282_v45, %v4034_v57  ;;  %vm1129_vm1 = vcmp.lt.s32.totalorder %v4075_v38, 4 }
  0xd8   : > { %v1125_v4 = vor.u32 %v1124_v50, %v1123_v54  ;;  %v1208_v12 = vadd.s32 1, %v3416_v5  ;;  %v4097_v52 = vshrl.u32 %v6280_v49, %v4034_v57  ;;  %vm1126_vm2 = vcmp.lt.s32.totalorder %v4075_v38, 1 }
  0xd9   : > { %v1135_v28 = vsel %vm1129_vm1, %v1122_v48, 920167782  ;;  %v6279_v15 = vand.u32 2147483647, %v3978_v13  ;;  %v1051_v16 = vadd.s32 536870912, %v4079_v43  ;;  %v1102_v2 = vor.u32 8388608, %v1101_v44 }
  0xda   : > { %vm1128_vm3 = vcmp.lt.s32.totalorder %v4075_v38, 3  ;;  %v1134_v23 = vsel %vm1126_vm2, %v1113_v27, %v1116_v51  ;;  %v601_v59 = vshrl.u32 %v6282_v45, %v4089_v20  ;;  %v4110_v19 = vsub.s32 %v3998_v25, %v949_v0 }
  0xdb   : > { %v1136_v5 = vsel %vm1128_vm3, %v1119_v8, %v1135_v28  ;;  %v1139_v24 = vsel %vm1129_vm1, %v1125_v4, 1326507024  ;;  %vm1127_vm4 = vcmp.lt.s32.totalorder %v4075_v38, 2  ;;  %v1138_v44 = vsel %vm1126_vm2, %v1116_v51, %v1119_v8 }
  0xdc   : > { %v1140_v54 = vsel %vm1128_vm3, %v1122_v48, %v1139_v24  ;;  %vm1209_vm5 = vcmp.gt.s32.totalorder %v1208_v12, 0  ;;  %v4121_v50 = vshrl.u32 %v482_v60, 5  ;;  %v600_v25 = vshll.u32 %v6284_v42, %v4059_v3 }
  0xdd   : > { %v1137_v0 = vsel %vm1127_vm4, %v1134_v23, %v1136_v5  ;;  %v1205_v4 = vand.u32 8388607, %v6279_v15  ;;  %v4129_v28 = vand.u32 31, %v482_v60  ;;  %v4132_v58 = vshrl.u32 %v4025_v53, 5 }
  0xde   : > { %v4134_v32 = vshrl.u32 %v1051_v16, 30  ;;  %v4136_v48 = vshll.u32 %v1102_v2, 8  ;;  %v4138_v24 = vor.u32 %v601_v59, %v600_v25  ;;  %v4142_v22 = vshrl.u32 %v6280_v49, %v4089_v20 }
  0xdf   : > { %v1141_v23 = vsel %vm1127_vm4, %v1138_v44, %v1140_v54  ;;  %v1210_v5 = vsel %vm1209_vm5, %v1208_v12, 0  ;;  %v952_v60 = vsub.s32 0, %v4110_v19  ;;  %v4154_v2 = vor.u32 %v4052_v1, %v4022_v33 }
  0xe0   : > { %6365 = vst [vmem:[#allocation11_spill] sm:$0xff] %v4134_v32  ;;  %v4148_v15 = vmul.u32.u64.low %v4136_v48, %v1137_v0  ;;  %v4149_v53 = vmul.u32.u64.high %v4136_v48, %v1137_v0, %v4148_v15  ;;  %v1212_v16 = vand.u32 31, %v1210_v5  ;;  %v4160_v25 = vshll.u32 %v6282_v45, %v4059_v3 }
  0xe1   : > { %v1206_v12 = vor.u32 8388608, %v1205_v4  ;;  %v1053_v44 = vshll.u32 %v4134_v32, 30  ;;  %v1131_v54 = vsel %vm1129_vm1, %v1119_v8, 2102212464  ;;  %v4170_v33 = vor.u32 %v809_v11, %v4042_v35 }
  0xe2   : > { %6366 = vst [vmem:[#allocation12_spill] sm:$0xff] %v4148_v15  ;;  %v4166_v0 = vmul.u32.u64.low %v4136_v48, %v1141_v23  ;;  %v4167_v49 = vmul.u32.u64.high %v4136_v48, %v1141_v23, %v4166_v0  ;;  %vm609_vm6 = vcmp.lt.s32.totalorder %v4132_v58, 4  ;;  %v1110_v1 = vshrl.u32 %v6286_v26, %v4048_v63 }
  0xe3   : > { %v1213_v59 = vsub.s32 32, %v1212_v16  ;;  %v4180_v8 = vsel %vm609_vm6, %v4138_v24, 920167782  ;;  %v4183_v23 = vmin.u32 %v952_v60, %v4110_v19  ;;  %v591_v35 = vshll.u32 %v6286_v26, %v4059_v3 }
  0xe4   : > { %v1130_v11 = vsel %vm1126_vm2, %v1110_v1, %v1113_v27  ;;  %v1132_v63 = vsel %vm1128_vm3, %v1116_v51, %v1131_v54  ;;  %v4191_v0 = vshll.u32 %v1206_v12, 8  ;;  %v592_v4 = vshrl.u32 %v6304_v36, %v4089_v20 }
  0xe5   : > { %v4196_v45 = vsub.s32 %v4079_v43, %v1053_v44  ;;  %v1216_v60 = vshrl.u32 %v6304_v36, %v1213_v59  ;;  %v594_v42 = vshll.u32 %v6304_v36, %v4059_v3  ;;  %v595_v26 = vshrl.u32 %v6310_v39, %v4089_v20 }
  0xe6   : > { %v6367_v27 = vmov 683565275   ;;  %v1218_v51 = vshll.u32 %v6304_v36, %v1212_v16  ;;  %v1219_v12 = vshrl.u32 %v6310_v39, %v1213_v59  ;;  %v6368_v54 = vmov 2102212464  }
  0xe7   : > { %v1215_v1 = vshll.u32 %v6367_v27, %v1212_v16  ;;  %v1222_v7 = vshrl.u32 %v6368_v54, %v1213_v59  ;;  %v1133_v43 = vsel %vm1127_vm4, %v1130_v11, %v1132_v63  ;;  %v1152_v44 = vadd.s32 1, %v4149_v53 }
  0xe8   : > { %v1211_v32 = vshrl.u32 %v1210_v5, 5  ;;  %v1221_v13 = vshll.u32 %v6310_v39, %v1212_v16  ;;  %v1220_v46 = vor.u32 %v1219_v12, %v1218_v51  ;;  %v1224_v10 = vshll.u32 %v6368_v54, %v1212_v16 }
  0xe9   : > { %v1217_v18 = vor.u32 %v1216_v60, %v1215_v1  ;;  %v6369_v34 = vmov 920167782   ;;  %vm1151_vm7 = vc.u32 %v4167_v49, %v4148_v15  ;;  %v1228_v38 = vshrl.u32 %v6370_v9, %v1213_v59 }
  0xea   : > { %v1225_v41 = vshrl.u32 %v6369_v34, %v1213_v59  ;;  %v1223_v36 = vor.u32 %v1222_v7, %v1221_v13  ;;  %v1227_v55 = vshll.u32 %v6369_v34, %v1212_v16  ;;  %v1056_v11 = vsub.s32 0, %v4196_v45 }
  0xeb   : > { %v1149_v5 = vmul.u32 %v4136_v48, %v1133_v43  ;;  %v593_v39 = vor.u32 %v592_v4, %v591_v35  ;;  %vm1230_vm8 = vcmp.lt.s32.totalorder %v1211_v32, 1  ;;  %vm1233_vm9 = vcmp.lt.s32.totalorder %v1211_v32, 4 }
  0xec   : > { %v1226_v63 = vor.u32 %v1225_v41, %v1224_v10  ;;  %v1229_v60 = vor.u32 %v1228_v38, %v1227_v55  ;;  %v598_v1 = vshrl.u32 %v6368_v54, %v4089_v20  ;;  %v1153_v51 = vsel %vm1151_vm7, %v1152_v44, %v4149_v53 }
  0xed   : > { %vm1232_vm10 = vcmp.lt.s32.totalorder %v1211_v32, 3  ;;  %v1238_v13 = vsel %vm1230_vm8, %v1217_v18, %v1220_v46  ;;  %vm1231_vm11 = vcmp.lt.s32.totalorder %v1211_v32, 2  ;;  %v1235_v16 = vsel %vm1233_vm9, %v1223_v36, 2102212464 }
  0xee   : > { %v1239_v7 = vsel %vm1233_vm9, %v1226_v63, 920167782  ;;  %v1242_v15 = vsel %vm1230_vm8, %v1220_v46, %v1223_v36  ;;  %v1214_v10 = vshrl.u32 %v6367_v27, %v1213_v59  ;;  %v1243_v41 = vsel %vm1233_vm9, %v1229_v60, 1326507024 }
  0xef   : > { %v1240_v12 = vsel %vm1232_vm10, %v1223_v36, %v1239_v7  ;;  %v6371_v48 = vmov 2131351028   ;;  %v4228_v35 = vadd.s32 %v1153_v51, %v1149_v5  ;;  %v1244_v53 = vsel %vm1232_vm10, %v1226_v63, %v1243_v41 }
  0xf0   : > { %v1241_v55 = vsel %vm1231_vm11, %v1238_v13, %v1240_v12  ;;  %v597_v4 = vshll.u32 %v6371_v48, %v4059_v3  ;;  %v1234_v38 = vsel %vm1230_vm8, %v1214_v10, %v1217_v18  ;;  %v1236_v7 = vsel %vm1232_vm10, %v1220_v46, %v1235_v16 }
  0xf1   : > { %v4231_v43 = vmul.u32.u64.low %v4191_v0, %v1241_v55  ;;  %v4232_v44 = vmul.u32.u64.high %v4191_v0, %v1241_v55, %v4231_v43  ;;  %v1245_v36 = vsel %vm1231_vm11, %v1242_v15, %v1244_v53  ;;  %v596_v59 = vor.u32 %v595_v26, %v594_v42 }
  0xf2   : > { %vm713_vm12 = vcmp.lt.s32.totalorder %v4005_v37, 4  ;;  %v3409_v60 = vmin.u32 %v1056_v11, %v4196_v45  ;;  %v4240_v3 = vmul.u32.u64.low %v4191_v0, %v1245_v36  ;;  %v4241_v5 = vmul.u32.u64.high %v4191_v0, %v1245_v36, %v4240_v3 }
  0xf3   : > { %v599_v63 = vor.u32 %v598_v1, %v597_v4  ;;  %v813_v51 = vor.u32 %v4097_v52, %v4046_v61  ;;  %v6372_v13 = vor.u32 %v4142_v22, %v4160_v25  ;;  %v582_v26 = vor.u32 8388608, %v4003_v14 }
  0xf4   : > { %vm606_vm13 = vcmp.lt.s32.totalorder %v4132_v58, 1  ;;  %v1155_v42 = vadd.s32 536870912, %v4228_v35  ;;  %v1237_v18 = vsel %vm1231_vm11, %v1234_v38, %v1236_v7  ;;  %v1256_v15 = vadd.s32 1, %v4232_v44 }
  0xf5   : > { %v619_v46 = vsel %vm609_vm6, %v6372_v13, 1326507024  ;;  %vm608_vm14 = vcmp.lt.s32.totalorder %v4132_v58, 3  ;;  %vm817_vm15 = vcmp.lt.s32.totalorder %v4007_v47, 4  ;;  %v590_v22 = vshrl.u32 %v6367_v27, %v4089_v20 }
  0xf6   : > { %v614_v61 = vsel %vm606_vm13, %v593_v39, %v596_v59  ;;  %v616_v14 = vsel %vm608_vm14, %v599_v63, %v4180_v8  ;;  %v618_v32 = vsel %vm606_vm13, %v596_v59, %v599_v63  ;;  %v954_v52 = vclz %v4183_v23 }
  0xf7   : > { %v1058_v25 = vclz %v3409_v60  ;;  %vm1255_vm0 = vc.u32 %v4241_v5, %v4231_v43  ;;  %v611_v11 = vsel %vm609_vm6, %v599_v63, 2102212464  ;;  %v1253_v20 = vmul.u32 %v4191_v0, %v1237_v18 }
  0xf8   : > { %v1257_v1 = vsel %vm1255_vm0, %v1256_v15, %v4232_v44  ;;  %vm607_vm1 = vcmp.lt.s32.totalorder %v4132_v58, 2  ;;  %v620_v8 = vsel %vm608_vm14, %v4138_v24, %v619_v46  ;;  %v4277_v16 = vshrl.u32 %v1155_v42, 30 }
  0xf9   : > { %v617_v23 = vsel %vm607_vm1, %v614_v61, %v616_v14  ;;  %v621_v12 = vsel %vm607_vm1, %v618_v32, %v620_v8  ;;  %v622_v10 = vshll.u32 %v582_v26, 8  ;;  %v4284_v55 = vsub.s32 32, %v4129_v28 }
  0xfa   : > { %v4286_v0 = vadd.s32 %v1257_v1, %v1253_v20  ;;  %v610_v41 = vsel %vm606_vm13, %v590_v22, %v593_v39  ;;  %v612_v24 = vsel %vm608_vm14, %v596_v59, %v611_v11  ;;  %v4294_v4 = vshll.u32 %v6368_v54, %v4129_v28 }
  0xfb   : > { %v3406_v53 = vadd.s32 4294967294, %v954_v52  ;;  %v4296_v44 = vmul.u32.u64.low %v622_v10, %v621_v12  ;;  %v4297_v38 = vmul.u32.u64.high %v622_v10, %v621_v12, %v4296_v44  ;;  %v4302_v7 = vsel %vm713_vm12, %v4154_v2, 920167782 }
  0xfc   : > { %v3410_v36 = vadd.s32 4294967294, %v1058_v25  ;;  %v4304_v60 = vmul.u32.u64.low %v622_v10, %v617_v23  ;;  %v4305_v3 = vmul.u32.u64.high %v622_v10, %v617_v23, %v4304_v60  ;;  %v1157_v39 = vshll.u32 %v4277_v16, 30 }
  0xfd   : > { %v613_v59 = vsel %vm607_vm1, %v610_v41, %v612_v24  ;;  %v6373_v63 = vand.u32 2147483647, %v3883_v62  ;;  %v6374_v46 = vmov 2475754826   ;;  %v1259_v42 = vadd.s32 536870912, %v4286_v0 }
  0xfe   : > { %v800_v26 = vshrl.u32 %v6374_v46, %v4034_v57  ;;  %v799_v18 = vshll.u32 %v6367_v27, %v4009_v29  ;;  %v802_v15 = vshll.u32 %v6374_v46, %v4009_v29  ;;  %v803_v22 = vshrl.u32 %v6371_v48, %v4034_v57 }
  0xff   : > { %v789_v13 = vand.u32 8388607, %v6373_v63  ;;  %v827_v58 = vsel %vm817_vm15, %v813_v51, 1326507024  ;;  %v4326_v61 = vshll.u32 %v6369_v34, %v4129_v28  ;;  %vm3407_vm2 = vcmp.lt.s32.totalorder %v3406_v53, 0 }
 0x100   : > { %vm631_vm3 = vc.u32 %v4297_v38, %v4304_v60  ;;  %vm3411_vm4 = vcmp.lt.s32.totalorder %v3410_v36, 0  ;;  %v632_v14 = vadd.s32 1, %v4305_v3  ;;  %v801_v32 = vor.u32 %v800_v26, %v799_v18 }
 0x101   : > { %v804_v52 = vor.u32 %v803_v22, %v802_v15  ;;  %v4332_v25 = vsub.s32 %v4228_v35, %v1157_v39  ;;  %v629_v11 = vmul.u32 %v622_v10, %v613_v59  ;;  %v805_v51 = vshll.u32 %v6371_v48, %v4009_v29 }
 0x102   : > { %v806_v20 = vshrl.u32 %v6368_v54, %v4034_v57  ;;  %v823_v1 = vsel %vm817_vm15, %v4170_v33, 920167782  ;;  %v4341_v8 = vshrl.u32 %v1259_v42, 30  ;;  %v633_v23 = vsel %vm631_vm3, %v632_v14, %v4305_v3 }
 0x103   : > { %v790_v12 = vor.u32 8388608, %v789_v13  ;;  %v634_v41 = vadd.s32 %v633_v23, %v629_v11  ;;  %vm814_vm5 = vcmp.lt.s32.totalorder %v4007_v47, 1  ;;  %vm816_vm6 = vcmp.lt.s32.totalorder %v4007_v47, 3 }
 0x104   : > { %v807_v24 = vor.u32 %v806_v20, %v805_v51  ;;  %v957_v29 = vsel %vm3407_vm2, 0, %v3406_v53  ;;  %v4348_v35 = vsel %vm3411_vm4, 0, %v3410_v36  ;;  %v822_v10 = vsel %vm814_vm5, %v801_v32, %v804_v52 }
 0x105   : > { %v828_v44 = vsel %vm816_vm6, %v4170_v33, %v827_v58  ;;  %v1160_v3 = vsub.s32 0, %v4332_v25  ;;  %v635_v39 = vadd.s32 536870912, %v634_v41  ;;  %v798_v59 = vshrl.u32 %v6367_v27, %v4034_v57 }
 0x106   : > { %v824_v63 = vsel %vm816_vm6, %v807_v24, %v823_v1  ;;  %vm815_vm7 = vcmp.lt.s32.totalorder %v4007_v47, 2  ;;  %v819_v53 = vsel %vm817_vm15, %v807_v24, 2102212464  ;;  %v826_v36 = vsel %vm814_vm5, %v804_v52, %v807_v24 }
 0x107   : > { %v830_v13 = vshll.u32 %v790_v12, 8  ;;  %v1261_v33 = vshll.u32 %v4341_v8, 30  ;;  %v4366_v26 = vshrl.u32 %v635_v39, 30  ;;  %v825_v42 = vsel %vm815_vm7, %v822_v10, %v824_v63 }
 0x108   : > { %v829_v57 = vsel %vm815_vm7, %v826_v36, %v828_v44  ;;  %v962_v18 = vsub.s32 4294967266, %v957_v29  ;;  %v1066_v15 = vsub.s32 4294967266, %v4348_v35  ;;  %v3413_v14 = vmin.u32 %v1160_v3, %v4332_v25 }
 0x109   : > { %v4373_v22 = vmul.u32.u64.low %v830_v13, %v829_v57  ;;  %v4374_v58 = vmul.u32.u64.high %v830_v13, %v829_v57, %v4373_v22  ;;  %v637_v11 = vshll.u32 %v4366_v26, 30  ;;  %v818_v51 = vsel %vm814_vm5, %v798_v59, %v801_v32 }
 0x10a   : > { %v820_v20 = vsel %vm816_vm6, %v804_v52, %v819_v53  ;;  %v497_v1 = vshrl.u32 %v6369_v34, %v4284_v55  ;;  %v500_v23 = vshrl.u32 %v6370_v9, %v4284_v55  ;;  %vm505_vm8 = vcmp.lt.s32.totalorder %v4121_v50, 4 }
 0x10b   : > { %v4386_v12 = vmul.u32.u64.low %v830_v13, %v825_v42  ;;  %v4387_v24 = vmul.u32.u64.high %v830_v13, %v825_v42, %v4386_v12  ;;  %v958_v10 = vsub.s32 32, %v957_v29  ;;  %v4392_v44 = vsub.s32 %v4286_v0, %v1261_v33 }
 0x10c   : > { %v4394_v32 = vsub.s32 %v634_v41, %v637_v11  ;;  %v963_v3 = vadd.s32 127, %v962_v18  ;;  %v1062_v52 = vsub.s32 32, %v4348_v35  ;;  %v1067_v39 = vadd.s32 127, %v1066_v15 }
 0x10d   : > { %v821_v59 = vsel %vm815_vm7, %v818_v51, %v820_v20  ;;  %v942_v63 = vadd.s32 %v3928_v21, %v3934_v31  ;;  %v1162_v53 = vclz %v3413_v14  ;;  %vm839_vm9 = vc.u32 %v4374_v58, %v4386_v12 }
 0x10e   : > { %v640_v36 = vsub.s32 0, %v4394_v32  ;;  %v4405_v0 = vor.u32 %v497_v1, %v4294_v4  ;;  %v501_v41 = vor.u32 %v500_v23, %v4326_v61  ;;  %v1046_v33 = vadd.s32 %v3984_v17, %v3991_v30 }
 0x10f   : > { %v840_v47 = vadd.s32 1, %v4387_v24  ;;  %v960_v42 = vshrl.u32 %v942_v63, %v958_v10  ;;  %v1264_v57 = vsub.s32 0, %v4392_v44  ;;  %v837_v31 = vmul.u32 %v830_v13, %v821_v59 }
 0x110   : > { %v3393_v21 = vmin.u32 %v640_v36, %v4394_v32  ;;  %v964_v18 = vshll.u32 %v963_v3, 23  ;;  %v1064_v15 = vshrl.u32 %v1046_v33, %v1062_v52  ;;  %v1068_v22 = vshll.u32 %v1067_v39, 23 }
 0x111   : > { %v841_v14 = vsel %vm839_vm9, %v840_v47, %v4387_v24  ;;  %v959_v4 = vshll.u32 %v4110_v19, %v957_v29  ;;  %v3414_v11 = vadd.s32 4294967294, %v1162_v53  ;;  %v6375_v17 = vor.u32 %v4056_v40, %v4031_v56 }
 0x112   : > { %v642_v61 = vclz %v3393_v21  ;;  %v842_v51 = vadd.s32 %v841_v14, %v837_v31  ;;  %v511_v13 = vsel %vm505_vm8, %v4405_v0, 920167782  ;;  %v515_v20 = vsel %vm505_vm8, %v501_v41, 1326507024 }
 0x113   : > { %v4420_v30 = vsel %vm713_vm12, %v6375_v17, 1326507024  ;;  %v1063_v19 = vshll.u32 %v4196_v45, %v4348_v35  ;;  %v4429_v29 = vor.u32 %v960_v42, %v959_v4  ;;  %v3417_v1 = vmin.u32 %v1264_v57, %v4392_v44 }
 0x114   : > { %v3394_v23 = vadd.s32 4294967294, %v642_v61  ;;  %v843_v56 = vadd.s32 536870912, %v842_v51  ;;  %v4432_v40 = vor.u32 4788187, %v964_v18  ;;  %v1069_v10 = vor.u32 4788187, %v1068_v22 }
 0x115   : > { %v1065_v24 = vor.u32 %v1064_v15, %v1063_v19  ;;  %v470_v3 = vand.u32 2147483647, %v3887_v6  ;;  %vm3415_vm10 = vcmp.lt.s32.totalorder %v3414_v11, 0  ;;  %v494_v39 = vshrl.u32 %v6368_v54, %v4284_v55 }
 0x116   : > { %vm3395_vm11 = vcmp.lt.s32.totalorder %v3394_v23, 0  ;;  %v4435_v52 = vshrl.u32 %v843_v56, 30  ;;  %v630_v45 = vadd.s32 %v4304_v60, %v4297_v38  ;;  %v488_v59 = vshrl.u32 %v6374_v46, %v4284_v55  ;;  %v6376_v56 = vld [vmem:[#allocation4_spill] sm:$0xff] }
 0x117   : > { %v645_v35 = vsel %vm3395_vm11, 0, %v3394_v23  ;;  %v491_v63 = vshrl.u32 %v6371_v48, %v4284_v55  ;;  %v1266_v53 = vclz %v3417_v1  ;;  %v493_v33 = vshll.u32 %v6371_v48, %v4129_v28 }
 0x118   : > { %v646_v36 = vsub.s32 32, %v645_v35  ;;  %v650_v41 = vsub.s32 4294967266, %v645_v35  ;;  %v845_v47 = vshll.u32 %v4435_v52, 30  ;;  %v477_v42 = vand.u32 8388607, %v470_v3 }
 0x119   : > { %v487_v38 = vshll.u32 %v6367_v27, %v4129_v28  ;;  %v490_v60 = vshll.u32 %v6374_v46, %v4129_v28  ;;  %v647_v57 = vshll.u32 %v4394_v32, %v645_v35  ;;  %v495_v18 = vor.u32 %v494_v39, %v493_v33 }
 0x11a   : > { %v648_v21 = vshrl.u32 %v630_v45, %v646_v36  ;;  %v651_v31 = vadd.s32 127, %v650_v41  ;;  %v1072_v15 = vcvt.s32.f32 %v1065_v24  ;;  %v4455_v22 = vsub.s32 %v842_v51, %v845_v47 }
 0x11b   : > { %v489_v14 = vor.u32 %v488_v59, %v487_v38  ;;  %v492_v4 = vor.u32 %v491_v63, %v490_v60  ;;  %v1070_v61 = vand.u32 2147483647, %v1069_v10  ;;  %v4458_v17 = vsel %vm3415_vm10, 0, %v3414_v11 }
 0x11c   : > { %v649_v19 = vor.u32 %v648_v21, %v647_v57  ;;  %v652_v1 = vshll.u32 %v651_v31, 23  ;;  %v4460_v23 = vadd.s32 4294967294, %v1266_v53  ;;  %vm576_vm13 = vcmp.lt.s32.totalorder %v6376_v56, 0 }
 0x11d   : > { %v660_v28 = vsub.s32 4, %v4366_v26  ;;  %v848_v32 = vsub.s32 0, %v4455_v22  ;;  %v486_v51 = vshrl.u32 %v6367_v27, %v4284_v55  ;;  %v6377_v24 = vand.u32 2147483647, %v6376_v56 }
 0x11e   : > { %v653_v11 = vor.u32 4788187, %v652_v1  ;;  %v478_v39 = vor.u32 8388608, %v477_v42  ;;  %vm502_vm15 = vcmp.lt.s32.totalorder %v4121_v50, 1  ;;  %v507_v45 = vsel %vm505_vm8, %v495_v18, 2102212464 }
 0x11f   : > { %vm4469_vm14 = vcmp.le.f32.partialorder %v6377_v24, 0.7853982  ;;  %v656_v35 = vcvt.s32.f32 %v649_v19  ;;  %v3401_v59 = vmin.u32 %v848_v32, %v4455_v22  ;;  %vm504_vm0 = vcmp.lt.s32.totalorder %v4121_v50, 3  ;;  %v6380_v19 = vld [vmem:[#allocation12_spill] sm:$0xff] }
 0x120   : > { %v510_v63 = vsel %vm502_vm15, %v489_v14, %v492_v4  ;;  %v654_v55 = vand.u32 2147483647, %v653_v11  ;;  %v512_v53 = vsel %vm504_vm0, %v495_v18, %v511_v13  ;;  %v514_v36 = vsel %vm502_vm15, %v492_v4, %v495_v18 }
 0x121   : > { %v516_v41 = vsel %vm504_vm0, %v4405_v0, %v515_v20  ;;  %v850_v33 = vclz %v3401_v59  ;;  %vm503_vm1 = vcmp.lt.s32.totalorder %v4121_v50, 2  ;;  %v506_v47 = vsel %vm502_vm15, %v486_v51, %v489_v14  ;;  %v6381_v50 = vld [vmem:[#allocation3_spill] sm:$0xff] }
 0x122   : > { %v508_v42 = vsel %vm504_vm0, %v492_v4, %v507_v45  ;;  %v657_v38 = vmul.f32 %v656_v35, %v654_v55  ;;  %v513_v60 = vsel %vm503_vm1, %v510_v63, %v512_v53  ;;  %v517_v57 = vsel %vm503_vm1, %v514_v36, %v516_v41  ;;  %v6382_v36 = vld [vmem:[#allocation8_spill] sm:$0xff] }
 0x123   : > { %v518_v21 = vshll.u32 %v478_v39, 8  ;;  %v4480_v31 = vmul.f32 %v1072_v15, %v1070_v61  ;;  %v4484_v1 = vadd.s32 %v6380_v19, %v4167_v49  ;;  %v1166_v13 = vsub.s32 32, %v4458_v17 }
 0x124   : > { %v3402_v18 = vadd.s32 4294967294, %v850_v33  ;;  %v658_v32 = vxor.u32 2147483648, %v657_v38  ;;  %v678_v14 = vand.u32 2147483647, %v6381_v50  ;;  %v509_v4 = vsel %vm503_vm1, %v506_v47, %v508_v42 }
 0x125   : > { %v4487_v0 = vmul.u32.u64.low %v518_v21, %v517_v57  ;;  %v4488_v20 = vmul.u32.u64.high %v518_v21, %v517_v57, %v4487_v0  ;;  %v4491_v51 = vmul.u32.u64.low %v518_v21, %v513_v60  ;;  %v4492_v24 = vmul.u32.u64.high %v518_v21, %v513_v60, %v4491_v51 }
 0x126   : > { %vm3403_vm2 = vcmp.lt.s32.totalorder %v3402_v18, 0  ;;  %vm3419_vm3 = vcmp.lt.s32.totalorder %v4460_v23, 0  ;;  %v659_v49 = vsel %vm576_vm13, %v658_v32, %v657_v38  ;;  %v4501_v15 = vsel %vm576_vm13, %v660_v28, %v4366_v26 }
 0x127   : > { %v853_v61 = vsel %vm3403_vm2, 0, %v3402_v18  ;;  %v662_v11 = vsel %vm4469_vm14, %v6376_v56, %v659_v49  ;;  %v838_v39 = vadd.s32 %v4386_v12, %v4374_v58  ;;  %v525_v63 = vmul.u32 %v518_v21, %v509_v4  ;;  %v6383_v58 = vld [vmem:[#allocation9_spill] sm:$0xff] }
 0x128   : > { %v854_v45 = vsub.s32 32, %v853_v61  ;;  %v858_v35 = vsub.s32 4294967266, %v853_v61  ;;  %v855_v59 = vshll.u32 %v4455_v22, %v853_v61  ;;  %vm527_vm4 = vc.u32 %v4488_v20, %v4491_v51 }
 0x129   : > { %v685_v26 = vand.u32 8388607, %v678_v14  ;;  %3640 = vcosq.f32 %v662_v11  ;;  %v528_v53 = vadd.s32 1, %v4492_v24  ;;  %v695_v41 = vshll.u32 %v6367_v27, %v6382_v36 }
 0x12a   : > { %v856_v28 = vshrl.u32 %v838_v39, %v854_v45  ;;  %v859_v55 = vadd.s32 127, %v858_v35  ;;  %v696_v12 = vshrl.u32 %v6374_v46, %v6383_v58  ;;  %v698_v22 = vshll.u32 %v6374_v46, %v6382_v36 }
 0x12b   : > { %v699_v33 = vshrl.u32 %v6371_v48, %v6383_v58  ;;  %v529_v38 = vsel %vm527_vm4, %v528_v53, %v4492_v24  ;;  %v701_v60 = vshll.u32 %v6371_v48, %v6382_v36  ;;  %vm784_vm5 = vcmp.lt.s32.totalorder %v3883_v62, 0 }
 0x12c   : > { %v857_v47 = vor.u32 %v856_v28, %v855_v59  ;;  %v860_v42 = vshll.u32 %v859_v55, 23  ;;  %v530_v57 = vadd.s32 %v529_v38, %v525_v63  ;;  %v697_v21 = vor.u32 %v696_v12, %v695_v41 }
 0x12d   : > { %v700_v19 = vor.u32 %v699_v33, %v698_v22  ;;  %v702_v18 = vshrl.u32 %v6368_v54, %v6383_v58  ;;  %v4531_v32 = vsel %vm3419_vm3, 0, %v4460_v23  ;;  %3642 = vsinq.f32 %v662_v11 }
 0x12e   : > { %v6384_v0 = vand.u32 2147483647, %v3883_v62  ;;  %v861_v24 = vor.u32 4788187, %v860_v42  ;;  %v686_v49 = vor.u32 8388608, %v685_v26  ;;  %v868_v61 = vsub.s32 4, %v4435_v52 }
 0x12f   : > { %v531_v39 = vadd.s32 536870912, %v530_v57  ;;  %v703_v45 = vor.u32 %v702_v18, %v701_v60  ;;  %vm712_vm7 = vcmp.lt.s32.totalorder %v4005_v37, 3  ;;  %v864_v59 = vcvt.s32.f32 %v857_v47 }
 0x130   : > { %vm4535_vm6 = vcmp.le.f32.partialorder %v6384_v0, 0.7853982  ;;  %v862_v35 = vand.u32 2147483647, %v861_v24  ;;  %vm710_vm8 = vcmp.lt.s32.totalorder %v4005_v37, 1  ;;  %v724_v23 = vsel %vm712_vm7, %v4154_v2, %v4420_v30 }
 0x131   : > { %v4546_v11 = vshrl.u32 %v531_v39, 30  ;;  %vm711_vm9 = vcmp.lt.s32.totalorder %v4005_v37, 2  ;;  %v718_v63 = vsel %vm710_vm8, %v697_v21, %v700_v19  ;;  %v722_v26 = vsel %vm710_vm8, %v700_v19, %v703_v45 }
 0x132   : > { %v865_v28 = vmul.f32 %v864_v59, %v862_v35  ;;  %v720_v55 = vsel %vm712_vm7, %v703_v45, %v4302_v7  ;;  %v725_v53 = vsel %vm711_vm9, %v722_v26, %v724_v23  ;;  %v726_v36 = vshll.u32 %v686_v49, 8 }
 0x133   : > { %v1254_v2 = vadd.s32 %v4231_v43, %v4241_v5  ;;  %v1274_v30 = vsub.s32 4294967266, %v4531_v32  ;;  %v663_v41 = vsel %vm4469_vm14, 0, %v4501_v15  ;;  %v533_v12 = vshll.u32 %v4546_v11, 30  ;;  %v3641_v22 = vpop.eup %3640 }
 0x134   : > { %v866_v33 = vxor.u32 2147483648, %v865_v28  ;;  %v715_v7 = vsel %vm713_vm12, %v703_v45, 2102212464  ;;  %v4567_v47 = vmul.u32.u64.low %v726_v36, %v725_v53  ;;  %v4568_v42 = vmul.u32.u64.high %v726_v36, %v725_v53, %v4567_v47 }
 0x135   : > { %v1170_v38 = vsub.s32 4294967266, %v4458_v17  ;;  %v4571_v60 = vsub.s32 %v530_v57, %v533_v12  ;;  %v694_v43 = vshrl.u32 %v6367_v27, %v6383_v58  ;;  %v721_v5 = vsel %vm711_vm9, %v718_v63, %v720_v55 }
 0x136   : > { %v1168_v10 = vshrl.u32 %v4484_v1, %v1166_v13  ;;  %v667_v15 = vadd.s32 3, %v663_v41  ;;  %v867_v18 = vsel %vm784_vm5, %v866_v33, %v865_v28  ;;  %v869_v0 = vsel %vm784_vm5, %v868_v61, %v4435_v52 }
 0x137   : > { %v870_v57 = vsel %vm4535_vm6, %v3883_v62, %v867_v18  ;;  %v536_v58 = vsub.s32 0, %v4571_v60  ;;  %v714_v24 = vsel %vm710_vm8, %v694_v43, %v697_v21  ;;  %v716_v1 = vsel %vm712_vm7, %v700_v19, %v715_v7  ;;  %v3643_v13 = vpop.eup %3642 }
 0x138   : > { %v1275_v49 = vadd.s32 127, %v1274_v30  ;;  %3644 = vcosq.f32 %v870_v57  ;;  %v4593_v39 = vmul.u32.u64.low %v726_v36, %v721_v5  ;;  %v4594_v45 = vmul.u32.u64.high %v726_v36, %v721_v5, %v4593_v39 }
 0x139   : > { %v1171_v52 = vadd.s32 127, %v1170_v38  ;;  %v871_v61 = vsel %vm4535_vm6, 0, %v869_v0  ;;  %3646 = vsinq.f32 %v870_v57  ;;  %v3389_v35 = vmin.u32 %v536_v58, %v4571_v60 }
 0x13a   : > { %v1167_v21 = vshll.u32 %v4332_v25, %v4458_v17  ;;  %v1270_v59 = vsub.s32 32, %v4531_v32  ;;  %v668_v19 = vand.u32 3, %v667_v15  ;;  %v717_v23 = vsel %vm711_vm9, %v714_v24, %v716_v1 }
 0x13b   : > { %v671_v63 = vxor.u32 2147483648, %v3643_v13  ;;  %v674_v26 = vxor.u32 2147483648, %v3641_v22  ;;  %v538_v28 = vclz %v3389_v35  ;;  %vm735_vm12 = vc.u32 %v4568_v42, %v4593_v39 }
 0x13c   : > { %v4607_v4 = vor.u32 %v1168_v10, %v1167_v21  ;;  %v1276_v55 = vshll.u32 %v1275_v49, 23  ;;  %v875_v53 = vadd.s32 3, %v871_v61  ;;  %v736_v30 = vadd.s32 1, %v4594_v45 }
 0x13d   : > { %v1172_v41 = vshll.u32 %v1171_v52, 23  ;;  %v1271_v25 = vshll.u32 %v4392_v44, %v4531_v32  ;;  %vm666_vm10 = vweird.f32 %v6376_v56  ;;  %v3390_v37 = vadd.s32 4294967294, %v538_v28 }
 0x13e   : > { %v733_v17 = vmul.u32 %v726_v36, %v717_v23  ;;  %v1272_v12 = vshrl.u32 %v1254_v2, %v1270_v59  ;;  %vm670_vm11 = vcmp.eq.s32.totalorder %v668_v19, 0  ;;  %vm673_vm13 = vcmp.eq.s32.totalorder %v668_v19, 2 }
 0x13f   : > { %v737_v33 = vsel %vm735_vm12, %v736_v30, %v4594_v45  ;;  %v672_v7 = vsel %vm670_vm11, %v3641_v22, %v671_v63  ;;  %v675_v47 = vsel %vm673_vm13, %v674_v26, %v3643_v13  ;;  %vm874_vm14 = vweird.f32 %v3883_v62 }
 0x140   : > { %vm3391_vm15 = vcmp.lt.s32.totalorder %v3390_v37, 0  ;;  %v738_v38 = vadd.s32 %v737_v33, %v733_v17  ;;  %v1277_v43 = vor.u32 4788187, %v1276_v55  ;;  %vm669_vm0 = vcmp.lt.s32.totalorder %v668_v19, 2  ;;  %v6387_v33 = vld [vmem:[#allocation5_spill] sm:$0xff] }
 0x141   : > { %v876_v5 = vand.u32 3, %v875_v53  ;;  %v541_v10 = vsel %vm3391_vm15, 0, %v3390_v37  ;;  %v526_v44 = vadd.s32 %v4491_v51, %v4488_v20  ;;  %v1173_v18 = vor.u32 4788187, %v1172_v41 }
 0x142   : > { %v542_v32 = vsub.s32 32, %v541_v10  ;;  %v546_v36 = vsub.s32 4294967266, %v541_v10  ;;  %v739_v2 = vadd.s32 536870912, %v738_v38  ;;  %v3645_v15 = vpop.eup %3644  ;;  %v1273_v0 = vor.u32 %v1272_v12, %v1271_v25 }
 0x143   : > { %v676_v57 = vsel %vm669_vm0, %v672_v7, %v675_v47  ;;  %v543_v22 = vshll.u32 %v4571_v60, %v541_v10  ;;  %v3647_v58 = vpop.eup %3646  ;;  %v882_v24 = vxor.u32 2147483648, %v3645_v15  ;;  %v1278_v45 = vand.u32 2147483647, %v1277_v43 }
 0x144   : > { %v544_v1 = vshrl.u32 %v526_v44, %v542_v32  ;;  %v547_v13 = vadd.s32 127, %v546_v36  ;;  %v4618_v49 = vshrl.u32 %v739_v2, 30  ;;  %vm878_vm1 = vcmp.eq.s32.totalorder %v876_v5, 0  ;;  %v6392_v2 = vld [vmem:[#allocation6_spill] sm:$0xff] }
 0x145   : > { %v879_v52 = vxor.u32 2147483648, %v3647_v58  ;;  %vm881_vm2 = vcmp.eq.s32.totalorder %v876_v5, 2  ;;  %v1280_v21 = vcvt.s32.f32 %v1273_v0  ;;  %v677_v59 = vsel %vm666_vm10, nan, %v676_v57  ;;  %v6396_v0 = vld [vmem:[#allocation7_spill] sm:$0xff] }
 0x146   : > { %v883_v20 = vsel %vm881_vm2, %v882_v24, %v3647_v58  ;;  %v545_v51 = vor.u32 %v544_v1, %v543_v22  ;;  %v548_v61 = vshll.u32 %v547_v13, 23  ;;  %v741_v35 = vshll.u32 %v4618_v49, 30 }
 0x147   : > { %vm877_vm3 = vcmp.lt.s32.totalorder %v876_v5, 2  ;;  %v880_v60 = vsel %vm878_vm1, %v3645_v15, %v879_v52  ;;  %v966_v19 = vand.u32 2147483647, %v4432_v40  ;;  %v1074_v28 = vxor.u32 2147483648, %v4480_v31 }
 0x148   : > { %v884_v23 = vsel %vm877_vm3, %v880_v60, %v883_v20  ;;  %v549_v63 = vor.u32 4788187, %v548_v61  ;;  %v742_v26 = vsub.s32 %v738_v38, %v741_v35  ;;  %v1174_v55 = vand.u32 2147483647, %v1173_v18 }
 0x149   : > { %v1281_v53 = vmul.f32 %v1280_v21, %v1278_v45  ;;  %v885_v30 = vsel %vm874_vm14, nan, %v884_v23  ;;  %v552_v37 = vcvt.s32.f32 %v545_v51  ;;  %v1176_v56 = vcvt.s32.f32 %v4607_v4  ;;  %v6402_v23 = vld [vmem:[#allocation11_spill] sm:$0xff] }
 0x14a   : > { %v3497_v41 = vpack.c.bf16 %v885_v30, %v677_v59  ;;  %v550_v25 = vand.u32 2147483647, %v549_v63  ;;  %v744_v17 = vsub.s32 0, %v742_v26  ;;  %v968_v12 = vcvt.s32.f32 %v4429_v29  ;;  %v6391_v29 = vld [vmem:[#allocation2_spill] sm:$0xff] }
 0x14b   : > { %vm992_vm4 = vcmp.lt.s32.totalorder %v6387_v33, 0  ;;  %v1177_v38 = vmul.f32 %v1176_v56, %v1174_v55  ;;  %v1282_v43 = vxor.u32 2147483648, %v1281_v53  ;;  %v6388_v10 = vand.u32 2147483647, %v6387_v33 }
 0x14c   : > { %3498 = vmatprep.subr.bf16.mxu0 %v3497_v41  ;;  %v553_v40 = vmul.f32 %v552_v37, %v550_v25  ;;  %v3397_v7 = vmin.u32 %v744_v17, %v742_v26  ;;  %v1075_v47 = vsel %vm992_vm4, %v1074_v28, %v4480_v31  ;;  %v969_v62 = vmul.f32 %v968_v12, %v966_v19 }
 0x14d   : > { %vm4635_vm5 = vcmp.le.f32.partialorder %v6388_v10, 0.7853982  ;;  %vm888_vm6 = vcmp.lt.s32.totalorder %v6391_v29, 0  ;;  %v6393_v31 = vand.u32 2147483647, %v6392_v2  ;;  %vm1096_vm8 = vcmp.lt.s32.totalorder %v6392_v2, 0 }
 0x14e   : > { %v746_v5 = vclz %v3397_v7  ;;  %v1078_v4 = vsel %vm4635_vm5, %v6387_v33, %v1075_v47  ;;  %v554_v32 = vxor.u32 2147483648, %v553_v40  ;;  %v1178_v18 = vxor.u32 2147483648, %v1177_v38 }
 0x14f   : > { %vm4645_vm7 = vcmp.le.f32.partialorder %v6393_v31, 0.7853982  ;;  %vm1200_vm9 = vcmp.lt.s32.totalorder %v6396_v0, 0  ;;  %v970_v57 = vxor.u32 2147483648, %v969_v62  ;;  %v6397_v22 = vand.u32 2147483647, %v6396_v0 }
 0x150   : > { %v3398_v36 = vadd.s32 4294967294, %v746_v5  ;;  %v1283_v24 = vsel %vm1200_vm9, %v1282_v43, %v1281_v53  ;;  %3648 = vcosq.f32 %v1078_v4  ;;  %vm472_vm11 = vcmp.lt.s32.totalorder %v3887_v6, 0  ;;  %v6406_v5 = vld [vmem:[#allocation10_spill] sm:$0xff] }
 0x151   : > { %vm4653_vm12 = vcmp.le.f32.partialorder %v6397_v22, 0.7853982  ;;  %v556_v1 = vsub.s32 4, %v4546_v11  ;;  %v555_v45 = vsel %vm472_vm11, %v554_v32, %v553_v40  ;;  %v734_v52 = vadd.s32 %v4593_v39, %v4568_v42 }
 0x152   : > { %vm3399_vm10 = vcmp.lt.s32.totalorder %v3398_v36, 0  ;;  %v1179_v61 = vsel %vm1096_vm8, %v1178_v18, %v1177_v38  ;;  %v1286_v35 = vsel %vm4653_vm12, %v6396_v0, %v1283_v24  ;;  %vm4672_vm13 = vcmp.le.f32.partialorder %v470_v3, 0.7853982 }
 0x153   : > { %v749_v13 = vsel %vm3399_vm10, 0, %v3398_v36  ;;  %v1076_v42 = vsub.s32 4, %v6402_v23  ;;  %v6313_v39 = vmov 0.0   ;;  %v971_v63 = vsel %vm888_vm6, %v970_v57, %v969_v62 }
 0x154   : > { %v750_v20 = vsub.s32 32, %v749_v13  ;;  %v754_v51 = vsub.s32 4294967266, %v749_v13  ;;  %v751_v59 = vshll.u32 %v742_v26, %v749_v13  ;;  %1407 = vmatprep.mubr.f32.mxu0 %v6313_v39  ;;  %2368 = vmatprep.mubr.f32.mxu1 %v6313_v39  ;;  %3650 = vsinq.f32 %v1078_v4 }
 0x155   : > { %v558_v3 = vsel %vm4672_vm13, %v3887_v6, %v555_v45  ;;  %v1284_v28 = vsub.s32 4, %v4341_v8  ;;  %3652 = vcosq.f32 %v1286_v35  ;;  %v557_v26 = vsel %vm472_vm11, %v556_v1, %v4546_v11 }
 0x156   : > { %v752_v60 = vshrl.u32 %v734_v52, %v750_v20  ;;  %v755_v19 = vadd.s32 127, %v754_v51  ;;  %v6403_v30 = vand.u32 2147483647, %v6391_v29  ;;  %v1182_v25 = vsel %vm4645_vm7, %v6392_v2, %v1179_v61 }
 0x157   : > { %3654 = vsinq.f32 %v1286_v35  ;;  %v1077_v11 = vsel %vm992_vm4, %v1076_v42, %v6402_v23  ;;  %v559_v56 = vsel %vm4672_vm13, 0, %v557_v26  ;;  %v1285_v12 = vsel %vm1200_vm9, %v1284_v28, %v4341_v8 }
 0x158   : > { %v753_v55 = vor.u32 %v752_v60, %v751_v59  ;;  %v756_v53 = vshll.u32 %v755_v19, 23  ;;  %vm4690_vm14 = vcmp.le.f32.partialorder %v6403_v30, 0.7853982  ;;  %3656 = vcosq.f32 %v558_v3 }
 0x159   : > { %v974_v37 = vsel %vm4690_vm14, %v6391_v29, %v971_v63  ;;  %3658 = vsinq.f32 %v558_v3  ;;  %v1180_v40 = vsub.s32 4, %v4277_v16  ;;  %v764_v38 = vsub.s32 4, %v4618_v49 }
 0x15a   : > { %v757_v17 = vor.u32 4788187, %v756_v53  ;;  %3660 = vcosq.f32 %v1182_v25  ;;  %v760_v47 = vcvt.s32.f32 %v753_v55  ;;  %v3649_v62 = vpop.eup %3648  ;;  %v1079_v43 = vsel %vm4635_vm5, 0, %v1077_v11 }
 0x15b   : > { %3662 = vsinq.f32 %v1182_v25  ;;  %v972_v10 = vsub.s32 4, %v6406_v5  ;;  %v563_v4 = vadd.s32 3, %v559_v56  ;;  %v1287_v8 = vsel %vm4653_vm12, 0, %v1285_v12 }
 0x15c   : > { %v758_v7 = vand.u32 2147483647, %v757_v17  ;;  %3664 = vcosq.f32 %v974_v37  ;;  %vm680_vm15 = vcmp.lt.s32.totalorder %v6381_v50, 0  ;;  %v1181_v36 = vsel %vm1096_vm8, %v1180_v40, %v4277_v16 }
 0x15d   : > { %3666 = vsinq.f32 %v974_v37  ;;  %v765_v18 = vsel %vm680_vm15, %v764_v38, %v4618_v49  ;;  %v1083_v44 = vadd.s32 3, %v1079_v43  ;;  %v1291_v22 = vadd.s32 3, %v1287_v8 }
 0x15e   : > { %v761_v32 = vmul.f32 %v760_v47, %v758_v7  ;;  %v3651_v57 = vpop.eup %3650  ;;  %v973_v24 = vsel %vm888_vm6, %v972_v10, %v6406_v5  ;;  %v4723_v58 = vand.u32 3, %v563_v4  ;;  %vm4727_vm0 = vcmp.le.f32.partialorder %v678_v14, 0.7853982 }
 0x15f   : > { %v3653_v1 = vpop.eup %3652  ;;  %v1183_v49 = vsel %vm4645_vm7, 0, %v1181_v36  ;;  %v767_v20 = vsel %vm4727_vm0, 0, %v765_v18  ;;  %v1084_v61 = vand.u32 3, %v1083_v44  ;;  %v1087_v35 = vxor.u32 2147483648, %v3651_v57 }
 0x160   : > { %v762_v31 = vxor.u32 2147483648, %v761_v32  ;;  %v975_v14 = vsel %vm4690_vm14, 0, %v973_v24  ;;  %v1090_v59 = vxor.u32 2147483648, %v3649_v62  ;;  %v1292_v15 = vand.u32 3, %v1291_v22 }
 0x161   : > { %v3655_v45 = vpop.eup %3654  ;;  %v1187_v60 = vadd.s32 3, %v1183_v49  ;;  %vm565_vm1 = vcmp.lt.s32.totalorder %v4723_v58, 2  ;;  %vm566_vm2 = vcmp.eq.s32.totalorder %v4723_v58, 0  ;;  %v771_v23 = vadd.s32 3, %v767_v20 }
 0x162   : > { %v763_v16 = vsel %vm680_vm15, %v762_v31, %v761_v32  ;;  %v3657_v51 = vpop.eup %3656  ;;  %vm569_vm3 = vcmp.eq.s32.totalorder %v4723_v58, 2  ;;  %v1295_v63 = vxor.u32 2147483648, %v3655_v45  ;;  %v1298_v3 = vxor.u32 2147483648, %v3653_v1 }
 0x163   : > { %v766_v52 = vsel %vm4727_vm0, %v6381_v50, %v763_v16  ;;  %v3659_v21 = vpop.eup %3658  ;;  %v979_v28 = vadd.s32 3, %v975_v14  ;;  %v570_v53 = vxor.u32 2147483648, %v3657_v51  ;;  %vm1086_vm4 = vcmp.eq.s32.totalorder %v1084_v61, 0  ;;  %v1313_v14 = vpop.permute.xlu0 %1312 }
 0x164   : > { %3668 = vcosq.f32 %v766_v52  ;;  %v3661_v19 = vpop.eup %3660  ;;  %v567_v55 = vxor.u32 2147483648, %v3659_v21  ;;  %vm1089_vm5 = vcmp.eq.s32.totalorder %v1084_v61, 2  ;;  %vm1290_vm6 = vweird.f32 %v6396_v0 }
 0x165   : > { %3670 = vsinq.f32 %v766_v52  ;;  %v3663_v42 = vpop.eup %3662  ;;  %vm562_vm7 = vweird.f32 %v3887_v6  ;;  %v1088_v41 = vsel %vm1086_vm4, %v3649_v62, %v1087_v35  ;;  %v1091_v25 = vsel %vm1089_vm5, %v1090_v59, %v3651_v57 }
 0x166   : > { %v3665_v26 = vpop.eup %3664  ;;  %vm1294_vm8 = vcmp.eq.s32.totalorder %v1292_v15, 0  ;;  %v1188_v37 = vand.u32 3, %v1187_v60  ;;  %v772_v17 = vand.u32 3, %v771_v23  ;;  %vm1082_vm9 = vweird.f32 %v6387_v33  ;;  %v1302_v33 = vld [vmem:[%s6268_s3] sm:$0xff] }
 0x167   : > { %v3667_v30 = vpop.eup %3666  ;;  %vm1297_vm12 = vcmp.eq.s32.totalorder %v1292_v15, 2  ;;  %v1191_v11 = vxor.u32 2147483648, %v3663_v42  ;;  %v1194_v56 = vxor.u32 2147483648, %v3661_v19  ;;  %vm770_vm10 = vweird.f32 %v6381_v50  ;;  %v1303_v50 = vld [vmem:[%s6268_s3 + $0x8] sm:$0xff] }
 0x168   : > { %vm1085_vm11 = vcmp.lt.s32.totalorder %v1084_v61, 2  ;;  %v1296_v12 = vsel %vm1294_vm8, %v3653_v1, %v1295_v63  ;;  %v1299_v40 = vsel %vm1297_vm12, %v1298_v3, %v3655_v45  ;;  %v980_v7 = vand.u32 3, %v979_v28 }
 0x169   : > { %v568_v47 = vsel %vm566_vm2, %v3657_v51, %v567_v55  ;;  %v571_v38 = vsel %vm569_vm3, %v570_v53, %v3659_v21  ;;  %v983_v62 = vxor.u32 2147483648, %v3667_v30  ;;  %v986_v43 = vxor.u32 2147483648, %v3665_v26 }
 0x16a   : > { %v1092_v5 = vsel %vm1085_vm11, %v1088_v41, %v1091_v25  ;;  %vm1293_vm13 = vcmp.lt.s32.totalorder %v1292_v15, 2  ;;  %vm1190_vm14 = vcmp.eq.s32.totalorder %v1188_v37, 0  ;;  %vm1193_vm15 = vcmp.eq.s32.totalorder %v1188_v37, 2 }
 0x16b   : > { %vm777_vm0 = vcmp.eq.s32.totalorder %v772_v17, 2  ;;  %v1300_v4 = vsel %vm1293_vm13, %v1296_v12, %v1299_v40  ;;  %v1192_v32 = vsel %vm1190_vm14, %v3661_v19, %v1191_v11  ;;  %v1195_v8 = vsel %vm1193_vm15, %v1194_v56, %v3663_v42  ;;  %v1318_v19 = vpop.permute.xlu1 %1317 }
 0x16c   : > { %v572_v31 = vsel %vm565_vm1, %v568_v47, %v571_v38  ;;  %vm982_vm2 = vcmp.eq.s32.totalorder %v980_v7, 0  ;;  %vm985_vm4 = vcmp.eq.s32.totalorder %v980_v7, 2  ;;  %vm1189_vm3 = vcmp.lt.s32.totalorder %v1188_v37, 2 }
 0x16d   : > { %v984_v57 = vsel %vm982_vm2, %v3665_v26, %v983_v62  ;;  %v987_v22 = vsel %vm985_vm4, %v986_v43, %v3667_v30  ;;  %vm774_vm5 = vcmp.eq.s32.totalorder %v772_v17, 0  ;;  %v1301_v1 = vsel %vm1290_vm6, nan, %v1300_v4 }
 0x16e   : > { %v3669_v10 = vpop.eup %3668  ;;  %v1196_v13 = vsel %vm1189_vm3, %v1192_v32, %v1195_v8  ;;  %v573_v16 = vsel %vm562_vm7, nan, %v572_v31  ;;  %vm773_vm8 = vcmp.lt.s32.totalorder %v772_v17, 2  ;;  %vm981_vm12 = vcmp.lt.s32.totalorder %v980_v7, 2 }
 0x16f   : > { %v3671_v36 = vpop.eup %3670  ;;  %v778_v18 = vxor.u32 2147483648, %v3669_v10  ;;  %v1093_v45 = vsel %vm1082_vm9, nan, %v1092_v5  ;;  %v988_v52 = vsel %vm981_vm12, %v984_v57, %v987_v22  ;;  %vm1186_vm1 = vweird.f32 %v6392_v2  ;;  %v1305_v2 = vld [vmem:[%s6268_s3 + $0x18] sm:$0xff] }
 0x170   : > { %v775_v44 = vxor.u32 2147483648, %v3671_v36  ;;  %v3501_v51 = vpack.c.bf16 %v1301_v1, %v1093_v45  ;;  %v1197_v0 = vsel %vm1186_vm1, nan, %v1196_v13  ;;  %vm978_vm6 = vweird.f32 %v6391_v29  ;;  %v1304_v29 = vld [vmem:[%s6268_s3 + $0x10] sm:$0xff] }
 0x171   : > { %v779_v24 = vsel %vm777_vm0, %v778_v18, %v3671_v36  ;;  %v989_v6 = vsel %vm978_vm6, nan, %v988_v52  ;;  %vm6351_vm7 = vcmask 261120  }
 0x172   : > { %v776_v49 = vsel %vm774_vm5, %v3669_v10, %v775_v44  ;;  %v3503_v35 = vpack.c.bf16 %v1197_v0, %v989_v6 }
 0x173   : > { %v780_v58 = vsel %vm773_vm8, %v776_v49, %v779_v24 }
 0x174   : > { %v781_v20 = vsel %vm770_vm10, nan, %v780_v58 }
 0x175   : > { %v3499_v61 = vpack.c.bf16 %v781_v20, %v573_v16 }
 0x177   : > { %3500 = vmatpush1.bf16.msra.mxu0 %v3499_v61 }
 0x178   : > { %3502 = vmatprep.subr.bf16.mxu0 %v3501_v51 }
 0x17b   : > { %3504 = vmatpush1.bf16.msra.mxu0 %v3503_v35 }
 0x17e   : > { %3420 = vmatmul.mubr.msk.f32.vlgmr.msra.gmra.mrb[0].mxu0 %vm6351_vm7, %v1302_v33 }
 0x17f   : > { %1413 = vmatprep.mubr.f32.mxu0 %v6313_v39 }
 0x182   : > { %3421 = vmatmul.mubr.msk.f32.gmra.mrb[2].mxu0 %vm6351_vm7, %v1303_v50 }
 0x183   : > { %1419 = vmatprep.mubr.f32.mxu0 %v6313_v39 }
 0x186   : > { %3422 = vmatmul.mubr.msk.f32.gmra.mrb[4].mxu0 %vm6351_vm7, %v1304_v29 }
 0x187   : > { %1425 = vmatprep.mubr.f32.mxu0 %v6313_v39 }
 0x18a   : > { %3423 = vmatmul.mubr.msk.f32.gmra.mrb[6].mxu0 %vm6351_vm7, %v1305_v2 }
 0x18b   : > { %3299 = vmatprep.mubr.f32.mxu0 %v6313_v39 }
 0x251   : > { %v1409_v21 = vpop.f32.mrb[0].mxu0 }
 0x252   : > { %v4783_v59 = vadd.f32 %v1409_v21, %v1313_v14  ;;  %v1411_v15 = vpop.f32.mrb[1].mxu0 }
 0x253   : > { %v4794_v25 = vadd.f32 %v1411_v15, %v1313_v14 }
 0x254   : > { %6409 = vst [vmem:[#allocation4_spill] sm:$0xff] %v4783_v59  ;;  %v1435_v60 = vand.u32 2139095040, %v4783_v59  ;;  %v6317_v41 = vand.u32 2147483647, %v4783_v59 }
 0x255   : > { %v1415_v23 = vpop.f32.mrb[2].mxu0  ;;  %6411 = vst [vmem:[#allocation3_spill] sm:$0xff] %v4794_v25  ;;  %v1539_v47 = vand.u32 2139095040, %v4794_v25 }
 0x256   : > { %v1436_v42 = vshrl.u32 %v1435_v60, 23  ;;  %v4786_v63 = vadd.f32 %v1415_v23, %v1318_v19  ;;  %v1417_v3 = vpop.f32.mrb[3].mxu0  ;;  %v1439_v40 = vand.u32 8388607, %v6317_v41 }
 0x257   : > { %v1540_v45 = vshrl.u32 %v1539_v47, 23  ;;  %v4828_v23 = vadd.f32 %v1417_v3, %v1318_v19 }
 0x258   : > { %6410 = vst [vmem:[#allocation12_spill] sm:$0xff] %v4786_v63  ;;  %v3424_v28 = vadd.s32 4294967169, %v1436_v42  ;;  %v1643_v26 = vand.u32 2139095040, %v4786_v63  ;;  %v1440_v57 = vor.u32 8388608, %v1439_v40  ;;  %v6315_v60 = vand.u32 2147483647, %v4786_v63 }
 0x259   : > { %v4789_v55 = vpop.f32.mrb[4].mxu0  ;;  %v1747_v19 = vand.u32 2139095040, %v4828_v23 }
 0x25a   : > { %v1442_v53 = vadd.s32 1, %v3424_v28  ;;  %v4791_v30 = vpop.f32.mrb[5].mxu0  ;;  %v1644_v17 = vshrl.u32 %v1643_v26, 23  ;;  %v1480_v6 = vshll.u32 %v1440_v57, 8  ;;  %v1647_v40 = vand.u32 8388607, %v6315_v60 }
 0x25c   : > { %vm1443_vm9 = vcmp.gt.s32.totalorder %v1442_v53, 0  ;;  %v3432_v5 = vadd.s32 4294967169, %v1644_v17  ;;  %v3428_v17 = vadd.s32 4294967169, %v1540_v45 }
 0x25d   : > { %v1444_v37 = vsel %vm1443_vm9, %v1442_v53, 0  ;;  %v4796_v11 = vpop.f32.mrb[6].mxu0 }
 0x25e   : > { %v1446_v56 = vand.u32 31, %v1444_v37  ;;  %v4798_v12 = vpop.f32.mrb[7].mxu0  ;;  %v1445_v38 = vshrl.u32 %v1444_v37, 5  ;;  %v1650_v51 = vadd.s32 1, %v3432_v5 }
 0x260   : > { %v1447_v7 = vsub.s32 32, %v1446_v56  ;;  %v1449_v62 = vshll.u32 %v6367_v27, %v1446_v56  ;;  %v1452_v43 = vshll.u32 %v6374_v46, %v1446_v56  ;;  %v1455_v32 = vshll.u32 %v6371_v48, %v1446_v56 }
 0x261   : > { %v1458_v36 = vshll.u32 %v6368_v54, %v1446_v56  ;;  %v1461_v18 = vshll.u32 %v6369_v34, %v1446_v56  ;;  %vm1464_vm10 = vcmp.lt.s32.totalorder %v1445_v38, 1  ;;  %vm1467_vm11 = vcmp.lt.s32.totalorder %v1445_v38, 4 }
 0x262   : > { %v1450_v10 = vshrl.u32 %v6374_v46, %v1447_v7  ;;  %v1453_v4 = vshrl.u32 %v6371_v48, %v1447_v7  ;;  %v1456_v8 = vshrl.u32 %v6368_v54, %v1447_v7  ;;  %v1459_v31 = vshrl.u32 %v6369_v34, %v1447_v7 }
 0x263   : > { %v1462_v44 = vshrl.u32 %v6370_v9, %v1447_v7  ;;  %vm1466_vm13 = vcmp.lt.s32.totalorder %v1445_v38, 3  ;;  %vm1465_vm14 = vcmp.lt.s32.totalorder %v1445_v38, 2  ;;  %v1448_v35 = vshrl.u32 %v6367_v27, %v1447_v7 }
 0x264   : > { %v1451_v22 = vor.u32 %v1450_v10, %v1449_v62  ;;  %v1454_v24 = vor.u32 %v1453_v4, %v1452_v43  ;;  %v1457_v1 = vor.u32 %v1456_v8, %v1455_v32  ;;  %v1460_v13 = vor.u32 %v1459_v31, %v1458_v36 }
 0x265   : > { %v1463_v16 = vor.u32 %v1462_v44, %v1461_v18  ;;  %vm1651_vm15 = vcmp.gt.s32.totalorder %v1650_v51, 0  ;;  %v1648_v44 = vor.u32 8388608, %v1647_v40 }
 0x266   : > { %v1472_v49 = vsel %vm1464_vm10, %v1451_v22, %v1454_v24  ;;  %v1476_v58 = vsel %vm1464_vm10, %v1454_v24, %v1457_v1  ;;  %v1473_v52 = vsel %vm1467_vm11, %v1460_v13, 920167782  ;;  %v1469_v33 = vsel %vm1467_vm11, %v1457_v1, 2102212464 }
 0x267   : > { %v1477_v20 = vsel %vm1467_vm11, %v1463_v16, 1326507024  ;;  %v1474_v0 = vsel %vm1466_vm13, %v1457_v1, %v1473_v52  ;;  %v1468_v42 = vsel %vm1464_vm10, %v1448_v35, %v1451_v22  ;;  %v1470_v28 = vsel %vm1466_vm13, %v1454_v24, %v1469_v33  ;;  %v1323_v24 = vpop.permute.xlu0 %1322 }
 0x268   : > { %v1478_v61 = vsel %vm1466_vm13, %v1460_v13, %v1477_v20  ;;  %v1475_v50 = vsel %vm1465_vm14, %v1472_v49, %v1474_v0  ;;  %v1652_v26 = vsel %vm1651_vm15, %v1650_v51, 0  ;;  %v1471_v56 = vsel %vm1465_vm14, %v1468_v42, %v1470_v28 }
 0x269   : > { %v1479_v29 = vsel %vm1465_vm14, %v1476_v58, %v1478_v61  ;;  %v4823_v21 = vmul.u32.u64.low %v1480_v6, %v1475_v50  ;;  %v4824_v15 = vmul.u32.u64.high %v1480_v6, %v1475_v50, %v4823_v21  ;;  %v1654_v53 = vand.u32 31, %v1652_v26 }
 0x26a   : > { %v4820_v2 = vmul.u32.u64.low %v1480_v6, %v1479_v29  ;;  %v4821_v14 = vmul.u32.u64.high %v1480_v6, %v1479_v29, %v4820_v2  ;;  %v4839_v3 = vshrl.u32 %v1652_v26, 5  ;;  %v1487_v18 = vmul.u32 %v1480_v6, %v1471_v56 }
 0x26b   : > { %v1490_v37 = vadd.s32 1, %v4824_v15  ;;  %v1655_v7 = vsub.s32 32, %v1654_v53  ;;  %v1657_v47 = vshll.u32 %v6367_v27, %v1654_v53  ;;  %v1660_v62 = vshll.u32 %v6374_v46, %v1654_v53 }
 0x26c   : > { %vm1489_vm0 = vc.u32 %v4821_v14, %v4823_v21  ;;  %v1663_v43 = vshll.u32 %v6371_v48, %v1654_v53  ;;  %v1666_v4 = vshll.u32 %v6368_v54, %v1654_v53  ;;  %v1669_v36 = vshll.u32 %v6369_v34, %v1654_v53 }
 0x26d   : > { %v1491_v5 = vsel %vm1489_vm0, %v1490_v37, %v4824_v15  ;;  %v1658_v10 = vshrl.u32 %v6374_v46, %v1655_v7  ;;  %v1661_v38 = vshrl.u32 %v6371_v48, %v1655_v7  ;;  %v1664_v32 = vshrl.u32 %v6368_v54, %v1655_v7 }
 0x26e   : > { %v1667_v8 = vshrl.u32 %v6369_v34, %v1655_v7  ;;  %v1670_v31 = vshrl.u32 %v6370_v9, %v1655_v7  ;;  %vm1672_vm2 = vcmp.lt.s32.totalorder %v4839_v3, 1  ;;  %v1492_v49 = vadd.s32 %v1491_v5, %v1487_v18 }
 0x26f   : > { %v1659_v57 = vor.u32 %v1658_v10, %v1657_v47  ;;  %v1662_v22 = vor.u32 %v1661_v38, %v1660_v62  ;;  %v1665_v1 = vor.u32 %v1664_v32, %v1663_v43  ;;  %vm1675_vm4 = vcmp.lt.s32.totalorder %v4839_v3, 4 }
 0x270   : > { %v1668_v13 = vor.u32 %v1667_v8, %v1666_v4  ;;  %v1671_v16 = vor.u32 %v1670_v31, %v1669_v36  ;;  %v4857_v45 = vadd.f32 %v4789_v55, %v1323_v24  ;;  %vm1674_vm3 = vcmp.lt.s32.totalorder %v4839_v3, 3 }
 0x271   : > { %v1680_v58 = vsel %vm1672_vm2, %v1659_v57, %v1662_v22  ;;  %v1684_v20 = vsel %vm1672_vm2, %v1662_v22, %v1665_v1  ;;  %v1546_v0 = vadd.s32 1, %v3428_v17  ;;  %vm1673_vm5 = vcmp.lt.s32.totalorder %v4839_v3, 2 }
 0x272   : > { %6412 = vst [vmem:[#allocation8_spill] sm:$0xff] %v4857_v45  ;;  %v1681_v52 = vsel %vm1675_vm4, %v1668_v13, 920167782  ;;  %v1685_v51 = vsel %vm1675_vm4, %v1671_v16, 1326507024  ;;  %v1688_v33 = vshll.u32 %v1648_v44, 8  ;;  %v1656_v40 = vshrl.u32 %v6367_v27, %v1655_v7 }
 0x273   : > { %v1682_v61 = vsel %vm1674_vm3, %v1665_v1, %v1681_v52  ;;  %v1686_v55 = vsel %vm1674_vm3, %v1668_v13, %v1685_v51  ;;  %v1493_v50 = vadd.s32 536870912, %v1492_v49  ;;  %v1748_v15 = vshrl.u32 %v1747_v19, 23 }
 0x274   : > { %v1683_v6 = vsel %vm1673_vm5, %v1680_v58, %v1682_v61  ;;  %v1687_v35 = vsel %vm1673_vm5, %v1684_v20, %v1686_v55  ;;  %vm1547_vm8 = vcmp.gt.s32.totalorder %v1546_v0, 0  ;;  %v1851_v26 = vand.u32 2139095040, %v4857_v45 }
 0x275   : > { %v4875_v29 = vmul.u32.u64.low %v1688_v33, %v1683_v6  ;;  %v4876_v2 = vmul.u32.u64.high %v1688_v33, %v1683_v6, %v4875_v29  ;;  %v4879_v42 = vmul.u32.u64.low %v1688_v33, %v1687_v35  ;;  %v4880_v28 = vmul.u32.u64.high %v1688_v33, %v1687_v35, %v4879_v42 }
 0x276   : > { %v4883_v53 = vshrl.u32 %v1493_v50, 30  ;;  %v4885_v37 = vsel %vm1547_vm8, %v1546_v0, 0  ;;  %v1677_v17 = vsel %vm1675_vm4, %v1665_v1, 2102212464  ;;  %v1852_v56 = vshrl.u32 %v1851_v26, 23 }
 0x277   : > { %v3436_v47 = vadd.s32 4294967169, %v1748_v15  ;;  %v4891_v62 = vadd.f32 %v4791_v30, %v1323_v24  ;;  %v4894_v43 = vand.u32 31, %v4885_v37  ;;  %v1676_v5 = vsel %vm1672_vm2, %v1656_v40, %v1659_v57  ;;  %v4944_v40 = vpop.permute.xlu1 %1327 }
 0x278   : > { %6413 = vst [vmem:[#allocation9_spill] sm:$0xff] %v4883_v53  ;;  %v3440_v19 = vadd.s32 4294967169, %v1852_v56  ;;  %v1678_v10 = vsel %vm1674_vm3, %v1662_v22, %v1677_v17  ;;  %v1495_v38 = vshll.u32 %v4883_v53, 30  ;;  %v1698_v4 = vadd.s32 1, %v4876_v2 }
 0x279   : > { %6414 = vst [vmem:[#allocation5_spill] sm:$0xff] %v4891_v62  ;;  %vm1697_vm12 = vc.u32 %v4880_v28, %v4875_v29  ;;  %v1754_v30 = vadd.s32 1, %v3436_v47  ;;  %v1955_v7 = vand.u32 2139095040, %v4891_v62  ;;  %v1679_v8 = vsel %vm1673_vm5, %v1676_v5, %v1678_v10 }
 0x27a   : > { %v1858_v32 = vadd.s32 1, %v3440_v19  ;;  %v4908_v36 = vsub.s32 32, %v4894_v43  ;;  %v4910_v31 = vsub.s32 %v1492_v49, %v1495_v38  ;;  %v1699_v18 = vsel %vm1697_vm12, %v1698_v4, %v4876_v2 }
 0x27b   : > { %v6319_v44 = vand.u32 2147483647, %v4857_v45  ;;  %v1695_v22 = vmul.u32 %v1688_v33, %v1679_v8  ;;  %vm1755_vm6 = vcmp.gt.s32.totalorder %v1754_v30, 0  ;;  %v1956_v24 = vshrl.u32 %v1955_v7, 23 }
 0x27c   : > { %vm1859_vm1 = vcmp.gt.s32.totalorder %v1858_v32, 0  ;;  %6415 = vst [vmem:[#allocation2_spill] sm:$0xff] %v4910_v31  ;;  %v6316_v13 = vand.u32 2147483647, %v4794_v25  ;;  %v4917_v3 = vshll.u32 %v6368_v54, %v4894_v43  ;;  %v4921_v16 = vshrl.u32 %v6369_v34, %v4908_v36 }
 0x27d   : > { %v1860_v57 = vsel %vm1859_vm1, %v1858_v32, 0  ;;  %v4925_v49 = vshrl.u32 %v6370_v9, %v4908_v36  ;;  %v4927_v58 = vadd.s32 %v1699_v18, %v1695_v22  ;;  %v1498_v52 = vsub.s32 0, %v4910_v31 }
 0x27e   : > { %v1862_v1 = vand.u32 31, %v1860_v57  ;;  %v4930_v20 = vsel %vm1755_vm6, %v1754_v30, 0  ;;  %v1855_v51 = vand.u32 8388607, %v6319_v44  ;;  %v1861_v61 = vshrl.u32 %v1860_v57, 5 }
 0x27f   : > { %v3444_v35 = vadd.s32 4294967169, %v1956_v24  ;;  %v1701_v42 = vadd.s32 536870912, %v4927_v58  ;;  %v4948_v38 = vmin.u32 %v1498_v52, %v4910_v31  ;;  %v6318_v32 = vand.u32 2147483647, %v4891_v62 }
 0x280   : > { %v1863_v0 = vsub.s32 32, %v1862_v1  ;;  %v1865_v55 = vshll.u32 %v6367_v27, %v1862_v1  ;;  %v1868_v6 = vshll.u32 %v6374_v46, %v1862_v1  ;;  %v1871_v2 = vshll.u32 %v6371_v48, %v1862_v1 }
 0x281   : > { %v1874_v26 = vshll.u32 %v6368_v54, %v1862_v1  ;;  %v1877_v56 = vshll.u32 %v6369_v34, %v1862_v1  ;;  %v4953_v30 = vadd.f32 %v4796_v11, %v4944_v40  ;;  %v1856_v7 = vor.u32 8388608, %v1855_v51 }
 0x282   : > { %v1866_v33 = vshrl.u32 %v6374_v46, %v1863_v0  ;;  %v1869_v50 = vshrl.u32 %v6371_v48, %v1863_v0  ;;  %v1872_v15 = vshrl.u32 %v6368_v54, %v1863_v0  ;;  %v1875_v17 = vshrl.u32 %v6369_v34, %v1863_v0 }
 0x283   : > { %v1878_v10 = vshrl.u32 %v6370_v9, %v1863_v0  ;;  %6416 = vst [vmem:[#allocation6_spill] sm:$0xff] %v4953_v30  ;;  %vm1880_vm9 = vcmp.lt.s32.totalorder %v1861_v61, 1  ;;  %v1962_v18 = vadd.s32 1, %v3444_v35  ;;  %v4955_v57 = vshrl.u32 %v1701_v42, 30 }
 0x284   : > { %v1867_v47 = vor.u32 %v1866_v33, %v1865_v55  ;;  %v1870_v19 = vor.u32 %v1869_v50, %v1868_v6  ;;  %v1873_v5 = vor.u32 %v1872_v15, %v1871_v2  ;;  %v1876_v4 = vor.u32 %v1875_v17, %v1874_v26 }
 0x285   : > { %v1879_v8 = vor.u32 %v1878_v10, %v1877_v56  ;;  %6417 = vst [vmem:[#allocation7_spill] sm:$0xff] %v4955_v57  ;;  %vm1882_vm10 = vcmp.lt.s32.totalorder %v1861_v61, 3  ;;  %vm1883_vm11 = vcmp.lt.s32.totalorder %v1861_v61, 4  ;;  %v1864_v6 = vshrl.u32 %v6367_v27, %v1863_v0 }
 0x286   : > { %v1888_v22 = vsel %vm1880_vm9, %v1867_v47, %v1870_v19  ;;  %v1885_v24 = vsel %vm1883_vm11, %v1873_v5, 2102212464  ;;  %v1889_v1 = vsel %vm1883_vm11, %v1876_v4, 920167782  ;;  %v1892_v52 = vsel %vm1880_vm9, %v1870_v19, %v1873_v5 }
 0x287   : > { %v1893_v55 = vsel %vm1883_vm11, %v1879_v8, 1326507024  ;;  %vm1881_vm13 = vcmp.lt.s32.totalorder %v1861_v61, 2  ;;  %v1890_v11 = vsel %vm1882_vm10, %v1873_v5, %v1889_v1  ;;  %v2059_v51 = vand.u32 2139095040, %v4953_v30 }
 0x288   : > { %v1891_v35 = vsel %vm1881_vm13, %v1888_v22, %v1890_v11  ;;  %v1894_v33 = vsel %vm1882_vm10, %v1876_v4, %v1893_v55  ;;  %v1896_v50 = vshll.u32 %v1856_v7, 8  ;;  %vm1963_vm14 = vcmp.gt.s32.totalorder %v1962_v18, 0 }
 0x289   : > { %v1884_v2 = vsel %vm1880_vm9, %v1864_v6, %v1867_v47  ;;  %v1886_v15 = vsel %vm1882_vm10, %v1870_v19, %v1885_v24  ;;  %v1895_v42 = vsel %vm1881_vm13, %v1892_v52, %v1894_v33  ;;  %v1959_v0 = vand.u32 8388607, %v6318_v32 }
 0x28a   : > { %v4969_v26 = vmul.u32.u64.low %v1896_v50, %v1895_v42  ;;  %v4970_v17 = vmul.u32.u64.high %v1896_v50, %v1895_v42, %v4969_v26  ;;  %v4972_v56 = vmul.u32.u64.low %v1896_v50, %v1891_v35  ;;  %v4973_v5 = vmul.u32.u64.high %v1896_v50, %v1891_v35, %v4972_v56 }
 0x28b   : > { %v4978_v10 = vshll.u32 %v6369_v34, %v4894_v43  ;;  %v1703_v47 = vshll.u32 %v4955_v57, 30  ;;  %v1964_v4 = vsel %vm1963_vm14, %v1962_v18, 0  ;;  %v2060_v19 = vshrl.u32 %v2059_v51, 23 }
 0x28c   : > { %v4982_v7 = vshrl.u32 %v4885_v37, 5  ;;  %v1887_v8 = vsel %vm1881_vm13, %v1884_v2, %v1886_v15  ;;  %v1966_v22 = vand.u32 31, %v1964_v4  ;;  %v4987_v24 = vand.u32 8388607, %v6316_v13 }
 0x28d   : > { %v4992_v52 = vor.u32 %v4921_v16, %v4917_v3  ;;  %v1567_v18 = vor.u32 %v4925_v49, %v4978_v10  ;;  %v4997_v55 = vand.u32 31, %v4930_v20  ;;  %vm1905_vm15 = vc.u32 %v4970_v17, %v4972_v56 }
 0x28e   : > { %v1906_v37 = vadd.s32 1, %v4973_v5  ;;  %v1960_v61 = vor.u32 8388608, %v1959_v0  ;;  %v1967_v6 = vsub.s32 32, %v1966_v22  ;;  %v5003_v11 = vsub.s32 %v4927_v58, %v1703_v47 }
 0x28f   : > { %v1903_v51 = vmul.u32 %v1896_v50, %v1887_v8  ;;  %v1969_v3 = vshll.u32 %v6367_v27, %v1966_v22  ;;  %v3448_v16 = vadd.s32 4294967169, %v2060_v19  ;;  %v1972_v33 = vshll.u32 %v6374_v46, %v1966_v22 }
 0x290   : > { %6418 = vst [vmem:[#allocation11_spill] sm:$0xff] %v5003_v11  ;;  %v1907_v35 = vsel %vm1905_vm15, %v1906_v37, %v4973_v5  ;;  %v1970_v49 = vshrl.u32 %v6374_v46, %v1967_v6  ;;  %v1973_v2 = vshrl.u32 %v6371_v48, %v1967_v6  ;;  %v1965_v42 = vshrl.u32 %v1964_v4, 5 }
 0x291   : > { %v1908_v15 = vadd.s32 %v1907_v35, %v1903_v51  ;;  %v1975_v0 = vshll.u32 %v6371_v48, %v1966_v22  ;;  %v1976_v26 = vshrl.u32 %v6368_v54, %v1967_v6  ;;  %v1978_v50 = vshll.u32 %v6368_v54, %v1966_v22 }
 0x292   : > { %v1971_v58 = vor.u32 %v1970_v49, %v1969_v3  ;;  %v1974_v10 = vor.u32 %v1973_v2, %v1972_v33  ;;  %v1979_v47 = vshrl.u32 %v6369_v34, %v1967_v6  ;;  %v2000_v8 = vshll.u32 %v1960_v61, 8 }
 0x293   : > { %v1909_v19 = vadd.s32 536870912, %v1908_v15  ;;  %v1977_v5 = vor.u32 %v1976_v26, %v1975_v0  ;;  %v6320_v37 = vand.u32 2147483647, %v4953_v30  ;;  %v1706_v39 = vsub.s32 0, %v5003_v11 }
 0x294   : > { %v1980_v60 = vor.u32 %v1979_v47, %v1978_v50  ;;  %v1981_v4 = vshll.u32 %v6369_v34, %v1966_v22  ;;  %v1982_v51 = vshrl.u32 %v6370_v9, %v1967_v6  ;;  %vm1984_vm0 = vcmp.lt.s32.totalorder %v1965_v42, 1 }
 0x295   : > { %v5018_v35 = vshrl.u32 %v1909_v19, 30  ;;  %vm1987_vm2 = vcmp.lt.s32.totalorder %v1965_v42, 4  ;;  %v2066_v3 = vadd.s32 1, %v3448_v16  ;;  %v1968_v49 = vshrl.u32 %v6367_v27, %v1967_v6 }
 0x296   : > { %v1983_v33 = vor.u32 %v1982_v51, %v1981_v4  ;;  %v1989_v2 = vsel %vm1987_vm2, %v1977_v5, 2102212464  ;;  %v1992_v0 = vsel %vm1984_vm0, %v1971_v58, %v1974_v10  ;;  %vm1985_vm4 = vcmp.lt.s32.totalorder %v1965_v42, 2 }
 0x297   : > { %6419 = vst [vmem:[#allocation10_spill] sm:$0xff] %v5018_v35  ;;  %v1911_v61 = vshll.u32 %v5018_v35, 30  ;;  %vm1986_vm3 = vcmp.lt.s32.totalorder %v1965_v42, 3  ;;  %v1993_v26 = vsel %vm1987_vm2, %v1980_v60, 920167782  ;;  %v1988_v50 = vsel %vm1984_vm0, %v1968_v49, %v1971_v58 }
 0x298   : > { %v1994_v47 = vsel %vm1986_vm3, %v1977_v5, %v1993_v26  ;;  %v1996_v22 = vsel %vm1984_vm0, %v1974_v10, %v1977_v5  ;;  %v1997_v13 = vsel %vm1987_vm2, %v1983_v33, 1326507024  ;;  %v1990_v19 = vsel %vm1986_vm3, %v1974_v10, %v1989_v2 }
 0x299   : > { %v5022_v41 = vsub.s32 %v1908_v15, %v1911_v61  ;;  %v1995_v32 = vsel %vm1985_vm4, %v1992_v0, %v1994_v47  ;;  %v1998_v16 = vsel %vm1986_vm3, %v1980_v60, %v1997_v13  ;;  %vm2067_vm5 = vcmp.gt.s32.totalorder %v2066_v3, 0 }
 0x29a   : > { %v1999_v6 = vsel %vm1985_vm4, %v1996_v22, %v1998_v16  ;;  %v5026_v4 = vmul.u32.u64.low %v2000_v8, %v1995_v32  ;;  %v5027_v51 = vmul.u32.u64.high %v2000_v8, %v1995_v32, %v5026_v4  ;;  %v3433_v44 = vmin.u32 %v1706_v39, %v5003_v11 }
 0x29b   : > { %v5031_v1 = vmul.u32.u64.low %v2000_v8, %v1999_v6  ;;  %v5032_v58 = vmul.u32.u64.high %v2000_v8, %v1999_v6, %v5031_v1  ;;  %v2068_v5 = vsel %vm2067_vm5, %v2066_v3, 0  ;;  %vm1571_vm8 = vcmp.lt.s32.totalorder %v4982_v7, 4 }
 0x29c   : > { %v1991_v15 = vsel %vm1985_vm4, %v1988_v50, %v1990_v19  ;;  %v2063_v60 = vand.u32 8388607, %v6320_v37  ;;  %v2070_v13 = vand.u32 31, %v2068_v5  ;;  %v5041_v32 = vsel %vm1571_vm8, %v4992_v52, 920167782 }
 0x29d   : > { %v5045_v39 = vsel %vm1571_vm8, %v1567_v18, 1326507024  ;;  %v1914_v1 = vsub.s32 0, %v5022_v41  ;;  %v6420_v42 = vclz %v4948_v38  ;;  %v5054_v49 = vsub.s32 32, %v4997_v55 }
 0x29e   : > { %v2010_v33 = vadd.s32 1, %v5027_v51  ;;  %v2071_v2 = vsub.s32 32, %v2070_v13  ;;  %v1708_v0 = vclz %v3433_v44  ;;  %v2007_v61 = vmul.u32 %v2000_v8, %v1991_v15 }
 0x29f   : > { %v5051_v3 = vadd.s32 4294967294, %v6420_v42  ;;  %vm2009_vm12 = vc.u32 %v5032_v58, %v5026_v4  ;;  %v5061_v18 = vadd.f32 %v4798_v12, %v4944_v40  ;;  %v2064_v38 = vor.u32 8388608, %v2063_v60 }
 0x2a0   : > { %v2011_v26 = vsel %vm2009_vm12, %v2010_v33, %v5027_v51  ;;  %v2074_v50 = vshrl.u32 %v6374_v46, %v2071_v2  ;;  %v2077_v47 = vshrl.u32 %v6371_v48, %v2071_v2  ;;  %v3441_v22 = vmin.u32 %v1914_v1, %v5022_v41 }
 0x2a1   : > { %6421 = vst [vmem:[#allocation13_spill] sm:$0xff] %v5061_v18  ;;  %v2012_v19 = vadd.s32 %v2011_v26, %v2007_v61  ;;  %v2073_v44 = vshll.u32 %v6367_v27, %v2070_v13  ;;  %v2080_v8 = vshrl.u32 %v6368_v54, %v2071_v2  ;;  %v2076_v16 = vshll.u32 %v6374_v46, %v2070_v13 }
 0x2a2   : > { %v2079_v6 = vshll.u32 %v6371_v48, %v2070_v13  ;;  %v2082_v12 = vshll.u32 %v6368_v54, %v2070_v13  ;;  %v2083_v40 = vshrl.u32 %v6369_v34, %v2071_v2  ;;  %v2069_v15 = vshrl.u32 %v2068_v5, 5 }
 0x2a3   : > { %v2013_v51 = vadd.s32 536870912, %v2012_v19  ;;  %v2075_v60 = vor.u32 %v2074_v50, %v2073_v44  ;;  %v2086_v42 = vshrl.u32 %v6370_v9, %v2071_v2  ;;  %v2078_v33 = vor.u32 %v2077_v47, %v2076_v16 }
 0x2a4   : > { %v2081_v1 = vor.u32 %v2080_v8, %v2079_v6  ;;  %v2084_v61 = vor.u32 %v2083_v40, %v2082_v12  ;;  %v2085_v26 = vshll.u32 %v6369_v34, %v2070_v13  ;;  %v5077_v37 = vadd.s32 %v4823_v21, %v4821_v14 }
 0x2a5   : > { %v5080_v10 = vshrl.u32 %v4930_v20, 5  ;;  %v1771_v35 = vshrl.u32 %v6369_v34, %v5054_v49  ;;  %v1916_v57 = vclz %v3441_v22  ;;  %vm3427_vm1 = vcmp.lt.s32.totalorder %v5051_v3, 0 }
 0x2a6   : > { %v1774_v5 = vshrl.u32 %v6370_v9, %v5054_v49  ;;  %v2087_v50 = vor.u32 %v2086_v42, %v2085_v26  ;;  %v2163_v47 = vand.u32 2139095040, %v5061_v18  ;;  %v3434_v13 = vadd.s32 4294967294, %v1708_v0 }
 0x2a7   : > { %v5088_v44 = vshrl.u32 %v2013_v51, 30  ;;  %vm2088_vm6 = vcmp.lt.s32.totalorder %v2069_v15, 1  ;;  %vm2091_vm9 = vcmp.lt.s32.totalorder %v2069_v15, 4  ;;  %v2104_v8 = vshll.u32 %v2064_v38, 8 }
 0x2a8   : > { %v2093_v14 = vsel %vm2091_vm9, %v2081_v1, 2102212464  ;;  %v2096_v21 = vsel %vm2088_vm6, %v2075_v60, %v2078_v33  ;;  %v2097_v20 = vsel %vm2091_vm9, %v2084_v61, 920167782  ;;  %v3442_v16 = vadd.s32 4294967294, %v1916_v57 }
 0x2a9   : > { %6422 = vst [vmem:[#allocation14_spill] sm:$0xff] %v5088_v44  ;;  %v2072_v22 = vshrl.u32 %v6367_v27, %v2071_v2  ;;  %vm2089_vm10 = vcmp.lt.s32.totalorder %v2069_v15, 2  ;;  %vm2090_vm11 = vcmp.lt.s32.totalorder %v2069_v15, 3  ;;  %v2100_v12 = vsel %vm2088_vm6, %v2078_v33, %v2081_v1 }
 0x2aa   : > { %v2098_v6 = vsel %vm2090_vm11, %v2081_v1, %v2097_v20  ;;  %v2101_v40 = vsel %vm2091_vm9, %v2087_v50, 1326507024  ;;  %v2164_v42 = vshrl.u32 %v2163_v47, 23  ;;  %v2015_v26 = vshll.u32 %v5088_v44, 30 }
 0x2ab   : > { %v2092_v0 = vsel %vm2088_vm6, %v2072_v22, %v2075_v60  ;;  %v2094_v51 = vsel %vm2090_vm11, %v2078_v33, %v2093_v14  ;;  %v2099_v25 = vsel %vm2089_vm10, %v2096_v21, %v2098_v6  ;;  %v2102_v30 = vsel %vm2090_vm11, %v2084_v61, %v2101_v40 }
 0x2ac   : > { %v5093_v53 = vmul.u32.u64.low %v2104_v8, %v2099_v25  ;;  %v5094_v63 = vmul.u32.u64.high %v2104_v8, %v2099_v25, %v5093_v53  ;;  %v3452_v57 = vadd.s32 4294967169, %v2164_v42  ;;  %v1770_v2 = vshll.u32 %v6368_v54, %v4997_v55 }
 0x2ad   : > { %v1773_v38 = vshll.u32 %v6369_v34, %v4997_v55  ;;  %vm1779_vm13 = vcmp.lt.s32.totalorder %v5080_v10, 4  ;;  %v2103_v1 = vsel %vm2089_vm10, %v2100_v12, %v2102_v30  ;;  %v5106_v60 = vsel %vm3427_vm1, 0, %v5051_v3 }
 0x2ae   : > { %6423 = vst [vmem:[#allocation15_spill] sm:$0xff] %v5093_v53  ;;  %6424 = vst [vmem:[#allocation16_spill] sm:$0xff] %v5106_v60  ;;  %v5108_v33 = vmul.u32.u64.low %v2104_v8, %v2103_v1  ;;  %v5109_v25 = vmul.u32.u64.high %v2104_v8, %v2103_v1, %v5108_v33  ;;  %v2170_v61 = vadd.s32 1, %v3452_v57  ;;  %v5111_v50 = vor.u32 %v1771_v35, %v1770_v2 }
 0x2af   : > { %v1775_v47 = vor.u32 %v1774_v5, %v1773_v38  ;;  %v5113_v14 = vsub.s32 %v2012_v19, %v2015_v26  ;;  %v2095_v21 = vsel %vm2089_vm10, %v2092_v0, %v2094_v51  ;;  %vm3435_vm14 = vcmp.lt.s32.totalorder %v3434_v13, 0 }
 0x2b0   : > { %6425 = vst [vmem:[#allocation17_spill] sm:$0xff] %v5109_v25  ;;  %vm3443_vm15 = vcmp.lt.s32.totalorder %v3442_v16, 0  ;;  %v2114_v30 = vadd.s32 1, %v5094_v63  ;;  %vm2171_vm0 = vcmp.gt.s32.totalorder %v2170_v61, 0  ;;  %v1504_v20 = vsub.s32 32, %v5106_v60 }
 0x2b1   : > { %v5120_v3 = vadd.s32 %v4875_v29, %v4880_v28  ;;  %v6333_v22 = vand.u32 2147483647, %v5061_v18  ;;  %v2172_v35 = vsel %vm2171_vm0, %v2170_v61, 0  ;;  %v1508_v5 = vsub.s32 4294967266, %v5106_v60 }
 0x2b2   : > { %v2111_v19 = vmul.u32 %v2104_v8, %v2095_v21  ;;  %vm2113_vm2 = vc.u32 %v5109_v25, %v5093_v53  ;;  %v2174_v15 = vand.u32 31, %v2172_v35  ;;  %v5126_v6 = vsel %vm3435_vm14, 0, %v3434_v13 }
 0x2b3   : > { %v5128_v12 = vsel %vm3443_vm15, 0, %v3442_v16  ;;  %v2018_v40 = vsub.s32 0, %v5113_v14  ;;  %v2115_v42 = vsel %vm2113_vm2, %v2114_v30, %v5094_v63  ;;  %v5135_v29 = vsel %vm1779_vm13, %v5111_v50, 920167782 }
 0x2b4   : > { %v5139_v28 = vsel %vm1779_vm13, %v1775_v47, 1326507024  ;;  %v2116_v8 = vadd.s32 %v2115_v42, %v2111_v19  ;;  %v2175_v26 = vsub.s32 32, %v2174_v15  ;;  %v5144_v16 = vshrl.u32 %v5077_v37, %v1504_v20 }
 0x2b5   : > { %v2167_v63 = vand.u32 8388607, %v6333_v22  ;;  %v5150_v0 = vshrl.u32 %v6367_v27, %v4908_v36  ;;  %v5152_v51 = vadd.s32 127, %v1508_v5  ;;  %v1716_v57 = vsub.s32 4294967266, %v5126_v6 }
 0x2b6   : > { %6426 = vst [vmem:[#allocation18_spill] sm:$0xff] %v5144_v16  ;;  %v5157_v2 = vadd.s32 %v4972_v56, %v4970_v17  ;;  %v1924_v38 = vsub.s32 4294967266, %v5128_v12  ;;  %v3445_v37 = vmin.u32 %v2018_v40, %v5113_v14  ;;  %v2117_v1 = vadd.s32 536870912, %v2116_v8 }
 0x2b7   : > { %v2177_v33 = vshll.u32 %v6367_v27, %v2174_v15  ;;  %v2178_v61 = vshrl.u32 %v6374_v46, %v2175_v26  ;;  %v2180_v47 = vshll.u32 %v6374_v46, %v2174_v15  ;;  %v2181_v21 = vshrl.u32 %v6371_v48, %v2175_v26 }
 0x2b8   : > { %v2183_v30 = vshll.u32 %v6371_v48, %v2174_v15  ;;  %v2184_v20 = vshrl.u32 %v6368_v54, %v2175_v26  ;;  %v2168_v5 = vor.u32 8388608, %v2167_v63  ;;  %v2173_v17 = vshrl.u32 %v2172_v35, 5 }
 0x2b9   : > { %v2179_v56 = vor.u32 %v2178_v61, %v2177_v33  ;;  %v1553_v19 = vshll.u32 %v6367_v27, %v4894_v43  ;;  %v2182_v40 = vor.u32 %v2181_v21, %v2180_v47  ;;  %v2186_v22 = vshll.u32 %v6368_v54, %v2174_v15 }
 0x2ba   : > { %v2185_v42 = vor.u32 %v2184_v20, %v2183_v30  ;;  %v2187_v13 = vshrl.u32 %v6369_v34, %v2175_v26  ;;  %v1920_v44 = vsub.s32 32, %v5128_v12  ;;  %v1925_v18 = vadd.s32 127, %v1924_v38 }
 0x2bb   : > { %v2189_v59 = vshll.u32 %v6369_v34, %v2174_v15  ;;  %v2190_v53 = vshrl.u32 %v6370_v9, %v2175_v26  ;;  %v2020_v25 = vclz %v3445_v37  ;;  %v5174_v63 = vshrl.u32 %v2117_v1, 30 }
 0x2bc   : > { %v2188_v35 = vor.u32 %v2187_v13, %v2186_v22  ;;  %v1554_v33 = vshrl.u32 %v6374_v46, %v4908_v36  ;;  %vm2192_vm4 = vcmp.lt.s32.totalorder %v2173_v17, 1  ;;  %vm2195_vm3 = vcmp.lt.s32.totalorder %v2173_v17, 4 }
 0x2bd   : > { %v2191_v61 = vor.u32 %v2190_v53, %v2189_v59  ;;  %v2208_v47 = vshll.u32 %v2168_v5, 8  ;;  %v2197_v21 = vsel %vm2195_vm3, %v2185_v42, 2102212464  ;;  %v2200_v30 = vsel %vm2192_vm4, %v2179_v56, %v2182_v40 }
 0x2be   : > { %v1556_v38 = vshll.u32 %v6374_v46, %v4894_v43  ;;  %v1557_v15 = vshrl.u32 %v6371_v48, %v4908_v36  ;;  %v2176_v37 = vshrl.u32 %v6367_v27, %v2175_v26  ;;  %vm2194_vm5 = vcmp.lt.s32.totalorder %v2173_v17, 3 }
 0x2bf   : > { %v2201_v1 = vsel %vm2195_vm3, %v2188_v35, 920167782  ;;  %v2204_v22 = vsel %vm2192_vm4, %v2182_v40, %v2185_v42  ;;  %v2119_v13 = vshll.u32 %v5174_v63, 30  ;;  %vm2193_vm12 = vcmp.lt.s32.totalorder %v2173_v17, 2 }
 0x2c0   : > { %v2202_v59 = vsel %vm2194_vm5, %v2185_v42, %v2201_v1  ;;  %v2205_v53 = vsel %vm2195_vm3, %v2191_v61, 1326507024  ;;  %v2196_v20 = vsel %vm2192_vm4, %v2176_v37, %v2179_v56  ;;  %v2198_v5 = vsel %vm2194_vm5, %v2182_v40, %v2197_v21 }
 0x2c1   : > { %v2203_v9 = vsel %vm2193_vm12, %v2200_v30, %v2202_v59  ;;  %v2206_v34 = vsel %vm2194_vm5, %v2188_v35, %v2205_v53  ;;  %v3446_v62 = vadd.s32 4294967294, %v2020_v25  ;;  %v1559_v31 = vshll.u32 %v6371_v48, %v4894_v43 }
 0x2c2   : > { %v2207_v45 = vsel %vm2193_vm12, %v2204_v22, %v2206_v34  ;;  %v5184_v11 = vmul.u32.u64.low %v2208_v47, %v2203_v9  ;;  %v5185_v16 = vmul.u32.u64.high %v2208_v47, %v2203_v9, %v5184_v11  ;;  %v1560_v17 = vshrl.u32 %v6368_v54, %v4908_v36 }
 0x2c3   : > { %v5188_v60 = vmul.u32.u64.low %v2208_v47, %v2207_v45  ;;  %v5189_v26 = vmul.u32.u64.high %v2208_v47, %v2207_v45, %v5188_v60  ;;  %v5195_v42 = vsub.s32 %v2116_v8, %v2119_v13  ;;  %v2199_v56 = vsel %vm2193_vm12, %v2196_v20, %v2198_v5 }
 0x2c4   : > { %v1555_v40 = vor.u32 %v1554_v33, %v1553_v19  ;;  %v1558_v35 = vor.u32 %v1557_v15, %v1556_v38  ;;  %v1510_v34 = vshll.u32 %v5152_v51, 23  ;;  %v1712_v9 = vsub.s32 32, %v5126_v6 }
 0x2c5   : > { %v5199_v25 = vadd.s32 127, %v1716_v57  ;;  %v1561_v61 = vor.u32 %v1560_v17, %v1559_v31  ;;  %v1921_v45 = vshll.u32 %v5022_v41, %v5128_v12  ;;  %v1922_v43 = vshrl.u32 %v5157_v2, %v1920_v44 }
 0x2c6   : > { %v1926_v60 = vshll.u32 %v1925_v18, 23  ;;  %v2218_v36 = vadd.s32 1, %v5185_v16  ;;  %vm3447_vm1 = vcmp.lt.s32.totalorder %v3446_v62, 0  ;;  %v2215_v8 = vmul.u32 %v2208_v47, %v2199_v56 }
 0x2c7   : > { %vm2217_vm6 = vc.u32 %v5189_v26, %v5184_v11  ;;  %vm1568_vm9 = vcmp.lt.s32.totalorder %v4982_v7, 1  ;;  %v2122_v51 = vsub.s32 0, %v5195_v42  ;;  %vm1570_vm10 = vcmp.lt.s32.totalorder %v4982_v7, 3 }
 0x2c8   : > { %v2219_v57 = vsel %vm2217_vm6, %v2218_v36, %v5185_v16  ;;  %v1576_v41 = vsel %vm1568_vm9, %v1555_v40, %v1558_v35  ;;  %v1573_v18 = vsel %vm1571_vm8, %v1561_v61, 2102212464  ;;  %v1578_v44 = vsel %vm1570_vm10, %v1561_v61, %v5041_v32 }
 0x2c9   : > { %v2220_v31 = vadd.s32 %v2219_v57, %v2215_v8  ;;  %v1580_v12 = vsel %vm1568_vm9, %v1558_v35, %v1561_v61  ;;  %v5220_v2 = vor.u32 %v1922_v43, %v1921_v45  ;;  %v5222_v19 = vor.u32 4788187, %v1926_v60 }
 0x2ca   : > { %v5224_v16 = vsel %vm3447_vm1, 0, %v3446_v62  ;;  %vm1569_vm11 = vcmp.lt.s32.totalorder %v4982_v7, 2  ;;  %v1582_v32 = vsel %vm1570_vm10, %v4992_v52, %v5045_v39  ;;  %v6427_v21 = vor.u32 8388608, %v4987_v24 }
 0x2cb   : > { %v2221_v33 = vadd.s32 536870912, %v2220_v31  ;;  %v1579_v47 = vsel %vm1569_vm11, %v1576_v41, %v1578_v44  ;;  %v3449_v38 = vmin.u32 %v2122_v51, %v5195_v42  ;;  %v1572_v62 = vsel %vm1568_vm9, %v5150_v0, %v1555_v40 }
 0x2cc   : > { %v1584_v30 = vshll.u32 %v6427_v21, 8  ;;  %v1574_v15 = vsel %vm1570_vm10, %v1558_v35, %v1573_v18  ;;  %v1583_v37 = vsel %vm1569_vm11, %v1580_v12, %v1582_v32  ;;  %v1744_v24 = vand.u32 2147483647, %v4828_v23 }
 0x2cd   : > { %v5243_v1 = vshrl.u32 %v2221_v33, 30  ;;  %v5249_v52 = vor.u32 4788187, %v1510_v34  ;;  %v5252_v39 = vshrl.u32 %v5120_v3, %v1712_v9  ;;  %v1718_v53 = vshll.u32 %v5199_v25, 23 }
 0x2ce   : > { %v5245_v22 = vmul.u32.u64.low %v1584_v30, %v1583_v37  ;;  %v5246_v13 = vmul.u32.u64.high %v1584_v30, %v1583_v37, %v5245_v22  ;;  %v5254_v59 = vmul.u32.u64.low %v1584_v30, %v1579_v47  ;;  %v5255_v0 = vmul.u32.u64.high %v1584_v30, %v1579_v47, %v5254_v59 }
 0x2cf   : > { %v1930_v20 = vcvt.s32.f32 %v5220_v2  ;;  %v2008_v5 = vadd.s32 %v5026_v4, %v5032_v58  ;;  %v2223_v17 = vshll.u32 %v5243_v1, 30  ;;  %v1928_v56 = vand.u32 2147483647, %v5222_v19 }
 0x2d0   : > { %v2028_v40 = vsub.s32 4294967266, %v5224_v16  ;;  %v1575_v3 = vsel %vm1569_vm11, %v1572_v62, %v1574_v15  ;;  %v1762_v35 = vshrl.u32 %v6374_v46, %v5054_v49  ;;  %v2124_v34 = vclz %v3449_v38 }
 0x2d1   : > { %v5269_v9 = vsub.s32 %v2220_v31, %v2223_v17  ;;  %vm1593_vm8 = vc.u32 %v5246_v13, %v5254_v59  ;;  %v1751_v4 = vand.u32 8388607, %v1744_v24  ;;  %v1594_v58 = vadd.s32 1, %v5255_v0 }
 0x2d2   : > { %v1761_v61 = vshll.u32 %v6367_v27, %v4997_v55  ;;  %v1764_v7 = vshll.u32 %v6374_v46, %v4997_v55  ;;  %v1765_v45 = vshrl.u32 %v6371_v48, %v5054_v49  ;;  %v1591_v60 = vmul.u32 %v1584_v30, %v1575_v3 }
 0x2d3   : > { %v2226_v43 = vsub.s32 0, %v5269_v9  ;;  %v1767_v36 = vshll.u32 %v6371_v48, %v4997_v55  ;;  %v1768_v8 = vshrl.u32 %v6368_v54, %v5054_v49  ;;  %v2029_v51 = vadd.s32 127, %v2028_v40 }
 0x2d4   : > { %v1595_v57 = vsel %vm1593_vm8, %v1594_v58, %v5255_v0  ;;  %v1763_v41 = vor.u32 %v1762_v35, %v1761_v61  ;;  %v1766_v31 = vor.u32 %v1765_v45, %v1764_v7  ;;  %v2024_v18 = vsub.s32 32, %v5224_v16 }
 0x2d5   : > { %v3453_v44 = vmin.u32 %v2226_v43, %v5269_v9  ;;  %v1596_v12 = vadd.s32 %v1595_v57, %v1591_v60  ;;  %v1769_v19 = vor.u32 %v1768_v8, %v1767_v36  ;;  %v2025_v33 = vshll.u32 %v5113_v14, %v5224_v16  ;;  %v6428_v36 = vld [vmem:[#allocation2_spill] sm:$0xff]  ;;  %v6429_v8 = vld [vmem:[#allocation16_spill] sm:$0xff] }
 0x2d6   : > { %v3450_v47 = vadd.s32 4294967294, %v2124_v34  ;;  %v1752_v32 = vor.u32 8388608, %v1751_v4  ;;  %vm1778_vm14 = vcmp.lt.s32.totalorder %v5080_v10, 3  ;;  %vm1776_vm15 = vcmp.lt.s32.totalorder %v5080_v10, 1  ;;  %v6431_v57 = vld [vmem:[#allocation18_spill] sm:$0xff] }
 0x2d7   : > { %v2228_v55 = vclz %v3453_v44  ;;  %v1597_v21 = vadd.s32 536870912, %v1596_v12  ;;  %v1790_v30 = vsel %vm1778_vm14, %v5111_v50, %v5139_v28  ;;  %v2030_v38 = vshll.u32 %v2029_v51, 23  ;;  %v6432_v44 = vld [vmem:[#allocation11_spill] sm:$0xff] }
 0x2d8   : > { %v1784_v62 = vsel %vm1776_vm15, %v1763_v41, %v1766_v31  ;;  %v1786_v14 = vsel %vm1778_vm14, %v1769_v19, %v5135_v29  ;;  %v1788_v16 = vsel %vm1776_vm15, %v1766_v31, %v1769_v19  ;;  %v2026_v15 = vshrl.u32 %v2008_v5, %v2024_v18 }
 0x2d9   : > { %v3454_v37 = vadd.s32 4294967294, %v2228_v55  ;;  %v5305_v22 = vshrl.u32 %v1597_v21, 30  ;;  %vm1777_vm0 = vcmp.lt.s32.totalorder %v5080_v10, 2  ;;  %vm3451_vm2 = vcmp.lt.s32.totalorder %v3450_v47, 0 }
 0x2da   : > { %v1781_v50 = vsel %vm1779_vm13, %v1769_v19, 2102212464  ;;  %v1791_v28 = vsel %vm1777_vm0, %v1788_v16, %v1790_v30  ;;  %v1792_v0 = vshll.u32 %v1752_v32, 8  ;;  %v1760_v17 = vshrl.u32 %v6367_v27, %v5054_v49  ;;  %v6433_v19 = vld [vmem:[#allocation8_spill] sm:$0xff]  ;;  %v6437_v16 = vld [vmem:[#allocation5_spill] sm:$0xff] }
 0x2db   : > { %vm3455_vm4 = vcmp.lt.s32.totalorder %v3454_v37, 0  ;;  %v1599_v29 = vshll.u32 %v5305_v22, 30  ;;  %v1787_v5 = vsel %vm1777_vm0, %v1784_v62, %v1786_v14  ;;  %v2031_v40 = vor.u32 4788187, %v2030_v38 }
 0x2dc   : > { %v5317_v3 = vsel %vm3455_vm4, 0, %v3454_v37  ;;  %v5319_v35 = vmul.u32.u64.low %v1792_v0, %v1791_v28  ;;  %v5320_v34 = vmul.u32.u64.high %v1792_v0, %v1791_v28, %v5319_v35  ;;  %v5322_v4 = vsel %vm3451_vm2, 0, %v3450_v47 }
 0x2dd   : > { %v5324_v58 = vsub.s32 %v1596_v12, %v1599_v29  ;;  %v1780_v61 = vsel %vm1776_vm15, %v1760_v17, %v1763_v41  ;;  %v1782_v7 = vsel %vm1778_vm14, %v1766_v31, %v1781_v50  ;;  %v2027_v49 = vor.u32 %v2026_v15, %v2025_v33 }
 0x2de   : > { %v2236_v45 = vsub.s32 4294967266, %v5317_v3  ;;  %v5331_v43 = vmul.u32.u64.low %v1792_v0, %v1787_v5  ;;  %v5332_v60 = vmul.u32.u64.high %v1792_v0, %v1787_v5, %v5331_v43  ;;  %v6430_v51 = vshll.u32 %v6428_v36, %v6429_v8 }
 0x2df   : > { %v1713_v12 = vshll.u32 %v6432_v44, %v5126_v6  ;;  %v1931_v41 = vmul.f32 %v1930_v20, %v1928_v56  ;;  %v1602_v31 = vsub.s32 0, %v5324_v58  ;;  %vm1850_vm13 = vcmp.lt.s32.totalorder %v6433_v19, 0 }
 0x2e0   : > { %v1507_v18 = vor.u32 %v6431_v57, %v6430_v51  ;;  %v2032_v33 = vand.u32 2147483647, %v2031_v40  ;;  %v2132_v47 = vsub.s32 4294967266, %v5322_v4  ;;  %v1783_v32 = vsel %vm1777_vm0, %v1780_v61, %v1782_v7  ;;  %v6438_v7 = vld [vmem:[#allocation17_spill] sm:$0xff] }
 0x2e1   : > { %v1512_v55 = vand.u32 2147483647, %v5249_v52  ;;  %v1715_v21 = vor.u32 %v5252_v39, %v1713_v12  ;;  %v3429_v30 = vmin.u32 %v1602_v31, %v5324_v58  ;;  %vm1801_vm3 = vc.u32 %v5320_v34, %v5331_v43 }
 0x2e2   : > { %v1719_v6 = vor.u32 4788187, %v1718_v53  ;;  %v6434_v2 = vand.u32 2147483647, %v6433_v19  ;;  %v2034_v10 = vcvt.s32.f32 %v2027_v49  ;;  %v2237_v56 = vadd.s32 127, %v2236_v45  ;;  %v6439_v49 = vld [vmem:[#allocation15_spill] sm:$0xff] }
 0x2e3   : > { %v1802_v52 = vadd.s32 1, %v5332_v60  ;;  %v1514_v38 = vcvt.s32.f32 %v1507_v18  ;;  %v1932_v39 = vxor.u32 2147483648, %v1931_v41  ;;  %v1604_v62 = vclz %v3429_v30 }
 0x2e4   : > { %vm5357_vm5 = vcmp.le.f32.partialorder %v6434_v2, 0.7853982  ;;  %v1799_v14 = vmul.u32 %v1792_v0, %v1783_v32  ;;  %vm1954_vm12 = vcmp.lt.s32.totalorder %v6437_v16, 0  ;;  %v2035_v15 = vmul.f32 %v2034_v10, %v2032_v33 }
 0x2e5   : > { %v2133_v37 = vadd.s32 127, %v2132_v47  ;;  %v2232_v25 = vsub.s32 32, %v5317_v3  ;;  %v1803_v53 = vsel %vm1801_vm3, %v1802_v52, %v5332_v60  ;;  %v1515_v50 = vmul.f32 %v1514_v38, %v1512_v55  ;;  %v6440_v60 = vld [vmem:[#allocation4_spill] sm:$0xff] }
 0x2e6   : > { %v2128_v28 = vsub.s32 32, %v5322_v4  ;;  %v3430_v29 = vadd.s32 4294967294, %v1604_v62  ;;  %v1804_v17 = vadd.s32 %v1803_v53, %v1799_v14  ;;  %v1720_v5 = vand.u32 2147483647, %v1719_v6  ;;  %v6441_v52 = vld [vmem:[#allocation12_spill] sm:$0xff] }
 0x2e7   : > { %v1722_v40 = vcvt.s32.f32 %v1715_v21  ;;  %v2216_v35 = vadd.s32 %v5184_v11, %v5189_v26  ;;  %v2238_v61 = vshll.u32 %v2237_v56, 23  ;;  %v1933_v0 = vsel %vm1850_vm13, %v1932_v39, %v1931_v41 }
 0x2e8   : > { %v2112_v45 = vadd.s32 %v6439_v49, %v6438_v7  ;;  %vm3431_vm1 = vcmp.lt.s32.totalorder %v3430_v29, 0  ;;  %v1805_v36 = vadd.s32 536870912, %v1804_v17  ;;  %vm1434_vm6 = vcmp.lt.s32.totalorder %v6440_v60, 0 }
 0x2e9   : > { %v2036_v8 = vxor.u32 2147483648, %v2035_v15  ;;  %v2134_v51 = vshll.u32 %v2133_v37, 23  ;;  %v2234_v57 = vshrl.u32 %v2216_v35, %v2232_v25  ;;  %v1607_v18 = vsel %vm3431_vm1, 0, %v3430_v29 }
 0x2ea   : > { %v2130_v44 = vshrl.u32 %v2112_v45, %v2128_v28  ;;  %v1592_v12 = vadd.s32 %v5254_v59, %v5246_v13  ;;  %v1608_v11 = vsub.s32 32, %v1607_v18  ;;  %v1612_v26 = vsub.s32 4294967266, %v1607_v18 }
 0x2eb   : > { %v1723_v31 = vmul.f32 %v1722_v40, %v1720_v5  ;;  %v2233_v41 = vshll.u32 %v5269_v9, %v5317_v3  ;;  %v2239_v33 = vor.u32 4788187, %v2238_v61  ;;  %v5377_v47 = vshrl.u32 %v1805_v36, 30  ;;  %v6445_v61 = vld [vmem:[#allocation9_spill] sm:$0xff] }
 0x2ec   : > { %v1936_v32 = vsel %vm5357_vm5, %v6433_v19, %v1933_v0  ;;  %v2129_v55 = vshll.u32 %v5195_v42, %v5322_v4  ;;  %v1610_v21 = vshrl.u32 %v1592_v12, %v1608_v11  ;;  %v1613_v30 = vadd.s32 127, %v1612_v26 }
 0x2ed   : > { %v2135_v6 = vor.u32 4788187, %v2134_v51  ;;  %v2235_v13 = vor.u32 %v2234_v57, %v2233_v41  ;;  %v1609_v59 = vshll.u32 %v5324_v58, %v1607_v18  ;;  %v1807_v2 = vshll.u32 %v5377_v47, 30  ;;  %v6449_v57 = vld [vmem:[#allocation6_spill] sm:$0xff]  ;;  %v6450_v18 = vld [vmem:[#allocation3_spill] sm:$0xff] }
 0x2ee   : > { %v1516_v10 = vxor.u32 2147483648, %v1515_v50  ;;  %v2037_v9 = vsel %vm1954_vm12, %v2036_v8, %v2035_v15  ;;  %v2131_v3 = vor.u32 %v2130_v44, %v2129_v55  ;;  %v1614_v56 = vshll.u32 %v1613_v30, 23 }
 0x2ef   : > { %vm1642_vm9 = vcmp.lt.s32.totalorder %v6441_v52, 0  ;;  %v2240_v38 = vand.u32 2147483647, %v2239_v33  ;;  %v1611_v39 = vor.u32 %v1610_v21, %v1609_v59  ;;  %v5389_v62 = vsub.s32 %v1804_v17, %v1807_v2 }
 0x2f0   : > { %v1724_v42 = vxor.u32 2147483648, %v1723_v31  ;;  %3672 = vcosq.f32 %v1936_v32  ;;  %v6442_v4 = vand.u32 2147483647, %v6437_v16  ;;  %v1615_v14 = vor.u32 4788187, %v1614_v56  ;;  %v6461_v56 = vld [vmem:[#allocation7_spill] sm:$0xff] }
 0x2f1   : > { %v2136_v37 = vand.u32 2147483647, %v2135_v6  ;;  %v2242_v25 = vcvt.s32.f32 %v2235_v13  ;;  %v1810_v53 = vsub.s32 0, %v5389_v62  ;;  %v1517_v28 = vsel %vm1434_vm6, %v1516_v10, %v1515_v50 }
 0x2f2   : > { %vm5393_vm10 = vcmp.le.f32.partialorder %v6442_v4, 0.7853982  ;;  %3674 = vsinq.f32 %v1936_v32  ;;  %v2138_v29 = vcvt.s32.f32 %v2131_v3  ;;  %v1616_v17 = vand.u32 2147483647, %v1615_v14  ;;  %v6457_v32 = vld [vmem:[#allocation13_spill] sm:$0xff] }
 0x2f3   : > { %v2040_v15 = vsel %vm5393_vm10, %v6437_v16, %v2037_v9  ;;  %v2243_v5 = vmul.f32 %v2242_v25, %v2240_v38  ;;  %v1618_v40 = vcvt.s32.f32 %v1611_v39  ;;  %v3437_v35 = vmin.u32 %v1810_v53, %v5389_v62 }
 0x2f4   : > { %v1518_v0 = vsub.s32 4, %v6445_v61  ;;  %v1725_v7 = vsel %vm1642_vm9, %v1724_v42, %v1723_v31  ;;  %3676 = vcosq.f32 %v2040_v15  ;;  %v6446_v49 = vand.u32 2147483647, %v6440_v60 }
 0x2f5   : > { %v2139_v50 = vmul.f32 %v2138_v29, %v2136_v37  ;;  %v1619_v36 = vmul.f32 %v1618_v40, %v1616_v17  ;;  %v1812_v8 = vclz %v3437_v35  ;;  %3678 = vsinq.f32 %v2040_v15 }
 0x2f6   : > { %vm5409_vm11 = vcmp.le.f32.partialorder %v6446_v49, 0.7853982  ;;  %vm2058_vm8 = vcmp.lt.s32.totalorder %v6449_v57, 0  ;;  %v6451_v44 = vand.u32 2147483647, %v6450_v18  ;;  %vm1538_vm15 = vcmp.lt.s32.totalorder %v6450_v18, 0 }
 0x2f7   : > { %v1520_v51 = vsel %vm5409_vm11, %v6440_v60, %v1517_v28  ;;  %v2244_v11 = vxor.u32 2147483648, %v2243_v5  ;;  %v3438_v26 = vadd.s32 4294967294, %v1812_v8  ;;  %v1519_v31 = vsel %vm1434_vm6, %v1518_v0, %v6445_v61 }
 0x2f8   : > { %vm5419_vm14 = vcmp.le.f32.partialorder %v6451_v44, 0.7853982  ;;  %v6454_v41 = vand.u32 2147483647, %v6441_v52  ;;  %vm2162_vm2 = vcmp.lt.s32.totalorder %v6457_v32, 0  ;;  %v1622_v55 = vsub.s32 4, %v5305_v22 }
 0x2f9   : > { %3680 = vcosq.f32 %v1520_v51  ;;  %v6458_v30 = vand.u32 2147483647, %v6449_v57  ;;  %v2140_v13 = vxor.u32 2147483648, %v2139_v50  ;;  %v1620_v59 = vxor.u32 2147483648, %v1619_v36 }
 0x2fa   : > { %vm5429_vm0 = vcmp.le.f32.partialorder %v6454_v41, 0.7853982  ;;  %vm3439_vm3 = vcmp.lt.s32.totalorder %v3438_v26, 0  ;;  %3682 = vsinq.f32 %v1520_v51  ;;  %v5444_v2 = vpop.eup %3672  ;;  %v1800_v10 = vadd.s32 %v5331_v43, %v5320_v34 }
 0x2fb   : > { %v1728_v21 = vsel %vm5429_vm0, %v6441_v52, %v1725_v7  ;;  %vm5440_vm4 = vcmp.le.f32.partialorder %v6458_v30, 0.7853982  ;;  %v1815_v9 = vsel %vm3439_vm3, 0, %v3438_v26  ;;  %v1521_v3 = vsel %vm5409_vm11, 0, %v1519_v31  ;;  %v6465_v7 = vld [vmem:[#allocation14_spill] sm:$0xff] }
 0x2fc   : > { %v1726_v38 = vsub.s32 4, %v6461_v56  ;;  %v2245_v39 = vsel %vm2162_vm2, %v2244_v11, %v2243_v5  ;;  %v1816_v42 = vsub.s32 32, %v1815_v9  ;;  %v1820_v4 = vsub.s32 4294967266, %v1815_v9  ;;  %v5453_v14 = vpop.eup %3674 }
 0x2fd   : > { %3684 = vcosq.f32 %v1728_v21  ;;  %v6462_v15 = vand.u32 2147483647, %v6457_v32  ;;  %v1623_v34 = vsel %vm1538_vm15, %v1622_v55, %v5305_v22  ;;  %v1830_v43 = vsub.s32 4, %v5377_v47 }
 0x2fe   : > { %3686 = vsinq.f32 %v1728_v21  ;;  %v1621_v25 = vsel %vm1538_vm15, %v1620_v59, %v1619_v36  ;;  %v1817_v53 = vshll.u32 %v5389_v62, %v1815_v9  ;;  %v1818_v28 = vshrl.u32 %v1800_v10, %v1816_v42  ;;  %v5468_v17 = vpop.eup %3676 }
 0x2ff   : > { %vm5457_vm1 = vcmp.le.f32.partialorder %v6462_v15, 0.7853982  ;;  %v1821_v29 = vadd.s32 127, %v1820_v4  ;;  %v2141_v5 = vsel %vm2058_vm8, %v2140_v13, %v2139_v50  ;;  %v1525_v22 = vadd.s32 3, %v1521_v3  ;;  %v5481_v45 = vpop.eup %3678 }
 0x300   : > { %v2248_v40 = vsel %vm5457_vm1, %v6457_v32, %v2245_v39  ;;  %v1727_v35 = vsel %vm1642_vm9, %v1726_v38, %v6461_v56  ;;  %v1625_v61 = vsel %vm5419_vm14, 0, %v1623_v34  ;;  %v1819_v62 = vor.u32 %v1818_v28, %v1817_v53  ;;  %v6468_v34 = vld [vmem:[#allocation10_spill] sm:$0xff] }
 0x301   : > { %v1822_v0 = vshll.u32 %v1821_v29, 23  ;;  %v2038_v49 = vsub.s32 4, %v6465_v7  ;;  %v1624_v50 = vsel %vm5419_vm14, %v6450_v18, %v1621_v25  ;;  %vm5488_vm6 = vcmp.le.f32.partialorder %v1744_v24, 0.7853982 }
 0x302   : > { %vm1746_vm9 = vcmp.lt.s32.totalorder %v4828_v23, 0  ;;  %v2246_v8 = vsub.s32 4, %v5243_v1  ;;  %3688 = vcosq.f32 %v2248_v40  ;;  %v1729_v12 = vsel %vm5429_vm0, 0, %v1727_v35 }
 0x303   : > { %v1823_v51 = vor.u32 4788187, %v1822_v0  ;;  %v1831_v44 = vsel %vm1746_vm9, %v1830_v43, %v5377_v47  ;;  %v3681_v11 = vpop.eup %3680  ;;  %v2144_v24 = vsel %vm5440_vm4, %v6449_v57, %v2141_v5  ;;  %3690 = vsinq.f32 %v2248_v40 }
 0x304   : > { %v1629_v26 = vadd.s32 3, %v1625_v61  ;;  %v1526_v31 = vand.u32 3, %v1525_v22  ;;  %v3683_v41 = vpop.eup %3682  ;;  %3692 = vcosq.f32 %v1624_v50  ;;  %v1826_v21 = vcvt.s32.f32 %v1819_v62 }
 0x305   : > { %v1824_v55 = vand.u32 2147483647, %v1823_v51  ;;  %v2039_v30 = vsel %vm1954_vm12, %v2038_v49, %v6465_v7  ;;  %3694 = vsinq.f32 %v1624_v50  ;;  %v1833_v47 = vsel %vm5488_vm6, 0, %v1831_v44 }
 0x306   : > { %v1733_v33 = vadd.s32 3, %v1729_v12  ;;  %v2247_v13 = vsel %vm2162_vm2, %v2246_v8, %v5243_v1  ;;  %3696 = vcosq.f32 %v2144_v24  ;;  %v2142_v9 = vsub.s32 4, %v5174_v63 }
 0x307   : > { %v3685_v59 = vpop.eup %3684  ;;  %v1827_v10 = vmul.f32 %v1826_v21, %v1824_v55  ;;  %3698 = vsinq.f32 %v2144_v24  ;;  %v1529_v56 = vxor.u32 2147483648, %v3683_v41  ;;  %v1532_v38 = vxor.u32 2147483648, %v3681_v11 }
 0x308   : > { %v3687_v3 = vpop.eup %3686  ;;  %v2041_v39 = vsel %vm5393_vm10, 0, %v2039_v30  ;;  %v1837_v4 = vadd.s32 3, %v1833_v47  ;;  %v2249_v15 = vsel %vm5457_vm1, 0, %v2247_v13  ;;  %v1934_v43 = vsub.s32 4, %v6468_v34 }
 0x309   : > { %v1828_v42 = vxor.u32 2147483648, %v1827_v10  ;;  %v5516_v1 = vand.u32 3, %v1629_v26  ;;  %vm1531_vm12 = vcmp.eq.s32.totalorder %v1526_v31, 2  ;;  %v1734_v25 = vand.u32 3, %v1733_v33 }
 0x30a   : > { %v1740_v53 = vxor.u32 2147483648, %v3685_v59  ;;  %v1737_v29 = vxor.u32 2147483648, %v3687_v3  ;;  %v2045_v5 = vadd.s32 3, %v2041_v39  ;;  %v2143_v58 = vsel %vm2058_vm8, %v2142_v9, %v5174_v63 }
 0x30b   : > { %v1829_v28 = vsel %vm1746_vm9, %v1828_v42, %v1827_v10  ;;  %vm1528_vm10 = vcmp.eq.s32.totalorder %v1526_v31, 0  ;;  %v1533_v40 = vsel %vm1531_vm12, %v1532_v38, %v3683_v41  ;;  %vm1732_vm11 = vweird.f32 %v6441_v52 }
 0x30c   : > { %v1832_v37 = vsel %vm5488_vm6, %v4828_v23, %v1829_v28  ;;  %v2253_v22 = vadd.s32 3, %v2249_v15  ;;  %v3689_v35 = vpop.eup %3688  ;;  %v5527_v61 = vand.u32 3, %v1837_v4  ;;  %v1530_v62 = vsel %vm1528_vm10, %v3681_v11, %v1529_v56 }
 0x30d   : > { %3700 = vcosq.f32 %v1832_v37  ;;  %v1935_v0 = vsel %vm1850_vm13, %v1934_v43, %v6468_v34  ;;  %v3691_v7 = vpop.eup %3690  ;;  %vm1632_vm8 = vcmp.eq.s32.totalorder %v5516_v1, 0  ;;  %vm1635_vm14 = vcmp.eq.s32.totalorder %v5516_v1, 2 }
 0x30e   : > { %3702 = vsinq.f32 %v1832_v37  ;;  %vm1736_vm15 = vcmp.eq.s32.totalorder %v1734_v25, 0  ;;  %vm1739_vm0 = vcmp.eq.s32.totalorder %v1734_v25, 2  ;;  %v2145_v63 = vsel %vm5440_vm4, 0, %v2143_v58  ;;  %v3693_v49 = vpop.eup %3692 }
 0x30f   : > { %vm1527_vm2 = vcmp.lt.s32.totalorder %v1526_v31, 2  ;;  %v1738_v50 = vsel %vm1736_vm15, %v3685_v59, %v1737_v29  ;;  %v1741_v36 = vsel %vm1739_vm0, %v1740_v53, %v3687_v3  ;;  %v2046_v8 = vand.u32 3, %v2045_v5  ;;  %v3695_v51 = vpop.eup %3694 }
 0x310   : > { %v5536_v44 = vsel %vm1527_vm2, %v1530_v62, %v1533_v40  ;;  %v2049_v12 = vxor.u32 2147483648, %v5481_v45  ;;  %v2254_v11 = vand.u32 3, %v2253_v22  ;;  %v1937_v24 = vsel %vm5357_vm5, 0, %v1935_v0  ;;  %v3697_v26 = vpop.eup %3696 }
 0x311   : > { %vm1631_vm13 = vcmp.lt.s32.totalorder %v5516_v1, 2  ;;  %vm1735_vm3 = vcmp.lt.s32.totalorder %v1734_v25, 2  ;;  %v2257_v6 = vxor.u32 2147483648, %v3691_v7  ;;  %v2260_v41 = vxor.u32 2147483648, %v3689_v35  ;;  %v3699_v31 = vpop.eup %3698 }
 0x312   : > { %v2149_v55 = vadd.s32 3, %v2145_v63  ;;  %vm1843_vm1 = vcmp.eq.s32.totalorder %v5527_v61, 2  ;;  %v1742_v21 = vsel %vm1735_vm3, %v1738_v50, %v1741_v36  ;;  %v2052_v30 = vxor.u32 2147483648, %v5468_v17 }
 0x313   : > { %vm2252_vm6 = vweird.f32 %v6457_v32  ;;  %v1633_v47 = vxor.u32 2147483648, %v3695_v51  ;;  %v1636_v20 = vxor.u32 2147483648, %v3693_v49  ;;  %vm1839_vm5 = vcmp.lt.s32.totalorder %v5527_v61, 2 }
 0x314   : > { %vm2047_vm9 = vcmp.lt.s32.totalorder %v2046_v8, 2  ;;  %v1941_v33 = vadd.s32 3, %v1937_v24  ;;  %vm1628_vm12 = vweird.f32 %v6450_v18  ;;  %vm1836_vm10 = vweird.f32 %v4828_v23 }
 0x315   : > { %vm2044_vm15 = vweird.f32 %v6437_v16  ;;  %vm2048_vm0 = vcmp.eq.s32.totalorder %v2046_v8, 0  ;;  %vm2051_vm2 = vcmp.eq.s32.totalorder %v2046_v8, 2  ;;  %vm2256_vm7 = vcmp.eq.s32.totalorder %v2254_v11, 0  ;;  %v2267_v8 = vld [vmem:[%s6270_s5 + $0x18] sm:$0xff] }
 0x316   : > { %vm2259_vm3 = vcmp.eq.s32.totalorder %v2254_v11, 2  ;;  %v1743_v13 = vsel %vm1732_vm11, nan, %v1742_v21  ;;  %v2258_v59 = vsel %vm2256_vm7, %v3689_v35, %v2257_v6  ;;  %v2150_v9 = vand.u32 3, %v2149_v55 }
 0x317   : > { %v2261_v10 = vsel %vm2259_vm3, %v2260_v41, %v3691_v7  ;;  %v2050_v3 = vsel %vm2048_vm0, %v5468_v17, %v2049_v12  ;;  %v2053_v56 = vsel %vm2051_vm2, %v2052_v30, %v5481_v45  ;;  %v2153_v38 = vxor.u32 2147483648, %v3699_v31  ;;  %v3701_v42 = vpop.eup %3700  ;;  %v2280_v41 = vpop.permute.xlu1 %2279 }
 0x318   : > { %v2156_v39 = vxor.u32 2147483648, %v3697_v26  ;;  %v1634_v4 = vsel %vm1632_vm8, %v3693_v49, %v1633_v47  ;;  %v1637_v15 = vsel %vm1635_vm14, %v1636_v20, %v3695_v51  ;;  %vm2255_vm4 = vcmp.lt.s32.totalorder %v2254_v11, 2  ;;  %v3703_v52 = vpop.eup %3702  ;;  %v2275_v51 = vpop.permute.xlu0 %2274 }
 0x319   : > { %v1942_v34 = vand.u32 3, %v1941_v33  ;;  %v1844_v43 = vxor.u32 2147483648, %v3701_v42  ;;  %v2262_v25 = vsel %vm2255_vm4, %v2258_v59, %v2261_v10  ;;  %v1945_v53 = vxor.u32 2147483648, %v5453_v14 }
 0x31a   : > { %v1948_v17 = vxor.u32 2147483648, %v5444_v2  ;;  %v1841_v28 = vxor.u32 2147483648, %v3703_v52  ;;  %v2054_v45 = vsel %vm2047_vm9, %v2050_v3, %v2053_v56  ;;  %vm2152_vm7 = vcmp.eq.s32.totalorder %v2150_v9, 0 }
 0x31b   : > { %vm2155_vm11 = vcmp.eq.s32.totalorder %v2150_v9, 2  ;;  %v1638_v29 = vsel %vm1631_vm13, %v1634_v4, %v1637_v15  ;;  %v1845_v5 = vsel %vm1843_vm1, %v1844_v43, %v3703_v52  ;;  %v2154_v58 = vsel %vm2152_vm7, %v3697_v26, %v2153_v38 }
 0x31c   : > { %v2157_v37 = vsel %vm2155_vm11, %v2156_v39, %v3699_v31  ;;  %vm6469_vm8 = vcmp.eq.s32.totalorder %v5527_v61, 0  ;;  %v2263_v22 = vsel %vm2252_vm6, nan, %v2262_v25  ;;  %vm1944_vm14 = vcmp.eq.s32.totalorder %v1942_v34, 0 }
 0x31d   : > { %v1842_v40 = vsel %vm6469_vm8, %v3701_v42, %v1841_v28  ;;  %vm1947_vm4 = vcmp.eq.s32.totalorder %v1942_v34, 2  ;;  %v1946_v62 = vsel %vm1944_vm14, %v5444_v2, %v1945_v53  ;;  %vm2151_vm13 = vcmp.lt.s32.totalorder %v2150_v9, 2 }
 0x31e   : > { %v1846_v35 = vsel %vm1839_vm5, %v1842_v40, %v1845_v5  ;;  %v1949_v1 = vsel %vm1947_vm4, %v1948_v17, %v5453_v14  ;;  %v1639_v0 = vsel %vm1628_vm12, nan, %v1638_v29  ;;  %v2055_v32 = vsel %vm2044_vm15, nan, %v2054_v45 }
 0x31f   : > { %v1847_v7 = vsel %vm1836_vm10, nan, %v1846_v35  ;;  %v2158_v63 = vsel %vm2151_vm13, %v2154_v58, %v2157_v37  ;;  %vm6470_vm1 = vweird.f32 %v6440_v60  ;;  %v3509_v50 = vpack.c.bf16 %v2263_v22, %v2055_v32  ;;  %v2264_v60 = vld [vmem:[%s6270_s5] sm:$0xff] }
 0x320   : > { %v3505_v49 = vpack.c.bf16 %v1847_v7, %v1639_v0  ;;  %v1535_v61 = vsel %vm6470_vm1, nan, %v5536_v44  ;;  %vm1943_vm6 = vcmp.lt.s32.totalorder %v1942_v34, 2  ;;  %vm2148_vm5 = vweird.f32 %v6449_v57  ;;  %v2265_v57 = vld [vmem:[%s6270_s5 + $0x8] sm:$0xff] }
 0x321   : > { %v3507_v2 = vpack.c.bf16 %v1743_v13, %v1535_v61  ;;  %v1950_v14 = vsel %vm1943_vm6, %v1946_v62, %v1949_v1  ;;  %v2159_v18 = vsel %vm2148_vm5, nan, %v2158_v63  ;;  %vm1940_vm9 = vweird.f32 %v6433_v19  ;;  %v2266_v19 = vld [vmem:[%s6270_s5 + $0x10] sm:$0xff] }
 0x322   : > { %3506 = vmatprep.subr.bf16.mxu1 %v3505_v49  ;;  %v1951_v23 = vsel %vm1940_vm9, nan, %v1950_v14  ;;  %vm6471_vm12 = vcmask 261120   ;;  %v6472_v36 = vmov 0.0   ;;  %v6476_v63 = vmov 920167782  }
 0x323   : > { %3508 = vmatpush1.bf16.msra.mxu1 %v3507_v2  ;;  %v3511_v16 = vpack.c.bf16 %v2159_v18, %v1951_v23  ;;  %vm6473_vm10 = vmmov %vm6471_vm12  ;;  %v6477_v23 = vmov 1326507024  }
 0x324   : > { %3510 = vmatprep.subr.bf16.mxu1 %v3509_v50  ;;  %vm6474_vm15 = vmmov %vm6473_vm10 }
 0x325   : > { %vm6475_vm0 = vmmov %vm6473_vm10 }
 0x327   : > { %3512 = vmatpush1.bf16.msra.mxu1 %v3511_v16 }
 0x32a   : > { %3456 = vmatmul.mubr.msk.f32.vlgmr.msra.gmra.mrb[0].mxu1 %vm6471_vm12, %v2264_v60 }
 0x32b   : > { %2374 = vmatprep.mubr.f32.mxu1 %v6472_v36 }
 0x32e   : > { %3457 = vmatmul.mubr.msk.f32.gmra.mrb[2].mxu1 %vm6473_vm10, %v2265_v57 }
 0x32f   : > { %2380 = vmatprep.mubr.f32.mxu1 %v6472_v36 }
 0x332   : > { %3458 = vmatmul.mubr.msk.f32.gmra.mrb[4].mxu1 %vm6474_vm15, %v2266_v19 }
 0x333   : > { %2386 = vmatprep.mubr.f32.mxu1 %v6472_v36 }
 0x336   : > { %3459 = vmatmul.mubr.msk.f32.gmra.mrb[6].mxu1 %vm6475_vm0, %v2267_v8 }
 0x3fd   : > { %v2370_v44 = vpop.f32.mrb[0].mxu1 }
 0x3fe   : > { %v5604_v12 = vadd.f32 %v2370_v44, %v2275_v51  ;;  %v2372_v11 = vpop.f32.mrb[1].mxu1 }
 0x3ff   : > { %v5606_v24 = vadd.f32 %v2372_v11, %v2275_v51 }
 0x400   : > { %v2393_v26 = vand.u32 2147483647, %v5604_v12  ;;  %v2396_v6 = vand.u32 2139095040, %v5604_v12 }
 0x401   : > { %v2497_v55 = vand.u32 2147483647, %v5606_v24  ;;  %v2500_v31 = vand.u32 2139095040, %v5606_v24  ;;  %v2376_v21 = vpop.f32.mrb[2].mxu1 }
 0x402   : > { %v2397_v30 = vshrl.u32 %v2396_v6, 23  ;;  %v5612_v47 = vadd.f32 %v2376_v21, %v2280_v41  ;;  %v2378_v20 = vpop.f32.mrb[3].mxu1  ;;  %v2400_v33 = vand.u32 8388607, %v2393_v26 }
 0x403   : > { %v2501_v13 = vshrl.u32 %v2500_v31, 23  ;;  %v2504_v59 = vand.u32 8388607, %v2497_v55  ;;  %v5625_v45 = vadd.f32 %v2378_v20, %v2280_v41 }
 0x404   : > { %v3460_v10 = vadd.s32 4294967169, %v2397_v30  ;;  %v2604_v3 = vand.u32 2139095040, %v5612_v47  ;;  %v2401_v39 = vor.u32 8388608, %v2400_v33  ;;  %v6355_v40 = vand.u32 2147483647, %v5612_v47 }
 0x405   : > { %v3464_v9 = vadd.s32 4294967169, %v2501_v13  ;;  %v5619_v56 = vpop.f32.mrb[4].mxu1  ;;  %v2505_v42 = vor.u32 8388608, %v2504_v59 }
 0x406   : > { %v2403_v38 = vadd.s32 1, %v3460_v10  ;;  %v2605_v15 = vshrl.u32 %v2604_v3, 23  ;;  %v5621_v34 = vpop.f32.mrb[5].mxu1  ;;  %v5629_v5 = vshll.u32 %v2401_v39, 8 }
 0x407   : > { %v2507_v4 = vadd.s32 1, %v3464_v9  ;;  %v5633_v37 = vshll.u32 %v2505_v42, 8 }
 0x408   : > { %vm2404_vm2 = vcmp.gt.s32.totalorder %v2403_v38, 0  ;;  %v3468_v43 = vadd.s32 4294967169, %v2605_v15 }
 0x409   : > { %v2405_v52 = vsel %vm2404_vm2, %v2403_v38, 0  ;;  %vm2508_vm3 = vcmp.gt.s32.totalorder %v2507_v4, 0  ;;  %v5623_v25 = vpop.f32.mrb[6].mxu1 }
 0x40a   : > { %v2406_v53 = vshrl.u32 %v2405_v52, 5  ;;  %v2407_v17 = vand.u32 31, %v2405_v52  ;;  %v2509_v28 = vsel %vm2508_vm3, %v2507_v4, 0  ;;  %v5627_v29 = vpop.f32.mrb[7].mxu1  ;;  %v5637_v1 = vadd.s32 1, %v3468_v43 }
 0x40b   : > { %v5631_v58 = vshrl.u32 %v2509_v28, 5  ;;  %v2511_v62 = vand.u32 31, %v2509_v28 }
 0x40c   : > { %v2408_v22 = vsub.s32 32, %v2407_v17  ;;  %v2410_v35 = vshll.u32 %v6367_v27, %v2407_v17  ;;  %v2413_v0 = vshll.u32 %v6374_v46, %v2407_v17  ;;  %v2416_v7 = vshll.u32 %v6371_v48, %v2407_v17 }
 0x40d   : > { %v2419_v32 = vshll.u32 %v6368_v54, %v2407_v17  ;;  %v2422_v49 = vshll.u32 %v6476_v63, %v2407_v17  ;;  %vm2425_vm7 = vcmp.lt.s32.totalorder %v2406_v53, 1  ;;  %vm2426_vm11 = vcmp.lt.s32.totalorder %v2406_v53, 2 }
 0x40e   : > { %v2411_v61 = vshrl.u32 %v6374_v46, %v2408_v22  ;;  %v2414_v50 = vshrl.u32 %v6371_v48, %v2408_v22  ;;  %v2417_v2 = vshrl.u32 %v6368_v54, %v2408_v22  ;;  %v2409_v14 = vshrl.u32 %v6367_v27, %v2408_v22 }
 0x40f   : > { %v2420_v18 = vshrl.u32 %v6476_v63, %v2408_v22  ;;  %v2423_v16 = vshrl.u32 %v6477_v23, %v2408_v22  ;;  %v2512_v19 = vsub.s32 32, %v2511_v62  ;;  %vm2427_vm8 = vcmp.lt.s32.totalorder %v2406_v53, 3 }
 0x410   : > { %v2412_v60 = vor.u32 %v2411_v61, %v2410_v35  ;;  %v2415_v36 = vor.u32 %v2414_v50, %v2413_v0  ;;  %v2418_v57 = vor.u32 %v2417_v2, %v2416_v7  ;;  %vm2428_vm14 = vcmp.lt.s32.totalorder %v2406_v53, 4 }
 0x411   : > { %v2421_v8 = vor.u32 %v2420_v18, %v2419_v32  ;;  %v2424_v51 = vor.u32 %v2423_v16, %v2422_v49  ;;  %v2514_v20 = vshll.u32 %v6367_v27, %v2511_v62  ;;  %v2515_v59 = vshrl.u32 %v6374_v46, %v2512_v19 }
 0x412   : > { %v2429_v44 = vsel %vm2425_vm7, %v2409_v14, %v2412_v60  ;;  %v2430_v11 = vsel %vm2428_vm14, %v2418_v57, 2102212464  ;;  %v2433_v6 = vsel %vm2425_vm7, %v2412_v60, %v2415_v36  ;;  %v2437_v41 = vsel %vm2425_vm7, %v2415_v36, %v2418_v57 }
 0x413   : > { %v2431_v31 = vsel %vm2427_vm8, %v2415_v36, %v2430_v11  ;;  %v2434_v21 = vsel %vm2428_vm14, %v2421_v8, 920167782  ;;  %v2438_v30 = vsel %vm2428_vm14, %v2424_v51, 1326507024  ;;  %v2517_v10 = vshll.u32 %v6374_v46, %v2511_v62 }
 0x414   : > { %v2435_v33 = vsel %vm2427_vm8, %v2418_v57, %v2434_v21  ;;  %v2439_v13 = vsel %vm2427_vm8, %v2421_v8, %v2438_v30  ;;  %v2432_v9 = vsel %vm2426_vm11, %v2429_v44, %v2431_v31  ;;  %v2518_v39 = vshrl.u32 %v6371_v48, %v2512_v19 }
 0x415   : > { %v2436_v3 = vsel %vm2426_vm11, %v2433_v6, %v2435_v33  ;;  %v2440_v38 = vsel %vm2426_vm11, %v2437_v41, %v2439_v13  ;;  %v2516_v43 = vor.u32 %v2515_v59, %v2514_v20  ;;  %v2520_v28 = vshll.u32 %v6371_v48, %v2511_v62 }
 0x416   : > { %v5660_v42 = vmul.u32.u64.low %v5629_v5, %v2440_v38  ;;  %v5661_v4 = vmul.u32.u64.high %v5629_v5, %v2440_v38, %v5660_v42  ;;  %v5664_v15 = vmul.u32.u64.low %v5629_v5, %v2436_v3  ;;  %v5665_v52 = vmul.u32.u64.high %v5629_v5, %v2436_v3, %v5664_v15 }
 0x417   : > { %v2519_v17 = vor.u32 %v2518_v39, %v2517_v10  ;;  %v2521_v22 = vshrl.u32 %v6368_v54, %v2512_v19  ;;  %v2513_v53 = vshrl.u32 %v6367_v27, %v2512_v19  ;;  %v2523_v35 = vshll.u32 %v6368_v54, %v2511_v62 }
 0x418   : > { %v2524_v0 = vshrl.u32 %v6476_v63, %v2512_v19  ;;  %v2527_v7 = vshrl.u32 %v6477_v23, %v2512_v19  ;;  %v2448_v32 = vmul.u32 %v5629_v5, %v2432_v9  ;;  %v2526_v61 = vshll.u32 %v6476_v63, %v2511_v62 }
 0x419   : > { %v2522_v49 = vor.u32 %v2521_v22, %v2520_v28  ;;  %vm2529_vm4 = vcmp.lt.s32.totalorder %v5631_v58, 1  ;;  %vm2450_vm13 = vc.u32 %v5661_v4, %v5664_v15  ;;  %v2451_v50 = vadd.s32 1, %v5665_v52 }
 0x41a   : > { %v2525_v2 = vor.u32 %v2524_v0, %v2523_v35  ;;  %vm2530_vm1 = vcmp.lt.s32.totalorder %v5631_v58, 2  ;;  %v2528_v14 = vor.u32 %v2527_v7, %v2526_v61  ;;  %vm2531_vm6 = vcmp.lt.s32.totalorder %v5631_v58, 3 }
 0x41b   : > { %vm2532_vm5 = vcmp.lt.s32.totalorder %v5631_v58, 4  ;;  %v2537_v18 = vsel %vm2529_vm4, %v2516_v43, %v2519_v17  ;;  %v2452_v5 = vsel %vm2450_vm13, %v2451_v50, %v5665_v52  ;;  %v2541_v60 = vsel %vm2529_vm4, %v2519_v17, %v2522_v49 }
 0x41c   : > { %v2534_v16 = vsel %vm2532_vm5, %v2522_v49, 2102212464  ;;  %v2538_v62 = vsel %vm2532_vm5, %v2525_v2, 920167782  ;;  %v2453_v36 = vadd.s32 %v2452_v5, %v2448_v32  ;;  %v2533_v57 = vsel %vm2529_vm4, %v2513_v53, %v2516_v43 }
 0x41d   : > { %v2539_v19 = vsel %vm2531_vm6, %v2522_v49, %v2538_v62  ;;  %v2542_v8 = vsel %vm2532_vm5, %v2528_v14, 1326507024  ;;  %v2535_v51 = vsel %vm2531_vm6, %v2519_v17, %v2534_v16  ;;  %vm2612_vm9 = vcmp.gt.s32.totalorder %v5637_v1, 0 }
 0x41e   : > { %v2540_v44 = vsel %vm2530_vm1, %v2537_v18, %v2539_v19  ;;  %v2543_v11 = vsel %vm2531_vm6, %v2525_v2, %v2542_v8  ;;  %v2454_v6 = vadd.s32 536870912, %v2453_v36  ;;  %v2608_v33 = vand.u32 8388607, %v6355_v40 }
 0x41f   : > { %v2544_v41 = vsel %vm2530_vm1, %v2541_v60, %v2543_v11  ;;  %v5690_v31 = vmul.u32.u64.low %v5633_v37, %v2540_v44  ;;  %v5691_v21 = vmul.u32.u64.high %v5633_v37, %v2540_v44, %v5690_v31  ;;  %v2613_v13 = vsel %vm2612_vm9, %v5637_v1, 0 }
 0x420   : > { %v5695_v30 = vmul.u32.u64.low %v5633_v37, %v2544_v41  ;;  %v5696_v20 = vmul.u32.u64.high %v5633_v37, %v2544_v41, %v5695_v30  ;;  %v5701_v59 = vshrl.u32 %v2454_v6, 30  ;;  %v2536_v10 = vsel %vm2530_vm1, %v2533_v57, %v2535_v51 }
 0x421   : > { %v2615_v9 = vand.u32 31, %v2613_v13  ;;  %v2708_v3 = vand.u32 2139095040, %v5625_v45  ;;  %v2555_v39 = vadd.s32 1, %v5691_v21  ;;  %v2552_v52 = vmul.u32 %v5633_v37, %v2536_v10 }
 0x422   : > { %v2456_v38 = vshll.u32 %v5701_v59, 30  ;;  %vm2554_vm12 = vc.u32 %v5696_v20, %v5690_v31  ;;  %v2609_v43 = vor.u32 8388608, %v2608_v33  ;;  %v2614_v7 = vshrl.u32 %v2613_v13, 5 }
 0x423   : > { %v2616_v42 = vsub.s32 32, %v2615_v9  ;;  %v2556_v17 = vsel %vm2554_vm12, %v2555_v39, %v5691_v21  ;;  %v2709_v58 = vshrl.u32 %v2708_v3, 23  ;;  %v2618_v22 = vshll.u32 %v6367_v27, %v2615_v9 }
 0x424   : > { %v5711_v1 = vsub.s32 %v2453_v36, %v2456_v38  ;;  %v2557_v28 = vadd.s32 %v2556_v17, %v2552_v52  ;;  %v2621_v37 = vshll.u32 %v6374_v46, %v2615_v9  ;;  %v2624_v50 = vshll.u32 %v6371_v48, %v2615_v9 }
 0x425   : > { %v2619_v53 = vshrl.u32 %v6374_v46, %v2616_v42  ;;  %v2622_v35 = vshrl.u32 %v6371_v48, %v2616_v42  ;;  %v2625_v32 = vshrl.u32 %v6368_v54, %v2616_v42  ;;  %v2649_v2 = vshll.u32 %v2609_v43, 8 }
 0x426   : > { %v2459_v0 = vsub.s32 0, %v5711_v1  ;;  %v2558_v49 = vadd.s32 536870912, %v2557_v28  ;;  %v2627_v5 = vshll.u32 %v6368_v54, %v2615_v9  ;;  %v2628_v16 = vshrl.u32 %v6476_v63, %v2616_v42 }
 0x427   : > { %v2620_v61 = vor.u32 %v2619_v53, %v2618_v22  ;;  %v2623_v18 = vor.u32 %v2622_v35, %v2621_v37  ;;  %v2626_v60 = vor.u32 %v2625_v32, %v2624_v50  ;;  %v2630_v36 = vshll.u32 %v6476_v63, %v2615_v9 }
 0x428   : > { %v3461_v14 = vmin.u32 %v2459_v0, %v5711_v1  ;;  %v5724_v62 = vshrl.u32 %v2558_v49, 30  ;;  %v2631_v57 = vshrl.u32 %v6477_v23, %v2616_v42  ;;  %v2629_v8 = vor.u32 %v2628_v16, %v2627_v5 }
 0x429   : > { %vm2633_vm10 = vcmp.lt.s32.totalorder %v2614_v7, 1  ;;  %v3472_v51 = vadd.s32 4294967169, %v2709_v58  ;;  %vm2634_vm15 = vcmp.lt.s32.totalorder %v2614_v7, 2  ;;  %vm2636_vm0 = vcmp.lt.s32.totalorder %v2614_v7, 4 }
 0x42a   : > { %v2461_v19 = vclz %v3461_v14  ;;  %v2560_v44 = vshll.u32 %v5724_v62, 30  ;;  %v2632_v11 = vor.u32 %v2631_v57, %v2630_v36  ;;  %vm2635_vm2 = vcmp.lt.s32.totalorder %v2614_v7, 3 }
 0x42b   : > { %v2641_v41 = vsel %vm2633_vm10, %v2620_v61, %v2623_v18  ;;  %v2642_v21 = vsel %vm2636_vm0, %v2629_v8, 920167782  ;;  %v2638_v33 = vsel %vm2636_vm0, %v2626_v60, 2102212464  ;;  %v2645_v10 = vsel %vm2633_vm10, %v2623_v18, %v2626_v60 }
 0x42c   : > { %v3462_v6 = vadd.s32 4294967294, %v2461_v19  ;;  %v5730_v30 = vsub.s32 %v2557_v28, %v2560_v44  ;;  %v2643_v13 = vsel %vm2635_vm2, %v2626_v60, %v2642_v21  ;;  %v2617_v9 = vshrl.u32 %v6367_v27, %v2616_v42 }
 0x42d   : > { %v2644_v3 = vsel %vm2634_vm15, %v2641_v41, %v2643_v13  ;;  %v2646_v38 = vsel %vm2636_vm0, %v2632_v11, 1326507024  ;;  %v2715_v17 = vadd.s32 1, %v3472_v51  ;;  %v2639_v22 = vsel %vm2635_vm2, %v2623_v18, %v2638_v33  ;;  %v2285_v41 = vpop.permute.xlu0 %2284 }
 0x42e   : > { %vm3463_vm3 = vcmp.lt.s32.totalorder %v3462_v6, 0  ;;  %v2563_v52 = vsub.s32 0, %v5730_v30  ;;  %v2647_v43 = vsel %vm2635_vm2, %v2629_v8, %v2646_v38  ;;  %v2637_v28 = vsel %vm2633_vm10, %v2617_v9, %v2620_v61 }
 0x42f   : > { %v2464_v39 = vsel %vm3463_vm3, 0, %v3462_v6  ;;  %v2648_v53 = vsel %vm2634_vm15, %v2645_v10, %v2647_v43  ;;  %vm2716_vm7 = vcmp.gt.s32.totalorder %v2715_v17, 0  ;;  %v6354_v50 = vand.u32 2147483647, %v5625_v45 }
 0x430   : > { %v2469_v58 = vsub.s32 4294967266, %v2464_v39  ;;  %v3465_v35 = vmin.u32 %v2563_v52, %v5730_v30  ;;  %v5742_v0 = vmul.u32.u64.low %v2649_v2, %v2648_v53  ;;  %v5743_v42 = vmul.u32.u64.high %v2649_v2, %v2648_v53, %v5742_v0 }
 0x431   : > { %v5745_v37 = vmul.u32.u64.low %v2649_v2, %v2644_v3  ;;  %v5746_v32 = vmul.u32.u64.high %v2649_v2, %v2644_v3, %v5745_v37  ;;  %v2717_v14 = vsel %vm2716_vm7, %v2715_v17, 0  ;;  %v2465_v5 = vsub.s32 32, %v2464_v39 }
 0x432   : > { %v2565_v49 = vclz %v3465_v35  ;;  %v2470_v61 = vadd.s32 127, %v2469_v58  ;;  %v2640_v18 = vsel %vm2634_vm15, %v2637_v28, %v2639_v22  ;;  %v2719_v16 = vand.u32 31, %v2717_v14 }
 0x433   : > { %vm2658_vm11 = vc.u32 %v5743_v42, %v5745_v37  ;;  %v2449_v36 = vadd.s32 %v5664_v15, %v5661_v4  ;;  %v2659_v57 = vadd.s32 1, %v5746_v32  ;;  %v2656_v19 = vmul.u32 %v2649_v2, %v2640_v18 }
 0x434   : > { %v3466_v60 = vadd.s32 4294967294, %v2565_v49  ;;  %v2712_v8 = vand.u32 8388607, %v6354_v50  ;;  %v2471_v44 = vshll.u32 %v2470_v61, 23  ;;  %v2720_v11 = vsub.s32 32, %v2719_v16 }
 0x435   : > { %v2467_v51 = vshrl.u32 %v2449_v36, %v2465_v5  ;;  %v2660_v7 = vsel %vm2658_vm11, %v2659_v57, %v5746_v32  ;;  %v2466_v21 = vshll.u32 %v5711_v1, %v2464_v39  ;;  %v5761_v4 = vadd.f32 %v5619_v56, %v2285_v41 }
 0x436   : > { %vm3467_vm8 = vcmp.lt.s32.totalorder %v3466_v60, 0  ;;  %v2661_v6 = vadd.s32 %v2660_v7, %v2656_v19  ;;  %v2713_v10 = vor.u32 8388608, %v2712_v8  ;;  %v2472_v2 = vor.u32 4788187, %v2471_v44 }
 0x437   : > { %v2568_v33 = vsel %vm3467_vm8, 0, %v3466_v60  ;;  %v2468_v15 = vor.u32 %v2467_v51, %v2466_v21  ;;  %v2723_v9 = vshrl.u32 %v6374_v46, %v2720_v11  ;;  %v2726_v3 = vshrl.u32 %v6371_v48, %v2720_v11 }
 0x438   : > { %v2662_v13 = vadd.s32 536870912, %v2661_v6  ;;  %v2573_v38 = vsub.s32 4294967266, %v2568_v33  ;;  %v2729_v43 = vshrl.u32 %v6368_v54, %v2720_v11  ;;  %v2732_v17 = vshrl.u32 %v6476_v63, %v2720_v11 }
 0x439   : > { %v2722_v1 = vshll.u32 %v6367_v27, %v2719_v16  ;;  %v2725_v39 = vshll.u32 %v6374_v46, %v2719_v16  ;;  %v2731_v56 = vshll.u32 %v6368_v54, %v2719_v16  ;;  %v2735_v58 = vshrl.u32 %v6477_v23, %v2720_v11 }
 0x43a   : > { %v5765_v52 = vshrl.u32 %v2662_v13, 30  ;;  %v2718_v22 = vshrl.u32 %v2717_v14, 5  ;;  %v2728_v53 = vshll.u32 %v6371_v48, %v2719_v16  ;;  %v5776_v35 = vadd.f32 %v5621_v34, %v2285_v41 }
 0x43b   : > { %v2724_v0 = vor.u32 %v2723_v9, %v2722_v1  ;;  %v2727_v32 = vor.u32 %v2726_v3, %v2725_v39  ;;  %v2733_v49 = vor.u32 %v2732_v17, %v2731_v56  ;;  %v2734_v5 = vshll.u32 %v6476_v63, %v2719_v16 }
 0x43c   : > { %v2664_v28 = vshll.u32 %v5765_v52, 30  ;;  %v2553_v61 = vadd.s32 %v5690_v31, %v5696_v20  ;;  %v2574_v18 = vadd.s32 127, %v2573_v38  ;;  %v2730_v36 = vor.u32 %v2729_v43, %v2728_v53 }
 0x43d   : > { %v2473_v57 = vand.u32 2147483647, %v2472_v2  ;;  %v2475_v19 = vcvt.s32.f32 %v2468_v15  ;;  %v2736_v14 = vor.u32 %v2735_v58, %v2734_v5  ;;  %v2753_v8 = vshll.u32 %v2713_v10, 8 }
 0x43e   : > { %v5781_v60 = vsub.s32 %v2661_v6, %v2664_v28  ;;  %v2569_v51 = vsub.s32 32, %v2568_v33  ;;  %vm2737_vm14 = vcmp.lt.s32.totalorder %v2718_v22, 1  ;;  %vm2740_vm4 = vcmp.lt.s32.totalorder %v2718_v22, 4 }
 0x43f   : > { %v2721_v44 = vshrl.u32 %v6367_v27, %v2720_v11  ;;  %vm2739_vm13 = vcmp.lt.s32.totalorder %v2718_v22, 3  ;;  %v2745_v16 = vsel %vm2737_vm14, %v2724_v0, %v2727_v32  ;;  %v2746_v7 = vsel %vm2740_vm4, %v2733_v49, 920167782 }
 0x440   : > { %v2667_v34 = vsub.s32 0, %v5781_v60  ;;  %v2575_v31 = vshll.u32 %v2574_v18, 23  ;;  %vm2738_vm1 = vcmp.lt.s32.totalorder %v2718_v22, 2  ;;  %v2742_v20 = vsel %vm2740_vm4, %v2730_v36, 2102212464 }
 0x441   : > { %v2747_v6 = vsel %vm2739_vm13, %v2730_v36, %v2746_v7  ;;  %v2749_v13 = vsel %vm2737_vm14, %v2727_v32, %v2730_v36  ;;  %v2750_v10 = vsel %vm2740_vm4, %v2736_v14, 1326507024  ;;  %v2570_v15 = vshll.u32 %v5730_v30, %v2568_v33 }
 0x442   : > { %v3469_v41 = vmin.u32 %v2667_v34, %v5781_v60  ;;  %v2748_v21 = vsel %vm2738_vm1, %v2745_v16, %v2747_v6  ;;  %v2571_v2 = vshrl.u32 %v2553_v61, %v2569_v51  ;;  %v2741_v11 = vsel %vm2737_vm14, %v2721_v44, %v2724_v0  ;;  %v5816_v6 = vpop.permute.xlu1 %2289 }
 0x443   : > { %v2751_v9 = vsel %vm2739_vm13, %v2733_v49, %v2750_v10  ;;  %v2743_v3 = vsel %vm2739_vm13, %v2727_v32, %v2742_v20  ;;  %v5792_v43 = vmul.u32.u64.low %v2753_v8, %v2748_v21  ;;  %v5793_v17 = vmul.u32.u64.high %v2753_v8, %v2748_v21, %v5792_v43 }
 0x444   : > { %v2752_v38 = vsel %vm2738_vm1, %v2749_v13, %v2751_v9  ;;  %v2476_v1 = vmul.f32 %v2475_v19, %v2473_v57  ;;  %v2576_v39 = vor.u32 4788187, %v2575_v31  ;;  %v2669_v28 = vclz %v3469_v41 }
 0x445   : > { %v5796_v56 = vmul.u32.u64.low %v2753_v8, %v2752_v38  ;;  %v5797_v58 = vmul.u32.u64.high %v2753_v8, %v2752_v38, %v5796_v56  ;;  %v2812_v53 = vand.u32 2139095040, %v5761_v4  ;;  %v2572_v30 = vor.u32 %v2571_v2, %v2570_v15 }
 0x446   : > { %v2744_v33 = vsel %vm2738_vm1, %v2741_v11, %v2743_v3  ;;  %v2916_v0 = vand.u32 2139095040, %v5776_v35  ;;  %v2763_v32 = vadd.s32 1, %v5793_v17  ;;  %v2477_v5 = vxor.u32 2147483648, %v2476_v1 }
 0x447   : > { %v2813_v49 = vshrl.u32 %v2812_v53, 23  ;;  %v2479_v61 = vsub.s32 4, %v5701_v59  ;;  %v2577_v18 = vand.u32 2147483647, %v2576_v39  ;;  %v6353_v36 = vand.u32 2147483647, %v5761_v4 }
 0x448   : > { %v3470_v57 = vadd.s32 4294967294, %v2669_v28  ;;  %v2760_v19 = vmul.u32 %v2753_v8, %v2744_v33  ;;  %vm2762_vm6 = vc.u32 %v5797_v58, %v5792_v43  ;;  %v2579_v51 = vcvt.s32.f32 %v2572_v30 }
 0x449   : > { %v3476_v14 = vadd.s32 4294967169, %v2813_v49  ;;  %v2764_v22 = vsel %vm2762_vm6, %v2763_v32, %v5793_v17  ;;  %v2917_v34 = vshrl.u32 %v2916_v0, 23  ;;  %vm2395_vm5 = vcmp.lt.s32.totalorder %v5604_v12, 0 }
 0x44a   : > { %v2765_v44 = vadd.s32 %v2764_v22, %v2760_v19  ;;  %v2478_v7 = vsel %vm2395_vm5, %v2477_v5, %v2476_v1  ;;  %v5810_v31 = vsel %vm2395_vm5, %v2479_v61, %v5701_v59  ;;  %v5812_v20 = vmul.f32 %v2579_v51, %v2577_v18 }
 0x44b   : > { %v2819_v16 = vadd.s32 1, %v3476_v14  ;;  %v2816_v8 = vand.u32 8388607, %v6353_v36  ;;  %vm3471_vm9 = vcmp.lt.s32.totalorder %v3470_v57, 0  ;;  %v3480_v21 = vadd.s32 4294967169, %v2917_v34 }
 0x44c   : > { %v2766_v41 = vadd.s32 536870912, %v2765_v44  ;;  %vm5820_vm10 = vcmp.le.f32.partialorder %v2393_v26, 0.7853982  ;;  %v5826_v59 = vadd.f32 %v5623_v25, %v5816_v6  ;;  %v5833_v2 = vadd.s32 %v5745_v37, %v5743_v42 }
 0x44d   : > { %vm2820_vm12 = vcmp.gt.s32.totalorder %v2819_v16, 0  ;;  %v5840_v26 = vsel %vm5820_vm10, %v5604_v12, %v2478_v7  ;;  %v2581_v3 = vxor.u32 2147483648, %v5812_v20  ;;  %v5843_v25 = vsel %vm3471_vm9, 0, %v3470_v57 }
 0x44e   : > { %v2821_v10 = vsel %vm2820_vm12, %v2819_v16, 0  ;;  %v5835_v11 = vshrl.u32 %v2766_v41, 30  ;;  %v2817_v1 = vor.u32 8388608, %v2816_v8  ;;  %v2923_v42 = vadd.s32 1, %v3480_v21 }
 0x44f   : > { %v2823_v9 = vand.u32 31, %v2821_v10  ;;  %v2822_v37 = vshrl.u32 %v2821_v10, 5  ;;  %v6352_v51 = vand.u32 2147483647, %v5776_v35  ;;  %vm2499_vm15 = vcmp.lt.s32.totalorder %v5606_v24, 0 }
 0x450   : > { %v2768_v17 = vshll.u32 %v5835_v11, 30  ;;  %v2677_v22 = vsub.s32 4294967266, %v5843_v25  ;;  %v2857_v8 = vshll.u32 %v2817_v1, 8  ;;  %vm2924_vm2 = vcmp.gt.s32.totalorder %v2923_v42, 0 }
 0x451   : > { %v2824_v39 = vsub.s32 32, %v2823_v9  ;;  %v2826_v56 = vshll.u32 %v6367_v27, %v2823_v9  ;;  %v2829_v28 = vshll.u32 %v6374_v46, %v2823_v9  ;;  %v2832_v53 = vshll.u32 %v6371_v48, %v2823_v9 }
 0x452   : > { %v5850_v30 = vsub.s32 %v2765_v44, %v2768_v17  ;;  %v2835_v32 = vshll.u32 %v6368_v54, %v2823_v9  ;;  %v2838_v61 = vshll.u32 %v6476_v63, %v2823_v9  ;;  %vm2841_vm0 = vcmp.lt.s32.totalorder %v2822_v37, 1 }
 0x453   : > { %v2827_v33 = vshrl.u32 %v6374_v46, %v2824_v39  ;;  %v2830_v0 = vshrl.u32 %v6371_v48, %v2824_v39  ;;  %v2833_v49 = vshrl.u32 %v6368_v54, %v2824_v39  ;;  %v2836_v5 = vshrl.u32 %v6476_v63, %v2824_v39 }
 0x454   : > { %v2839_v18 = vshrl.u32 %v6477_v23, %v2824_v39  ;;  %v2771_v57 = vsub.s32 0, %v5850_v30  ;;  %v2825_v41 = vshrl.u32 %v6367_v27, %v2824_v39  ;;  %vm2842_vm3 = vcmp.lt.s32.totalorder %v2822_v37, 2 }
 0x455   : > { %v2828_v19 = vor.u32 %v2827_v33, %v2826_v56  ;;  %v2831_v14 = vor.u32 %v2830_v0, %v2829_v28  ;;  %v2834_v34 = vor.u32 %v2833_v49, %v2832_v53  ;;  %v2837_v44 = vor.u32 %v2836_v5, %v2835_v32 }
 0x456   : > { %v2840_v16 = vor.u32 %v2839_v18, %v2838_v61  ;;  %v3473_v7 = vmin.u32 %v2771_v57, %v5850_v30  ;;  %vm2844_vm7 = vcmp.lt.s32.totalorder %v2822_v37, 4  ;;  %vm2843_vm11 = vcmp.lt.s32.totalorder %v2822_v37, 3 }
 0x457   : > { %v2849_v21 = vsel %vm2841_vm0, %v2828_v19, %v2831_v14  ;;  %v2846_v9 = vsel %vm2844_vm7, %v2834_v34, 2102212464  ;;  %v2850_v17 = vsel %vm2844_vm7, %v2837_v44, 920167782  ;;  %v2845_v56 = vsel %vm2841_vm0, %v2825_v41, %v2828_v19 }
 0x458   : > { %v2773_v10 = vclz %v3473_v7  ;;  %v2851_v28 = vsel %vm2843_vm11, %v2834_v34, %v2850_v17  ;;  %v2853_v33 = vsel %vm2841_vm0, %v2831_v14, %v2834_v34  ;;  %v2854_v53 = vsel %vm2844_vm7, %v2840_v16, 1326507024 }
 0x459   : > { %v2847_v32 = vsel %vm2843_vm11, %v2831_v14, %v2846_v9  ;;  %v2852_v49 = vsel %vm2842_vm3, %v2849_v21, %v2851_v28  ;;  %v2855_v5 = vsel %vm2843_vm11, %v2837_v44, %v2854_v53  ;;  %v2678_v1 = vadd.s32 127, %v2677_v22 }
 0x45a   : > { %v3474_v0 = vadd.s32 4294967294, %v2773_v10  ;;  %v2856_v61 = vsel %vm2842_vm3, %v2853_v33, %v2855_v5  ;;  %v5867_v39 = vmul.u32.u64.low %v2857_v8, %v2852_v49  ;;  %v5868_v18 = vmul.u32.u64.high %v2857_v8, %v2852_v49, %v5867_v39 }
 0x45b   : > { %v5871_v57 = vmul.u32.u64.low %v2857_v8, %v2856_v61  ;;  %v5872_v7 = vmul.u32.u64.high %v2857_v8, %v2856_v61, %v5871_v57  ;;  %v2925_v19 = vsel %vm2924_vm2, %v2923_v42, 0  ;;  %v2848_v14 = vsel %vm2842_vm3, %v2845_v56, %v2847_v32 }
 0x45c   : > { %vm3475_vm8 = vcmp.lt.s32.totalorder %v3474_v0, 0  ;;  %v2920_v44 = vand.u32 8388607, %v6352_v51  ;;  %v2927_v22 = vand.u32 31, %v2925_v19  ;;  %v5883_v16 = vsel %vm2499_vm15, %v2581_v3, %v5812_v20 }
 0x45d   : > { %v5875_v34 = vsel %vm3475_vm8, 0, %v3474_v0  ;;  %v2673_v41 = vsub.s32 32, %v5843_v25  ;;  %v3020_v10 = vand.u32 2139095040, %v5826_v59  ;;  %v2867_v9 = vadd.s32 1, %v5868_v18 }
 0x45e   : > { %v2781_v37 = vsub.s32 4294967266, %v5875_v34  ;;  %v2928_v17 = vsub.s32 32, %v2927_v22  ;;  %v2679_v56 = vshll.u32 %v2678_v1, 23  ;;  %v2761_v28 = vadd.s32 %v5792_v43, %v5797_v58 }
 0x45f   : > { %v2864_v20 = vmul.u32 %v2857_v8, %v2848_v14  ;;  %vm2866_vm14 = vc.u32 %v5872_v7, %v5867_v39  ;;  %v2921_v33 = vor.u32 8388608, %v2920_v44  ;;  %v2777_v32 = vsub.s32 32, %v5875_v34 }
 0x460   : > { %v2868_v3 = vsel %vm2866_vm14, %v2867_v9, %v5868_v18  ;;  %v2931_v53 = vshrl.u32 %v6374_v46, %v2928_v17  ;;  %v2934_v0 = vshrl.u32 %v6371_v48, %v2928_v17  ;;  %v2926_v5 = vshrl.u32 %v2925_v19, 5 }
 0x461   : > { %v2869_v49 = vadd.s32 %v2868_v3, %v2864_v20  ;;  %v3021_v61 = vshrl.u32 %v3020_v10, 23  ;;  %v2782_v1 = vadd.s32 127, %v2781_v37  ;;  %v2930_v57 = vshll.u32 %v6367_v27, %v2927_v22 }
 0x462   : > { %v2933_v43 = vshll.u32 %v6374_v46, %v2927_v22  ;;  %v2937_v58 = vshrl.u32 %v6368_v54, %v2928_v17  ;;  %v2936_v18 = vshll.u32 %v6371_v48, %v2927_v22  ;;  %v2939_v14 = vshll.u32 %v6368_v54, %v2927_v22 }
 0x463   : > { %v2870_v8 = vadd.s32 536870912, %v2869_v49  ;;  %v2940_v44 = vshrl.u32 %v6476_v63, %v2928_v17  ;;  %vm5908_vm4 = vcmp.le.f32.partialorder %v2497_v55, 0.7853982  ;;  %v2932_v19 = vor.u32 %v2931_v53, %v2930_v57 }
 0x464   : > { %v2935_v10 = vor.u32 %v2934_v0, %v2933_v43  ;;  %v2942_v37 = vshll.u32 %v6476_v63, %v2927_v22  ;;  %v2943_v20 = vshrl.u32 %v6477_v23, %v2928_v17  ;;  %v2675_v3 = vshrl.u32 %v5833_v2, %v2673_v41 }
 0x465   : > { %v5915_v51 = vshrl.u32 %v2870_v8, 30  ;;  %v2938_v36 = vor.u32 %v2937_v58, %v2936_v18  ;;  %v2941_v15 = vor.u32 %v2940_v44, %v2939_v14  ;;  %v2680_v50 = vor.u32 4788187, %v2679_v56 }
 0x466   : > { %v2944_v40 = vor.u32 %v2943_v20, %v2942_v37  ;;  %v2961_v38 = vshll.u32 %v2921_v33, 8  ;;  %v3484_v21 = vadd.s32 4294967169, %v3021_v61  ;;  %v2783_v55 = vshll.u32 %v2782_v1, 23 }
 0x467   : > { %v2872_v42 = vshll.u32 %v5915_v51, 30  ;;  %vm2945_vm13 = vcmp.lt.s32.totalorder %v2926_v5, 1  ;;  %vm2948_vm1 = vcmp.lt.s32.totalorder %v2926_v5, 4  ;;  %vm2603_vm6 = vcmp.lt.s32.totalorder %v5612_v47, 0 }
 0x468   : > { %v2778_v22 = vshll.u32 %v5850_v30, %v5875_v34  ;;  %v2779_v53 = vshrl.u32 %v2761_v28, %v2777_v32  ;;  %v2953_v2 = vsel %vm2945_vm13, %v2932_v19, %v2935_v10  ;;  %v2954_v41 = vsel %vm2948_vm1, %v2941_v15, 920167782 }
 0x469   : > { %v5922_v0 = vsub.s32 %v2869_v49, %v2872_v42  ;;  %v2929_v56 = vshrl.u32 %v6367_v27, %v2928_v17  ;;  %vm2947_vm5 = vcmp.lt.s32.totalorder %v2926_v5, 3  ;;  %v2950_v33 = vsel %vm2948_vm1, %v2938_v36, 2102212464 }
 0x46a   : > { %vm2946_vm9 = vcmp.lt.s32.totalorder %v2926_v5, 2  ;;  %v2955_v61 = vsel %vm2947_vm5, %v2938_v36, %v2954_v41  ;;  %v2957_v1 = vsel %vm2945_vm13, %v2935_v10, %v2938_v36  ;;  %v2958_v57 = vsel %vm2948_vm1, %v2944_v40, 1326507024 }
 0x46b   : > { %v2784_v43 = vor.u32 4788187, %v2783_v55  ;;  %v2875_v58 = vsub.s32 0, %v5922_v0  ;;  %v2949_v30 = vsel %vm2945_vm13, %v2929_v56, %v2932_v19  ;;  %v2956_v34 = vsel %vm2946_vm9, %v2953_v2, %v2955_v61 }
 0x46c   : > { %v2951_v28 = vsel %vm2947_vm5, %v2935_v10, %v2950_v33  ;;  %v2959_v32 = vsel %vm2947_vm5, %v2941_v15, %v2958_v57  ;;  %v5929_v42 = vmul.u32.u64.low %v2961_v38, %v2956_v34  ;;  %v5930_v49 = vmul.u32.u64.high %v2961_v38, %v2956_v34, %v5929_v42 }
 0x46d   : > { %v2585_v17 = vsel %vm5908_vm4, %v5606_v24, %v5883_v16  ;;  %v3477_v40 = vmin.u32 %v2875_v58, %v5922_v0  ;;  %v2960_v36 = vsel %vm2946_vm9, %v2957_v1, %v2959_v32  ;;  %v3027_v8 = vadd.s32 1, %v3484_v21 }
 0x46e   : > { %v6482_v18 = vshll.u32 %v5781_v60, %v5843_v25  ;;  %v2780_v44 = vor.u32 %v2779_v53, %v2778_v22  ;;  %v5942_v15 = vmul.u32.u64.low %v2961_v38, %v2960_v36  ;;  %v5943_v19 = vmul.u32.u64.high %v2961_v38, %v2960_v36, %v5942_v15 }
 0x46f   : > { %v2681_v10 = vand.u32 2147483647, %v2680_v50  ;;  %v2877_v37 = vclz %v3477_v40  ;;  %v2952_v20 = vsel %vm2946_vm9, %v2949_v30, %v2951_v28  ;;  %vm3028_vm12 = vcmp.gt.s32.totalorder %v3027_v8, 0 }
 0x470   : > { %v2676_v14 = vor.u32 %v2675_v3, %v6482_v18  ;;  %v2785_v55 = vand.u32 2147483647, %v2784_v43  ;;  %v2971_v16 = vadd.s32 1, %v5930_v49  ;;  %v6483_v2 = vand.u32 2147483647, %v5826_v59 }
 0x471   : > { %v3029_v21 = vsel %vm3028_vm12, %v3027_v8, 0  ;;  %3704 = vcosq.f32 %v2585_v17  ;;  %v6484_v60 = vsub.s32 4, %v5765_v52  ;;  %v3478_v50 = vadd.s32 4294967294, %v2877_v37 }
 0x472   : > { %v3024_v41 = vand.u32 8388607, %v6483_v2  ;;  %v3031_v3 = vand.u32 31, %v3029_v21  ;;  %v2683_v5 = vcvt.s32.f32 %v2676_v14  ;;  %v2787_v22 = vcvt.s32.f32 %v2780_v44 }
 0x473   : > { %v5954_v25 = vsel %vm2603_vm6, %v6484_v60, %v5765_v52  ;;  %v2968_v53 = vmul.u32 %v2961_v38, %v2952_v20  ;;  %vm2970_vm0 = vc.u32 %v5943_v19, %v5929_v42  ;;  %3706 = vsinq.f32 %v2585_v17 }
 0x474   : > { %vm3479_vm2 = vcmp.lt.s32.totalorder %v3478_v50, 0  ;;  %v2972_v56 = vsel %vm2970_vm0, %v2971_v16, %v5930_v49  ;;  %v3032_v33 = vsub.s32 32, %v3031_v3  ;;  %v2684_v61 = vmul.f32 %v2683_v5, %v2681_v10 }
 0x475   : > { %v5959_v1 = vmul.f32 %v2787_v22, %v2785_v55  ;;  %v2973_v57 = vadd.s32 %v2972_v56, %v2968_v53  ;;  %v3025_v43 = vor.u32 8388608, %v3024_v41  ;;  %v5961_v52 = vsel %vm3479_vm2, 0, %v3478_v50 }
 0x476   : > { %v5963_v58 = vshrl.u32 %v3029_v21, 5  ;;  %v3040_v30 = vshll.u32 %v6371_v48, %v3031_v3  ;;  %v5968_v38 = vadd.f32 %v5627_v29, %v5816_v6  ;;  %v3035_v28 = vshrl.u32 %v6374_v46, %v3032_v33 }
 0x477   : > { %v2974_v34 = vadd.s32 536870912, %v2973_v57  ;;  %v3038_v32 = vshrl.u32 %v6371_v48, %v3032_v33  ;;  %v3041_v49 = vshrl.u32 %v6368_v54, %v3032_v33  ;;  %v3034_v17 = vshll.u32 %v6367_v27, %v3031_v3 }
 0x478   : > { %v3037_v40 = vshll.u32 %v6374_v46, %v3031_v3  ;;  %v3043_v36 = vshll.u32 %v6368_v54, %v3031_v3  ;;  %v3044_v8 = vshrl.u32 %v6476_v63, %v3032_v33  ;;  %v2685_v18 = vxor.u32 2147483648, %v2684_v61 }
 0x479   : > { %v2789_v14 = vxor.u32 2147483648, %v5959_v1  ;;  %v5978_v29 = vshrl.u32 %v2974_v34, 30  ;;  %v3042_v6 = vor.u32 %v3041_v49, %v3040_v30  ;;  %v2885_v44 = vsub.s32 4294967266, %v5961_v52 }
 0x47a   : > { %v3036_v15 = vor.u32 %v3035_v28, %v3034_v17  ;;  %v3039_v10 = vor.u32 %v3038_v32, %v3037_v40  ;;  %v3045_v37 = vor.u32 %v3044_v8, %v3043_v36  ;;  %v6485_v20 = vand.u32 2147483647, %v5612_v47 }
 0x47b   : > { %v2976_v16 = vshll.u32 %v5978_v29, 30  ;;  %v3046_v2 = vshll.u32 %v6476_v63, %v3031_v3  ;;  %v3047_v41 = vshrl.u32 %v6477_v23, %v3032_v33  ;;  %v3065_v21 = vshll.u32 %v3025_v43, 8  ;;  %v5990_v60 = vpop.eup %3704 }
 0x47c   : > { %vm5983_vm3 = vcmp.le.f32.partialorder %v6485_v20, 0.7853982  ;;  %vm2707_vm7 = vcmp.lt.s32.totalorder %v5625_v45, 0  ;;  %v2881_v50 = vsub.s32 32, %v5961_v52  ;;  %v3033_v5 = vshrl.u32 %v6367_v27, %v3032_v33 }
 0x47d   : > { %vm3052_vm11 = vcmp.lt.s32.totalorder %v5963_v58, 4  ;;  %v3124_v22 = vand.u32 2139095040, %v5968_v38  ;;  %v5997_v53 = vsub.s32 %v2973_v57, %v2976_v16  ;;  %v3048_v56 = vor.u32 %v3047_v41, %v3046_v2  ;;  %v6002_v43 = vpop.eup %3706 }
 0x47e   : > { %vm3049_vm8 = vcmp.lt.s32.totalorder %v5963_v58, 1  ;;  %v3054_v3 = vsel %vm3052_vm11, %v3042_v6, 2102212464  ;;  %v2886_v30 = vadd.s32 127, %v2885_v44  ;;  %vm3051_vm14 = vcmp.lt.s32.totalorder %v5963_v58, 3 }
 0x47f   : > { %v3057_v34 = vsel %vm3049_vm8, %v3036_v15, %v3039_v10  ;;  %v3058_v33 = vsel %vm3052_vm11, %v3045_v37, 920167782  ;;  %v6488_v28 = vand.u32 2147483647, %v5625_v45  ;;  %v2979_v32 = vsub.s32 0, %v5997_v53 }
 0x480   : > { %vm3050_vm1 = vcmp.lt.s32.totalorder %v5963_v58, 2  ;;  %v3059_v49 = vsel %vm3051_vm14, %v3042_v6, %v3058_v33  ;;  %v3061_v17 = vsel %vm3049_vm8, %v3039_v10, %v3042_v6  ;;  %v3053_v40 = vsel %vm3049_vm8, %v3033_v5, %v3036_v15 }
 0x481   : > { %vm6009_vm13 = vcmp.le.f32.partialorder %v6488_v28, 0.7853982  ;;  %v3055_v36 = vsel %vm3051_vm14, %v3039_v10, %v3054_v3  ;;  %v3060_v8 = vsel %vm3050_vm1, %v3057_v34, %v3059_v49  ;;  %v3062_v44 = vsel %vm3052_vm11, %v3048_v56, 1326507024 }
 0x482   : > { %v3481_v20 = vmin.u32 %v2979_v32, %v5997_v53  ;;  %v3063_v16 = vsel %vm3051_vm14, %v3045_v37, %v3062_v44  ;;  %v6020_v2 = vmul.u32.u64.low %v3065_v21, %v3060_v8  ;;  %v6021_v41 = vmul.u32.u64.high %v3065_v21, %v3060_v8, %v6020_v2 }
 0x483   : > { %v6491_v28 = vsel %vm5820_vm10, 0, %v5810_v31  ;;  %v2686_v6 = vsel %vm2603_vm6, %v2685_v18, %v2684_v61  ;;  %v3064_v15 = vsel %vm3050_vm1, %v3061_v17, %v3063_v16  ;;  %v3125_v10 = vshrl.u32 %v3124_v22, 23 }
 0x484   : > { %v6027_v33 = vadd.s32 3, %v6491_v28  ;;  %v2865_v5 = vadd.s32 %v5867_v39, %v5872_v7  ;;  %v2981_v37 = vclz %v3481_v20  ;;  %3708 = vcosq.f32 %v5840_v26 }
 0x485   : > { %v6035_v56 = vmul.u32.u64.low %v3065_v21, %v3064_v15  ;;  %v6036_v3 = vmul.u32.u64.high %v3065_v21, %v3064_v15, %v6035_v56  ;;  %v2690_v31 = vsel %vm5983_vm3, 0, %v5954_v25  ;;  %v3056_v13 = vsel %vm3050_vm1, %v3053_v40, %v3055_v36 }
 0x486   : > { %v3488_v61 = vadd.s32 4294967169, %v3125_v10  ;;  %v2790_v18 = vsel %vm2707_vm7, %v2789_v14, %v5959_v1  ;;  %v2883_v22 = vshrl.u32 %v2865_v5, %v2881_v50  ;;  %v2887_v39 = vshll.u32 %v2886_v30, 23 }
 0x487   : > { %v3075_v7 = vadd.s32 1, %v6021_v41  ;;  %v2689_v34 = vsel %vm5983_vm3, %v5612_v47, %v2686_v6  ;;  %v3121_v32 = vand.u32 2147483647, %v5968_v38  ;;  %v2583_v25 = vsub.s32 4, %v5724_v62 }
 0x488   : > { %v3131_v49 = vadd.s32 1, %v3488_v61  ;;  %v2882_v58 = vshll.u32 %v5922_v0, %v5961_v52  ;;  %v3482_v17 = vadd.s32 4294967294, %v2981_v37  ;;  %v3072_v40 = vmul.u32 %v3065_v21, %v3056_v13 }
 0x489   : > { %vm3074_vm10 = vc.u32 %v6036_v3, %v6020_v2  ;;  %3710 = vsinq.f32 %v5840_v26  ;;  %v2793_v1 = vsel %vm6009_vm13, %v5625_v45, %v2790_v18  ;;  %v6063_v50 = vor.u32 4788187, %v2887_v39 }
 0x48a   : > { %v3076_v14 = vsel %vm3074_vm10, %v3075_v7, %v6021_v41  ;;  %vm3132_vm6 = vcmp.gt.s32.totalorder %v3131_v49, 0  ;;  %3712 = vcosq.f32 %v2689_v34  ;;  %v6061_v55 = vor.u32 %v2883_v22, %v2882_v58 }
 0x48b   : > { %v3077_v30 = vadd.s32 %v3076_v14, %v3072_v40  ;;  %3714 = vsinq.f32 %v2689_v34  ;;  %v6065_v0 = vadd.s32 3, %v2690_v31  ;;  %v3128_v52 = vand.u32 8388607, %v3121_v32 }
 0x48c   : > { %v3133_v26 = vsel %vm3132_vm6, %v3131_v49, 0  ;;  %3716 = vcosq.f32 %v2793_v1  ;;  %vm3483_vm5 = vcmp.lt.s32.totalorder %v3482_v17, 0  ;;  %v2584_v36 = vsel %vm2499_vm15, %v2583_v25, %v5724_v62 }
 0x48d   : > { %v3078_v21 = vadd.s32 536870912, %v3077_v30  ;;  %3718 = vsinq.f32 %v2793_v1  ;;  %v6074_v8 = vadd.s32 %v5929_v42, %v5943_v19  ;;  %v3135_v44 = vand.u32 31, %v3133_v26 }
 0x48e   : > { %v2594_v20 = vxor.u32 2147483648, %v6002_v43  ;;  %v2889_v16 = vand.u32 2147483647, %v6063_v50  ;;  %v2891_v41 = vcvt.s32.f32 %v6061_v55  ;;  %v2597_v6 = vxor.u32 2147483648, %v5990_v60  ;;  %v6082_v15 = vpop.eup %3708 }
 0x48f   : > { %v6079_v28 = vshrl.u32 %v3078_v21, 30  ;;  %v6084_v10 = vsel %vm3483_vm5, 0, %v3482_v17  ;;  %v3129_v62 = vor.u32 8388608, %v3128_v52  ;;  %v3136_v5 = vsub.s32 32, %v3135_v44 }
 0x490   : > { %v2586_v42 = vsel %vm5908_vm4, 0, %v2584_v36  ;;  %v6089_v19 = vadd.s32 %v6020_v2, %v6036_v3  ;;  %v3138_v56 = vshll.u32 %v6367_v27, %v3135_v44  ;;  %v2791_v31 = vsub.s32 4, %v5835_v11 }
 0x491   : > { %v3080_v37 = vshll.u32 %v6079_v28, 30  ;;  %v3139_v13 = vshrl.u32 %v6374_v46, %v3136_v5  ;;  %v3141_v61 = vshll.u32 %v6374_v46, %v3135_v44  ;;  %v3142_v18 = vshrl.u32 %v6371_v48, %v3136_v5 }
 0x492   : > { %v3145_v22 = vshrl.u32 %v6368_v54, %v3136_v5  ;;  %v2989_v9 = vsub.s32 4294967266, %v6084_v10  ;;  %v3134_v2 = vshrl.u32 %v3133_v26, 5  ;;  %v3144_v3 = vshll.u32 %v6371_v48, %v3135_v44 }
 0x493   : > { %v6099_v39 = vsub.s32 %v3077_v30, %v3080_v37  ;;  %v6102_v7 = vpop.eup %3710  ;;  %v2985_v34 = vsub.s32 32, %v6084_v10  ;;  %v3140_v49 = vor.u32 %v3139_v13, %v3138_v56  ;;  %v3143_v25 = vor.u32 %v3142_v18, %v3141_v61 }
 0x494   : > { %v6105_v58 = vshll.u32 %v3129_v62, 8  ;;  %v6107_v46 = vpop.eup %3712  ;;  %v3146_v40 = vor.u32 %v3145_v22, %v3144_v3  ;;  %v3147_v1 = vshll.u32 %v6368_v54, %v3135_v44  ;;  %v3148_v14 = vshrl.u32 %v6476_v63, %v3136_v5 }
 0x495   : > { %v3083_v17 = vsub.s32 0, %v6099_v39  ;;  %v6112_v30 = vpop.eup %3714  ;;  %v3150_v48 = vshll.u32 %v6476_v63, %v3135_v44  ;;  %v3151_v52 = vshrl.u32 %v6477_v23, %v3136_v5  ;;  %v2590_v26 = vadd.s32 3, %v2586_v42 }
 0x496   : > { %v2792_v21 = vsel %vm2707_vm7, %v2791_v31, %v5835_v11  ;;  %v6119_v36 = vpop.eup %3716  ;;  %v2990_v62 = vadd.s32 127, %v2989_v9  ;;  %v3149_v56 = vor.u32 %v3148_v14, %v3147_v1  ;;  %vm3153_vm15 = vcmp.lt.s32.totalorder %v3134_v2, 1 }
 0x497   : > { %v3485_v37 = vmin.u32 %v3083_v17, %v6099_v39  ;;  %v3719_v54 = vpop.eup %3718  ;;  %v3137_v13 = vshrl.u32 %v6367_v27, %v3136_v5  ;;  %v3152_v61 = vor.u32 %v3151_v52, %v3150_v48  ;;  %vm3156_vm4 = vcmp.lt.s32.totalorder %v3134_v2, 4 }
 0x498   : > { %v3161_v63 = vsel %vm3153_vm15, %v3140_v49, %v3143_v25  ;;  %vm3155_vm9 = vcmp.lt.s32.totalorder %v3134_v2, 3  ;;  %v3158_v23 = vsel %vm3156_vm4, %v3146_v40, 2102212464  ;;  %v3162_v42 = vsel %vm3156_vm4, %v3149_v56, 920167782 }
 0x499   : > { %v3085_v44 = vclz %v3485_v37  ;;  %vm3154_vm12 = vcmp.lt.s32.totalorder %v3134_v2, 2  ;;  %v3163_v18 = vsel %vm3155_vm9, %v3146_v40, %v3162_v42  ;;  %v3165_v11 = vsel %vm3153_vm15, %v3143_v25, %v3146_v40 }
 0x49a   : > { %v2591_v31 = vand.u32 3, %v2590_v26  ;;  %v3157_v9 = vsel %vm3153_vm15, %v3137_v13, %v3140_v49  ;;  %v3164_v3 = vsel %vm3154_vm12, %v3161_v63, %v3163_v18  ;;  %v3166_v17 = vsel %vm3156_vm4, %v3152_v61, 1326507024 }
 0x49b   : > { %v3486_v22 = vadd.s32 4294967294, %v3085_v44  ;;  %v3159_v1 = vsel %vm3155_vm9, %v3143_v25, %v3158_v23  ;;  %v3167_v14 = vsel %vm3155_vm9, %v3149_v56, %v3166_v17  ;;  %v2986_v48 = vshll.u32 %v5997_v53, %v6084_v10 }
 0x49c   : > { %v6125_v27 = vmul.u32.u64.low %v6105_v58, %v3164_v3  ;;  %v6126_v5 = vmul.u32.u64.high %v6105_v58, %v3164_v3, %v6125_v27  ;;  %v3168_v52 = vsel %vm3154_vm12, %v3165_v11, %v3167_v14  ;;  %v2794_v40 = vsel %vm6009_vm13, 0, %v2792_v21 }
 0x49d   : > { %vm3487_vm0 = vcmp.lt.s32.totalorder %v3486_v22, 0  ;;  %v2987_v49 = vshrl.u32 %v6074_v8, %v2985_v34  ;;  %v6136_v25 = vmul.u32.u64.low %v6105_v58, %v3168_v52  ;;  %v6137_v37 = vmul.u32.u64.high %v6105_v58, %v3168_v52, %v6136_v25 }
 0x49e   : > { %v3088_v26 = vsel %vm3487_vm0, 0, %v3486_v22  ;;  %vm2589_vm2 = vweird.f32 %v5606_v24  ;;  %vm2797_vm3 = vweird.f32 %v5625_v45  ;;  %v2991_v56 = vshll.u32 %v2990_v62, 23 }
 0x49f   : > { %v3093_v13 = vsub.s32 4294967266, %v3088_v26  ;;  %v3160_v53 = vsel %vm3154_vm12, %v3157_v9, %v3159_v1  ;;  %v2802_v10 = vxor.u32 2147483648, %v3719_v54  ;;  %v3179_v61 = vadd.s32 1, %v6126_v5 }
 0x4a0   : > { %vm2593_vm7 = vcmp.eq.s32.totalorder %v2591_v31, 0  ;;  %vm2596_vm11 = vcmp.eq.s32.totalorder %v2591_v31, 2  ;;  %v2798_v57 = vadd.s32 3, %v2794_v40  ;;  %v2805_v62 = vxor.u32 2147483648, %v6119_v36 }
 0x4a1   : > { %v3094_v8 = vadd.s32 127, %v3093_v13  ;;  %v2595_v34 = vsel %vm2593_vm7, %v5990_v60, %v2594_v20  ;;  %v2598_v21 = vsel %vm2596_vm11, %v2597_v6, %v6002_v43  ;;  %v2988_v63 = vor.u32 %v2987_v49, %v2986_v48 }
 0x4a2   : > { %v3176_v2 = vmul.u32 %v6105_v58, %v3160_v53  ;;  %vm3178_vm8 = vc.u32 %v6137_v37, %v6125_v27  ;;  %v2799_v44 = vand.u32 3, %v2798_v57  ;;  %v2992_v23 = vor.u32 4788187, %v2991_v56 }
 0x4a3   : > { %v3089_v42 = vsub.s32 32, %v3088_v26  ;;  %v3180_v18 = vsel %vm3178_vm8, %v3179_v61, %v6126_v5  ;;  %vm2592_vm14 = vcmp.lt.s32.totalorder %v2591_v31, 2  ;;  %v3095_v60 = vshll.u32 %v3094_v8, 23 }
 0x4a4   : > { %v3181_v11 = vadd.s32 %v3180_v18, %v3176_v2  ;;  %v2599_v20 = vsel %vm2592_vm14, %v2595_v34, %v2598_v21  ;;  %vm2801_vm13 = vcmp.eq.s32.totalorder %v2799_v44, 0  ;;  %vm2804_vm1 = vcmp.eq.s32.totalorder %v2799_v44, 2 }
 0x4a5   : > { %vm2800_vm10 = vcmp.lt.s32.totalorder %v2799_v44, 2  ;;  %v2803_v43 = vsel %vm2801_vm13, %v6119_v36, %v2802_v10  ;;  %v2806_v6 = vsel %vm2804_vm1, %v2805_v62, %v3719_v54  ;;  %v2487_v9 = vand.u32 3, %v6027_v33 }
 0x4a6   : > { %v3182_v22 = vadd.s32 536870912, %v3181_v11  ;;  %v2807_v58 = vsel %vm2800_vm10, %v2803_v43, %v2806_v6  ;;  %v2490_v3 = vxor.u32 2147483648, %v6102_v7  ;;  %v3091_v17 = vshrl.u32 %v6089_v19, %v3089_v42 }
 0x4a7   : > { %v2600_v31 = vsel %vm2589_vm2, nan, %v2599_v20  ;;  %v2808_v1 = vsel %vm2797_vm3, nan, %v2807_v58  ;;  %v2493_v14 = vxor.u32 2147483648, %v6082_v15  ;;  %v3090_v5 = vshll.u32 %v6099_v39, %v3088_v26 }
 0x4a8   : > { %v6164_v36 = vshrl.u32 %v3182_v22, 30  ;;  %v3513_v54 = vpack.c.bf16 %v2808_v1, %v2600_v31  ;;  %vm2489_vm6 = vcmp.eq.s32.totalorder %v2487_v9, 0  ;;  %v3096_v48 = vor.u32 4788187, %v3095_v60 }
 0x4a9   : > { %v2491_v33 = vsel %vm2489_vm6, %v6082_v15, %v2490_v3  ;;  %vm2492_vm5 = vcmp.eq.s32.totalorder %v2487_v9, 2  ;;  %v2695_v19 = vand.u32 3, %v6065_v0  ;;  %v2698_v52 = vxor.u32 2147483648, %v6112_v30 }
 0x4aa   : > { %v3184_v24 = vshll.u32 %v6164_v36, 30  ;;  %3514 = vmatprep.subr.bf16.mxu0 %v3513_v54  ;;  %v2494_v45 = vsel %vm2492_vm5, %v2493_v14, %v6102_v7  ;;  %v2701_v40 = vxor.u32 2147483648, %v6107_v46  ;;  %v2993_v39 = vand.u32 2147483647, %v2992_v23 }
 0x4ab   : > { %v3092_v49 = vor.u32 %v3091_v17, %v3090_v5  ;;  %vm2488_vm15 = vcmp.lt.s32.totalorder %v2487_v9, 2  ;;  %vm2697_vm4 = vcmp.eq.s32.totalorder %v2695_v19, 0  ;;  %vm2700_vm9 = vcmp.eq.s32.totalorder %v2695_v19, 2 }
 0x4ac   : > { %v3185_v26 = vsub.s32 %v3181_v11, %v3184_v24  ;;  %v2495_v25 = vsel %vm2488_vm15, %v2491_v33, %v2494_v45  ;;  %v2699_v15 = vsel %vm2697_vm4, %v6107_v46, %v2698_v52  ;;  %v2995_v56 = vcvt.s32.f32 %v2988_v63 }
 0x4ad   : > { %v3097_v0 = vand.u32 2147483647, %v3096_v48  ;;  %vm2696_vm12 = vcmp.lt.s32.totalorder %v2695_v19, 2  ;;  %v2702_v13 = vsel %vm2700_vm9, %v2701_v40, %v6112_v30  ;;  %vm2485_vm0 = vweird.f32 %v5604_v12 }
 0x4ae   : > { %v3187_v53 = vsub.s32 0, %v3185_v26  ;;  %vm2693_vm2 = vweird.f32 %v5612_v47  ;;  %v2703_v7 = vsel %vm2696_vm12, %v2699_v15, %v2702_v13  ;;  %v2892_v10 = vmul.f32 %v2891_v41, %v2889_v16 }
 0x4af   : > { %v3099_v61 = vcvt.s32.f32 %v3092_v49  ;;  %v2496_v57 = vsel %vm2485_vm0, nan, %v2495_v25  ;;  %v2704_v46 = vsel %vm2693_vm2, nan, %v2703_v7  ;;  %v2996_v8 = vmul.f32 %v2995_v56, %v2993_v39 }
 0x4b0   : > { %v3489_v34 = vmin.u32 %v3187_v53, %v3185_v26  ;;  %v3515_v21 = vpack.c.bf16 %v2704_v46, %v2496_v57  ;;  %v2893_v30 = vxor.u32 2147483648, %v2892_v10  ;;  %vm2811_vm3 = vcmp.lt.s32.totalorder %v5761_v4, 0 }
 0x4b1   : > { %v3100_v62 = vmul.f32 %v3099_v61, %v3097_v0  ;;  %v2997_v2 = vxor.u32 2147483648, %v2996_v8  ;;  %vm2915_vm11 = vcmp.lt.s32.totalorder %v5776_v35, 0  ;;  %vm3019_vm8 = vcmp.lt.s32.totalorder %v5826_v59, 0 }
 0x4b2   : > { %v3189_v63 = vclz %v3489_v34  ;;  %3516 = vmatpush1.bf16.msra.mxu0 %v3515_v21  ;;  %v2894_v47 = vsel %vm2811_vm3, %v2893_v30, %v2892_v10  ;;  %v3177_v16 = vadd.s32 %v6125_v27, %v6137_v37  ;;  %v6492_v42 = vand.u32 2147483647, %v5761_v4 }
 0x4b3   : > { %v3101_v44 = vxor.u32 2147483648, %v3100_v62  ;;  %v2998_v50 = vsel %vm2915_vm11, %v2997_v2, %v2996_v8  ;;  %v6495_v11 = vand.u32 2147483647, %v5776_v35  ;;  %v6498_v58 = vand.u32 2147483647, %v5826_v59 }
 0x4b4   : > { %v3490_v12 = vadd.s32 4294967294, %v3189_v63  ;;  %vm6191_vm14 = vcmp.le.f32.partialorder %v6492_v42, 0.7853982  ;;  %v3103_v1 = vsub.s32 4, %v6079_v28  ;;  %v2999_v5 = vsub.s32 4, %v5978_v29 }
 0x4b5   : > { %vm6197_vm13 = vcmp.le.f32.partialorder %v6495_v11, 0.7853982  ;;  %v3102_v60 = vsel %vm3019_vm8, %v3101_v44, %v3100_v62  ;;  %v2897_v27 = vsel %vm6191_vm14, %v5761_v4, %v2894_v47  ;;  %vm6211_vm1 = vcmp.le.f32.partialorder %v6498_v58, 0.7853982 }
 0x4b6   : > { %vm3491_vm7 = vcmp.lt.s32.totalorder %v3490_v12, 0  ;;  %v3001_v22 = vsel %vm6197_vm13, %v5776_v35, %v2998_v50  ;;  %v3105_v3 = vsel %vm6211_vm1, %v5826_v59, %v3102_v60  ;;  %3720 = vcosq.f32 %v2897_v27 }
 0x4b7   : > { %v3192_v55 = vsel %vm3491_vm7, 0, %v3490_v12  ;;  %3722 = vcosq.f32 %v3001_v22  ;;  %v2895_v54 = vsub.s32 4, %v5915_v51  ;;  %v3104_v19 = vsel %vm3019_vm8, %v3103_v1, %v6079_v28 }
 0x4b8   : > { %v3193_v41 = vsub.s32 32, %v3192_v55  ;;  %v3197_v23 = vsub.s32 4294967266, %v3192_v55  ;;  %v3194_v37 = vshll.u32 %v3185_v26, %v3192_v55  ;;  %3724 = vcosq.f32 %v3105_v3 }
 0x4b9   : > { %3726 = vsinq.f32 %v3105_v3  ;;  %v3207_v45 = vsub.s32 4, %v6164_v36  ;;  %v3000_v52 = vsel %vm2915_vm11, %v2999_v5, %v5978_v29  ;;  %v2896_v40 = vsel %vm2811_vm3, %v2895_v54, %v5915_v51  ;;  %v3225_v5 = vld [vmem:[%s6272_s7] sm:$0x7] }
 0x4ba   : > { %v3195_v43 = vshrl.u32 %v3177_v16, %v3193_v41  ;;  %v3198_v6 = vadd.s32 127, %v3197_v23  ;;  %3728 = vsinq.f32 %v3001_v22  ;;  %v3106_v49 = vsel %vm6211_vm1, 0, %v3104_v19 }
 0x4bb   : > { %3730 = vsinq.f32 %v2897_v27  ;;  %vm3123_vm10 = vcmp.lt.s32.totalorder %v5968_v38, 0  ;;  %vm6236_vm6 = vcmp.le.f32.partialorder %v3121_v32, 0.7853982  ;;  %v3002_v29 = vsel %vm6197_vm13, 0, %v3000_v52 }
 0x4bc   : > { %v3196_v17 = vor.u32 %v3195_v43, %v3194_v37  ;;  %v3199_v31 = vshll.u32 %v3198_v6, 23  ;;  %v3208_v25 = vsel %vm3123_vm10, %v3207_v45, %v6164_v36  ;;  %v2898_v51 = vsel %vm6191_vm14, 0, %v2896_v40 }
 0x4bd   : > { %v3110_v13 = vadd.s32 3, %v3106_v49  ;;  %v3006_v53 = vadd.s32 3, %v3002_v29  ;;  %v3210_v7 = vsel %vm6236_vm6, 0, %v3208_v25  ;;  %v2902_v61 = vadd.s32 3, %v2898_v51 }
 0x4be   : > { %v3200_v14 = vor.u32 4788187, %v3199_v31  ;;  %v3203_v33 = vcvt.s32.f32 %v3196_v17  ;;  %v3214_v46 = vadd.s32 3, %v3210_v7  ;;  %vm3109_vm13 = vweird.f32 %v5826_v59 }
 0x4bf   : > { %v3111_v8 = vand.u32 3, %v3110_v13  ;;  %v3007_v34 = vand.u32 3, %v3006_v53  ;;  %v2903_v2 = vand.u32 3, %v2902_v61  ;;  %vm3005_vm1 = vweird.f32 %v5776_v35  ;;  %v3230_v35 = vpop.permute.xlu0 %3229 }
 0x4c0   : > { %v3201_v48 = vand.u32 2147483647, %v3200_v14  ;;  %v3721_v15 = vpop.eup %3720  ;;  %v3215_v47 = vand.u32 3, %v3214_v46 }
 0x4c1   : > { %v3723_v0 = vpop.eup %3722  ;;  %v2909_v44 = vxor.u32 2147483648, %v3721_v15  ;;  %vm3113_vm5 = vcmp.eq.s32.totalorder %v3111_v8, 0  ;;  %vm3116_vm15 = vcmp.eq.s32.totalorder %v3111_v8, 2  ;;  %vm3009_vm4 = vcmp.eq.s32.totalorder %v3007_v34, 0 }
 0x4c2   : > { %v3204_v24 = vmul.f32 %v3203_v33, %v3201_v48  ;;  %v3725_v32 = vpop.eup %3724  ;;  %v3013_v30 = vxor.u32 2147483648, %v3723_v0  ;;  %vm3012_vm9 = vcmp.eq.s32.totalorder %v3007_v34, 2  ;;  %vm2905_vm12 = vcmp.eq.s32.totalorder %v2903_v2, 0 }
 0x4c3   : > { %v3727_v10 = vpop.eup %3726  ;;  %v3117_v62 = vxor.u32 2147483648, %v3725_v32  ;;  %vm2908_vm0 = vcmp.eq.s32.totalorder %v2903_v2, 2  ;;  %vm3112_vm2 = vcmp.lt.s32.totalorder %v3111_v8, 2  ;;  %vm3008_vm3 = vcmp.lt.s32.totalorder %v3007_v34, 2 }
 0x4c4   : > { %v3205_v39 = vxor.u32 2147483648, %v3204_v24  ;;  %v3729_v36 = vpop.eup %3728  ;;  %v3114_v21 = vxor.u32 2147483648, %v3727_v10  ;;  %vm3220_vm7 = vcmp.eq.s32.totalorder %v3215_v47, 2  ;;  %vm3217_vm11 = vcmp.eq.s32.totalorder %v3215_v47, 0 }
 0x4c5   : > { %v3731_v57 = vpop.eup %3730  ;;  %v3010_v63 = vxor.u32 2147483648, %v3729_v36  ;;  %v3118_v50 = vsel %vm3116_vm15, %v3117_v62, %v3727_v10  ;;  %v3014_v23 = vsel %vm3012_vm9, %v3013_v30, %v3729_v36  ;;  %vm2904_vm8 = vcmp.lt.s32.totalorder %v2903_v2, 2 }
 0x4c6   : > { %v3206_v26 = vsel %vm3123_vm10, %v3205_v39, %v3204_v24  ;;  %v2906_v12 = vxor.u32 2147483648, %v3731_v57  ;;  %v3115_v55 = vsel %vm3113_vm5, %v3725_v32, %v3114_v21  ;;  %v2910_v20 = vsel %vm2908_vm0, %v2909_v44, %v3731_v57 }
 0x4c7   : > { %v3209_v56 = vsel %vm6236_vm6, %v5968_v38, %v3206_v26  ;;  %v3011_v41 = vsel %vm3009_vm4, %v3723_v0, %v3010_v63  ;;  %v3119_v27 = vsel %vm3112_vm2, %v3115_v55, %v3118_v50  ;;  %vm3216_vm14 = vcmp.lt.s32.totalorder %v3215_v47, 2 }
 0x4c8   : > { %3732 = vcosq.f32 %v3209_v56  ;;  %v2907_v11 = vsel %vm2905_vm12, %v3721_v15, %v2906_v12  ;;  %v3015_v37 = vsel %vm3008_vm3, %v3011_v41, %v3014_v23  ;;  %vm3213_vm10 = vweird.f32 %v5968_v38 }
 0x4c9   : > { %3734 = vsinq.f32 %v3209_v56  ;;  %v2911_v22 = vsel %vm2904_vm8, %v2907_v11, %v2910_v20  ;;  %v3120_v9 = vsel %vm3109_vm13, nan, %v3119_v27  ;;  %v3016_v3 = vsel %vm3005_vm1, nan, %v3015_v37 }
 0x4ca   : > { %vm2901_vm6 = vweird.f32 %v5761_v4  ;;  %vm6503_vm5 = vcmask 261120  }
 0x4cb   : > { %v2912_v1 = vsel %vm2901_vm6, nan, %v2911_v22 }
 0x4cc   : > { %v3519_v14 = vpack.c.bf16 %v3120_v9, %v2912_v1 }
 0x4d2   : > { %v3733_v16 = vpop.eup %3732 }
 0x4d3   : > { %v3735_v42 = vpop.eup %3734  ;;  %v3221_v18 = vxor.u32 2147483648, %v3733_v16 }
 0x4d4   : > { %v3218_v60 = vxor.u32 2147483648, %v3735_v42 }
 0x4d5   : > { %v3222_v43 = vsel %vm3220_vm7, %v3221_v18, %v3735_v42 }
 0x4d6   : > { %v3219_v6 = vsel %vm3217_vm11, %v3733_v16, %v3218_v60 }
 0x4d7   : > { %v3223_v58 = vsel %vm3216_vm14, %v3219_v6, %v3222_v43 }
 0x4d8   : > { %v3224_v17 = vsel %vm3213_vm10, nan, %v3223_v58 }
 0x4d9   : > { %v3517_v31 = vpack.c.bf16 %v3224_v17, %v3016_v3 }
 0x4db   : > { %3518 = vmatprep.subr.bf16.mxu0 %v3517_v31 }
 0x4dc   : > { %3520 = vmatpush1.bf16.msra.mxu0 %v3519_v14 }
 0x4df   : > { %3492 = vmatmul.mubr.msk.f32.vlgmr.msra.gmra.mrb[8].mxu0 %vm6503_vm5, %v3225_v5 }
 0x5b2   : > { %v3301_v59 = vpop.f32.mrb[8].mxu0 }
 0x5b3   : > { %v3302_v38 = vadd.f32 %v3301_v59, %v3230_v35  ;;  %v3303_v54 = vpop.f32.mrb[9].mxu0 }
 0x5b4   : > { %v3304_v48 = vadd.f32 %v3303_v54, %v3230_v35 }
 0x5b5   : > { %v3493_v33 = vmul.f32 -1.442695, %v3302_v38 }
 0x5b6   : > { %v3494_v19 = vmul.f32 -1.442695, %v3304_v48 }
 0x5b7   : > { %3736 = vpow2.f32 %v3493_v33 }
 0x5b8   : > { %3738 = vpow2.f32 %v3494_v19 }
 0x5c1   : > { %v3737_v4 = vpop.eup %3736 }
 0x5c2   : > { %v3739_v24 = vpop.eup %3738  ;;  %v3312_v45 = vadd.f32 1.0, %v3737_v4 }
 0x5c3   : > { %v3313_v52 = vadd.f32 1.0, %v3739_v24 }
 0x5c4   : > { %3740 = vrcp.f32 %v3312_v45 }
 0x5c5   : > { %3742 = vrcp.f32 %v3313_v52 }
 0x5ce   : > { %v3741_v40 = vpop.eup %3740 }
 0x5cf   : > { %v3743_v39 = vpop.eup %3742 }
 0x5d0   : > { %v3320_v49 = vcombine.low %v3741_v40, %v3743_v39 }
 0x5d2   : > { %3322 = vst [vmem:[%s334_s13] sm:$0x77] %v3320_v49 }
 0x5d3 PF: > { %s19_s30 = sadd.s32 1, %s3750_s30  }
 0x5d4   : > { %p16_p4 = scmp.ge.s32.totalorder %s19_s30, 4  }
 0x5d6   :  { %18 = sbr.rel (!%p16_p4) target bundleno = 1 (0x1), region = 86 }

</bundles_post_ra>
